<compile_context>
chip_gen: v6e
topology: v6e:2x2x1
jax: 0.10.0
libtpu: 0.0.40
codegen_flags: <defaults>
</compile_context>

<pallas_src>
import math
import jax
import jax.numpy as jnp
from jax.experimental import pallas as pl
from jax.experimental.pallas import tpu as pltpu

F32 = jnp.float32
BF16 = jnp.bfloat16
BN_EPS = 1e-5
BN_SCALE = 1.0 / math.sqrt(1.0 + BN_EPS)   # eval-mode BatchNorm, running stats (0, 1)
NEG = -1e30


def _round_up(x, m):
    return ((x + m - 1) // m) * m


def _vmem_limit():
    # generation-aware scoped VMEM limit (~80% of physical, capped)
    try:
        cap = int(pltpu.get_tpu_info().vmem_capacity_bytes)
    except Exception:
        cap = 64 * 1024 * 1024
    return min(max(32 * 1024 * 1024, (cap * 4) // 5), 110 * 1024 * 1024)


def _pad2d(a, rows, cols):
    out = jnp.zeros((rows, cols), F32)
    return out.at[:a.shape[0], :a.shape[1]].set(a.astype(F32))


# ----------------------------------------------------------------------------
# Fused GNN layer: EdgeLayer + NodeLayer + CompLayer + residual, segment-based.
# Grid = (node_blocks, edge_chunks); flash-style online edge-softmax per dst.
# ----------------------------------------------------------------------------
def make_gnn_kernel(tn, te, dp):
    def kernel(cs_ref, nc_ref, ent_ref, srcf_ref, relf_ref, dst_ref, isout_ref,
               cwi_ref, cwo_ref, ewi_ref, ewo_ref, nw_ref,
               o_ref, acc_ref, den_ref, m_ref):
        i = pl.program_id(0)
        j = pl.program_id(1)

        @pl.when(j == 0)
        def _init():
            acc_ref[...] = jnp.zeros_like(acc_ref)
            den_ref[...] = jnp.zeros_like(den_ref)
            m_ref[...] = jnp.full_like(m_ref, NEG)

        @pl.when(j < nc_ref[i])
        def _accumulate():
            ent_blk = ent_ref[...]                              # (tn, dp) f32
            src = srcf_ref[...].astype(F32)                     # (te, dp)  bf16 -> f32
            rel = relf_ref[...].astype(F32)

            dloc = dst_ref[...] - i * tn                        # (1, te) i32, dst-local idx
            valid_row = jnp.logical_and(dloc >= 0, dloc < tn)   # (1, te) bool
            rows = jax.lax.broadcasted_iota(jnp.int32, (tn, te), 0)
            onehot = jnp.logical_and(rows == dloc, valid_row)   # (tn, te) local scatter mask
            onehot_f = onehot.astype(F32)

            # exact dst-row gather via 0/1 matmul (keeps logit path f32-exact)
            dstf = jax.lax.dot_general(onehot_f, ent_blk, (((0,), (0,)), ((), ())),
                                       preferred_element_type=F32)      # (te, dp)

            comp = src * rel                                    # comp_op == 'mul'
            logit_c = jnp.sum(comp * dstf, axis=1, keepdims=True)   # CompLayer e_dot_v
            logit_e = jnp.sum(rel * dstf, axis=1, keepdims=True)    # EdgeLayer e_dot_v
            logit_n = jnp.sum(src * dstf, axis=1, keepdims=True)    # NodeLayer u_dot_v

            def seg_max(logit_col):                             # (te,1) -> (tn,1)
                lrow = jnp.transpose(logit_col, (1, 0))         # (1, te)
                return jnp.max(jnp.where(onehot, lrow, NEG), axis=1, keepdims=True)

            m_old = m_ref[...]                                  # (tn, 3)
            m_chunk = jnp.concatenate(
                [seg_max(logit_c), seg_max(logit_e), seg_max(logit_n)], axis=1)
            m_new = jnp.maximum(m_old, m_chunk)
            alpha = jnp.exp(m_old - m_new)                      # (tn, 3) rescale factors
            m_ref[...] = m_new

            # per-edge new max (exact 0/1 matmul gather), then f32 exp weights
            m_edge = jax.lax.dot_general(onehot_f, m_new, (((0,), (0,)), ((), ())),
                                         preferred_element_type=F32)    # (te, 3)
            logits = jnp.concatenate([logit_c, logit_e, logit_n], axis=1)
            valid_col = jnp.transpose(valid_row.astype(F32), (1, 0))    # (te, 1)
            ex = jnp.exp(logits - m_edge) * valid_col           # (te, 3) f32 softmax weights
            ex_c = ex[:, 0:1]
            ex_e = ex[:, 1:2]
            ex_n = ex[:, 2:3]

            isout = jnp.transpose(isout_ref[...], (1, 0))       # (te, 1) f32
            isin = 1.0 - isout

            # ONE wide bf16 MXU pass over the local scatter mask for all 3 branches;
            # in/out edge split kept column-wise so the DxD projections move node-side.
            wmsg = jnp.concatenate([
                comp * (ex_c * isout), comp * (ex_c * isin),
                src * (ex_e * isout), src * (ex_e * isin),
                src * ex_n], axis=1)                            # (te, 5*dp)
            contrib = jnp.dot(onehot_f.astype(BF16), wmsg.astype(BF16),
                              preferred_element_type=F32)       # (tn, 5*dp)
            dcontrib = jnp.dot(onehot_f, ex, preferred_element_type=F32)  # (tn, 3) f32

            a_c = alpha[:, 0:1]
            a_e = alpha[:, 1:2]
            a_n = alpha[:, 2:3]
            alpha_wide = jnp.concatenate([
                jnp.broadcast_to(a_c, (tn, 2 * dp)),
                jnp.broadcast_to(a_e, (tn, 2 * dp)),
                jnp.broadcast_to(a_n, (tn, dp))], axis=1)
            acc_ref[...] = alpha_wide * acc_ref[...] + contrib
            den_ref[...] = alpha * den_ref[...] + dcontrib

        @pl.when(j == pl.num_programs(1) - 1)
        def _finalize():
            acc = acc_ref[...]
            inv = pl.reciprocal(jnp.maximum(den_ref[...], 1e-30), approx=True)  # (tn,3)
            comp_agg = (jnp.dot(acc[:, 0:dp], cwi_ref[...], preferred_element_type=F32)
                        + jnp.dot(acc[:, dp:2 * dp], cwo_ref[...],
                                  preferred_element_type=F32)) * inv[:, 0:1]
            # TODO(synk): reference EdgeLayer.in_out_calc lacks a `return` (a bug);
            # the message projected here is src (as the reference's apply_edges sets).
            edge_agg = (jnp.dot(acc[:, 2 * dp:3 * dp], ewi_ref[...],
                                preferred_element_type=F32)
                        + jnp.dot(acc[:, 3 * dp:4 * dp], ewo_ref[...],
                                  preferred_element_type=F32)) * inv[:, 1:2]
            node_agg = jnp.dot(acc[:, 4 * dp:5 * dp], nw_ref[...],
                               preferred_element_type=F32) * inv[:, 2:3]
            # residual + per-branch tanh, accumulated branch-by-branch
            o_ref[...] = ent_ref[...] + jnp.tanh(comp_agg)
            o_ref[...] += jnp.tanh(edge_agg)
            o_ref[...] += jnp.tanh(node_agg)

    return kernel


def fused_gnn_layer(ent_pad, src_feat, rel_feat, g, w):
    n_pad, dp = ent_pad.shape
    tn, te, max_j = g["tn"], g["te"], g["max_j"]
    nb = n_pad // tn
    last_chunk = g["dst_ids"].shape[1] // te - 1

    def ent_map(i, j, cs, nc):
        return (i, 0)

    def edge_map(i, j, cs, nc):
        return (jnp.minimum(cs[i] + j, last_chunk), 0)

    def lane_map(i, j, cs, nc):
        return (0, jnp.minimum(cs[i] + j, last_chunk))

    def w_map(i, j, cs, nc):
        return (0, 0)

    grid_spec = pltpu.PrefetchScalarGridSpec(
        num_scalar_prefetch=2,
        grid=(nb, max_j),
        in_specs=[
            pl.BlockSpec((tn, dp), ent_map),
            pl.BlockSpec((te, dp), edge_map),
            pl.BlockSpec((te, dp), edge_map),
            pl.BlockSpec((1, te), lane_map),
            pl.BlockSpec((1, te), lane_map),
            pl.BlockSpec((dp, dp), w_map),
            pl.BlockSpec((dp, dp), w_map),
            pl.BlockSpec((dp, dp), w_map),
            pl.BlockSpec((dp, dp), w_map),
            pl.BlockSpec((dp, dp), w_map),
        ],
        out_specs=pl.BlockSpec((tn, dp), ent_map),
        scratch_shapes=[
            pltpu.VMEM((tn, 5 * dp), F32),   # numerators: comp-out|comp-in|edge-out|edge-in|node
            pltpu.VMEM((tn, 3), F32),        # softmax denominators (comp, edge, node)
            pltpu.VMEM((tn, 3), F32),        # running per-dst maxima
        ],
    )
    return pl.pallas_call(
        make_gnn_kernel(tn, te, dp),
        out_shape=jax.ShapeDtypeStruct((n_pad, dp), F32),
        grid_spec=grid_spec,
        compiler_params=pltpu.CompilerParams(
            dimension_semantics=("parallel", "arbitrary"),
            vmem_limit_bytes=_vmem_limit()),
    )(g["chunk_start"], g["n_chunks"], ent_pad, src_feat, rel_feat,
      g["dst_ids"], g["is_out"],
      w["comp_w_i"], w["comp_w_o"], w["edge_w_i"], w["edge_w_o"], w["node_neigh_w"])


# ----------------------------------------------------------------------------
# Static graph preprocessing: dst-sort, chunking, per-node-block chunk tables.
# ----------------------------------------------------------------------------
def prepare_graph(src, dst, rel_id, e_half, n_ent, h_dim):
    E = int(src.shape[0])
    d_pad = _round_up(h_dim, 128)
    n_pad = _round_up(n_ent, 128)
    tn = 256 if (n_pad % 256 == 0 and n_pad >= 256) else 128
    te = min(512, _round_up(E, 128))
    e_pad = _round_up(E, te)

    order = jnp.argsort(dst)
    dst_sorted = dst[order]
    src_s = jnp.pad(src[order], (0, e_pad - E)).astype(jnp.int32)
    rel_s = jnp.pad(rel_id[order], (0, e_pad - E)).astype(jnp.int32)
    dst_ids = jnp.pad(dst_sorted, (0, e_pad - E), constant_values=-1)
    dst_ids = dst_ids.astype(jnp.int32).reshape(1, e_pad)
    is_out = jnp.pad((order < e_half).astype(F32), (0, e_pad - E)).reshape(1, e_pad)

    nb = n_pad // tn
    bounds = jnp.searchsorted(dst_sorted, jnp.arange(nb + 1) * tn)
    start_e, end_e = bounds[:-1], bounds[1:]
    chunk_start = (start_e // te).astype(jnp.int32)
    has = end_e > start_e
    n_chunks = jnp.where(has, (end_e - 1) // te - start_e // te + 1, 0).astype(jnp.int32)
    max_j = max(int(jnp.max(n_chunks)), 1)

    score_tn = 2048
    while n_pad % score_tn != 0:
        score_tn //= 2

    return {"chunk_start": chunk_start, "n_chunks": n_chunks,
            "dst_ids": dst_ids, "is_out": is_out,
            "src_sorted": src_s, "rel_sorted": rel_s,
            "tn": tn, "te": te, "max_j": max_j,
            "n_pad": n_pad, "d_pad": d_pad, "score_tn": score_tn}


# ----------------------------------------------------------------------------
# Model wrappers
# ----------------------------------------------------------------------------
def aggregate_emb(params, graph):
    n_ent, D = params["ent_emb"].shape
    n_pad, d_pad = graph["n_pad"], graph["d_pad"]
    ent = _pad2d(params["ent_emb"], n_pad, d_pad)
    rel_list = []
    for lp in params["layers"]:
        rel_emb = lp["rel_emb"]                 # ent_drop / rel_drop = identity (eval)
        rel_pad = _pad2d(rel_emb, rel_emb.shape[0], d_pad)
        # TODO(synk): at WN18RR scale these per-edge row gathers should be done
        # in-kernel (pl.ANY HBM ref + scalar-prefetched indices / DMA double-buffer)
        # instead of XLA gathers between pallas_calls.
        src_feat = ent[graph["src_sorted"]].astype(BF16)      # (E_pad, Dp)
        rel_feat = rel_pad[graph["rel_sorted"]].astype(BF16)
        w = {k: _pad2d(lp[k], d_pad, d_pad)
             for k in ("comp_w_i", "comp_w_o", "edge_w_i", "edge_w_o", "node_neigh_w")}
        ent = fused_gnn_layer(ent, src_feat, rel_feat, graph, w)
        rel_list.append(rel_emb)
    rel_cat = jnp.concatenate(rel_list, axis=1)
    pred_rel = rel_cat @ params["rel_w"]        # tiny matmul: left to XLA (cfg.pred_rel_w)
    return ent, pred_rel


# ----------------------------------------------------------------------------
# ConvE + score fused: conv-as-matmul (BN folded, channel-major output, no reshape)
# then lane-dense (bs, N) score tiled over padded N against bf16 ent.
# ----------------------------------------------------------------------------
def conve_score_kernel(patch_ref, wbig_ref, fcw_ref, fcb_ref, ent_ref, bias_ref,
                       o_ref, x_ref):
    @pl.when(pl.program_id(0) == 0)
    def _conve():
        h = jnp.dot(patch_ref[...], wbig_ref[...], preferred_element_type=F32)
        h = jnp.maximum(h, 0.0)
        x = jnp.dot(h, fcw_ref[...], preferred_element_type=F32) + fcb_ref[...]
        x_ref[...] = jnp.maximum(x, 0.0)

    y = jax.lax.dot_general(x_ref[...].astype(BF16), ent_ref[...],
                            dimension_numbers=(((1,), (1,)), ((), ())),
                            preferred_element_type=F32)
    o_ref[...] = jax.nn.sigmoid(y + bias_ref[...])


def conve_score(patches, w_big, fc_w, fc_b, ent_bf, ent_bias, tn):
    bs_pad, P = patches.shape
    C2 = w_big.shape[1]
    n_pad, dp = ent_bf.shape
    return pl.pallas_call(
        conve_score_kernel,
        out_shape=jax.ShapeDtypeStruct((bs_pad, n_pad), F32),
        grid=(pl.cdiv(n_pad, tn),),
        in_specs=[
            pl.BlockSpec((bs_pad, P), lambda n: (0, 0)),
            pl.BlockSpec((P, C2), lambda n: (0, 0)),
            pl.BlockSpec((C2, dp), lambda n: (0, 0)),
            pl.BlockSpec((1, dp), lambda n: (0, 0)),
            pl.BlockSpec((tn, dp), lambda n: (n, 0)),
            pl.BlockSpec((1, tn), lambda n: (0, n)),
        ],
        out_specs=pl.BlockSpec((bs_pad, tn), lambda n: (0, n)),
        scratch_shapes=[pltpu.VMEM((bs_pad, dp), F32)],
        compiler_params=pltpu.CompilerParams(
            dimension_semantics=("arbitrary",),        # ConvE scratch reused across tiles
            vmem_limit_bytes=_vmem_limit()),
    )(patches, w_big, fc_w, fc_b, ent_bf, ent_bias)


def se_gnn_forward(params, graph, h_id, r_id, *, k_h, k_w, out_ch, ker):
    ent_pad, pred_rel = aggregate_emb(params, graph)       # (N_pad, Dp) f32
    n_ent, D = params["ent_emb"].shape
    dp = ent_pad.shape[1]

    head = ent_pad[h_id, :D]                                # (bs, D)
    rel = pred_rel[r_id]                                    # (bs, D)
    bs = head.shape[0]
    bs_pad = max(8, _round_up(bs, 8))
    head_p = jnp.pad(head, ((0, bs_pad - bs), (0, 0)))
    rel_p = jnp.pad(rel, ((0, bs_pad - bs), (0, 0)))

    # ConvE input image: cat -> transpose -> (bs_pad, 2*k_h, k_w)
    c = jnp.concatenate([head_p[:, None, :], rel_p[:, None, :]], axis=1)
    img = jnp.transpose(c, (0, 2, 1)).reshape(bs_pad, 2 * k_h, k_w)
    kh2, kw = 2 * k_h, k_w
    oh, ow = kh2 - ker + 1, kw - ker + 1
    spatial, K = oh * ow, ker * ker

    # im2col prep (cheap XLA): (bs_pad, spatial*K), k index = di*ker + dj
    patches = jnp.stack(
        [img[:, di:di + oh, dj:dj + ow].reshape(bs_pad, spatial)
         for di in range(ker) for dj in range(ker)], axis=-1)
    patches = patches.reshape(bs_pad, spatial * K)

    # Block conv weight producing torch's channel-major flatten directly; bn0/bn1 folded.
    conv_w = params["conv_w"]                               # (out_ch, K)
    s_idx, k_idx, c_idx = jnp.arange(spatial), jnp.arange(K), jnp.arange(out_ch)
    rows = jnp.broadcast_to(s_idx[:, None, None] * K + k_idx[None, :, None],
                            (spatial, K, out_ch))
    cols = jnp.broadcast_to(c_idx[None, None, :] * spatial + s_idx[:, None, None],
                            (spatial, K, out_ch))
    vals = jnp.broadcast_to(jnp.transpose(conv_w)[None, :, :],
                            (spatial, K, out_ch)) * (BN_SCALE * BN_SCALE)
    w_big = jnp.zeros((spatial * K, out_ch * spatial), F32).at[rows, cols].set(vals)

    # fc with bn2 folded, padded lane-dense to Dp
    fc_w = _pad2d(params["fc_w"] * BN_SCALE, out_ch * spatial, dp)
    fc_b = _pad2d(params["fc_b"] * BN_SCALE, 1, dp)

    # TODO(synk): emit the bf16 copy directly from the last GNN layer kernel.
    ent_bf = ent_pad.astype(BF16)
    bias_pad = _pad2d(params["ent_bias"], 1, ent_pad.shape[0])

    s = conve_score(patches, w_big, fc_w, fc_b, ent_bf, bias_pad, graph["score_tn"])
    return s[:bs, :n_ent]


# ----------------------------------------------------------------------------
# Deterministic parameter init (xavier-normal like utils.get_param)
# ----------------------------------------------------------------------------
def init_params(key, n_ent, n_rel, h_dim, n_layers, out_ch, ker, k_h, k_w):
    keys = jax.random.split(key, 4 + 6 * n_layers)
    it = iter(keys)

    def xav(shape):
        std = math.sqrt(2.0 / (shape[0] + shape[1]))
        return (std * jax.random.normal(next(it), shape)).astype(F32)

    params = {"ent_emb": xav((n_ent, h_dim)), "layers": []}
    for _ in range(n_layers):
        params["layers"].append({
            "rel_emb": xav((2 * n_rel, h_dim)),
            "edge_w_i": xav((h_dim, h_dim)),
            "edge_w_o": xav((h_dim, h_dim)),
            "node_neigh_w": xav((h_dim, h_dim)),
            "comp_w_i": xav((h_dim, h_dim)),
            "comp_w_o": xav((h_dim, h_dim)),
        })
    params["rel_w"] = xav((h_dim * n_layers, h_dim))        # cfg.pred_rel_w = True
    oh, ow = 2 * k_h - ker + 1, k_w - ker + 1
    flat_sz = out_ch * oh * ow
    params["conv_w"] = xav((out_ch, ker * ker))             # Conv2d(1, out_ch, ker), bias=False
    params["fc_w"] = xav((flat_sz, h_dim))                  # Linear(flat_sz, h_dim)
    params["fc_b"] = jnp.zeros((1, h_dim), F32)
    params["ent_bias"] = jnp.zeros((1, n_ent), F32)         # ConvE per-entity bias
    return params


# ----------------------------------------------------------------------------
# Main
# ----------------------------------------------------------------------------
if __name__ == "__main__":
    N_ENT, N_REL, H_DIM, N_LAYER = 16, 5, 32, 2
    K_H, K_W, OUT_CH, KER = 8, 4, 4, 3          # k_h * k_w == h_dim
    E_HALF = 20
    BS = 2

    root = jax.random.PRNGKey(0)
    kg_key, p_key, h_key, r_key = jax.random.split(root, 4)
    k1, k2, k3 = jax.random.split(kg_key, 3)

    # Synthetic KG: E_HALF original ("out") edges followed by their reverses ("in"),
    # the structure SE-GNN uses for its in/out edge masks.
    src_o = jax.random.randint(k1, (E_HALF,), 0, N_ENT)
    dst_o = jax.random.randint(k2, (E_HALF,), 0, N_ENT)
    rel_o = jax.random.randint(k3, (E_HALF,), 0, N_REL)
    src = jnp.concatenate([src_o, dst_o])
    dst = jnp.concatenate([dst_o, src_o])
    rel_id = jnp.concatenate([rel_o, rel_o + N_REL])

    graph = prepare_graph(src, dst, rel_id, E_HALF, N_ENT, H_DIM)
    params = init_params(p_key, N_ENT, N_REL, H_DIM, N_LAYER, OUT_CH, KER, K_H, K_W)

    h_id = jax.random.randint(h_key, (BS,), 0, N_ENT)
    r_id = jax.random.randint(r_key, (BS,), 0, 2 * N_REL)

    score = se_gnn_forward(params, graph, h_id, r_id,
                           k_h=K_H, k_w=K_W, out_ch=OUT_CH, ker=KER)
    score = jax.block_until_ready(score)
    assert score.shape == (BS, N_ENT)
    assert bool(jnp.all(jnp.isfinite(score)))
    print("KERNEL_OK")
</pallas_src>

<mosaic_0001>
module attributes {stable_mosaic.version = 11 : i64} {
  func.func @kernel(%arg0: i32, %arg1: i32, %arg2: memref<1xi32, #tpu.memory_space<smem>>, %arg3: memref<1xi32, #tpu.memory_space<smem>>, %arg4: memref<128x128xf32, #tpu.memory_space<vmem>>, %arg5: memref<128x128xbf16, #tpu.memory_space<vmem>>, %arg6: memref<128x128xbf16, #tpu.memory_space<vmem>>, %arg7: memref<1x128xi32, #tpu.memory_space<vmem>>, %arg8: memref<1x128xf32, #tpu.memory_space<vmem>>, %arg9: memref<128x128xf32, #tpu.memory_space<vmem>>, %arg10: memref<128x128xf32, #tpu.memory_space<vmem>>, %arg11: memref<128x128xf32, #tpu.memory_space<vmem>>, %arg12: memref<128x128xf32, #tpu.memory_space<vmem>>, %arg13: memref<128x128xf32, #tpu.memory_space<vmem>>, %arg14: memref<128x128xf32, #tpu.memory_space<vmem>>, %arg15: memref<128x640xf32, #tpu.memory_space<vmem>>, %arg16: memref<128x3xf32, #tpu.memory_space<vmem>>, %arg17: memref<128x3xf32, #tpu.memory_space<vmem>>) attributes {dimension_semantics = [#tpu.dimension_semantics<parallel>, #tpu.dimension_semantics<arbitrary>], iteration_bounds = array<i64: 1, 1>, scalar_prefetch = 2 : i64, scratch_operands = 3 : i64, tpu.core_type = #tpu.core_type<tc>, window_params = [{transform_indices = @transform_0, window_bounds = array<i64: 128, 128>}, {transform_indices = @transform_1, window_bounds = array<i64: 128, 128>}, {transform_indices = @transform_2, window_bounds = array<i64: 128, 128>}, {transform_indices = @transform_3, window_bounds = array<i64: 1, 128>}, {transform_indices = @transform_4, window_bounds = array<i64: 1, 128>}, {pipeline_mode = #tpu.pipeline_mode<synchronous>, transform_indices = @transform_5, window_bounds = array<i64: 128, 128>}, {pipeline_mode = #tpu.pipeline_mode<synchronous>, transform_indices = @transform_6, window_bounds = array<i64: 128, 128>}, {pipeline_mode = #tpu.pipeline_mode<synchronous>, transform_indices = @transform_7, window_bounds = array<i64: 128, 128>}, {pipeline_mode = #tpu.pipeline_mode<synchronous>, transform_indices = @transform_8, window_bounds = array<i64: 128, 128>}, {pipeline_mode = #tpu.pipeline_mode<synchronous>, transform_indices = @transform_9, window_bounds = array<i64: 128, 128>}, {transform_indices = @transform_10, window_bounds = array<i64: 128, 128>}]} {
    %c0_i32 = arith.constant 0 : i32
    %0 = arith.cmpi eq, %arg1, %c0_i32 : i32
    %1 = arith.extui %0 : i1 to i32
    %c0_i32_0 = arith.constant 0 : i32
    %2 = arith.cmpi ne, %1, %c0_i32_0 : i32
    scf.if %2 {
      %cst = arith.constant 0.000000e+00 : f32
      %11 = vector.broadcast %cst : f32 to vector<128x640xf32>
      %c0 = arith.constant 0 : index
      %c0_4 = arith.constant 0 : index
      %12 = vector.load %arg15[%c0, %c0_4] : memref<128x640xf32, #tpu.memory_space<vmem>>, vector<128x640xf32>
      tpu.vector_store %arg15[%c0, %c0_4], %11 {strides = array<i32>} : memref<128x640xf32, #tpu.memory_space<vmem>>, vector<128x640xf32>,
      %cst_5 = arith.constant 0.000000e+00 : f32
      %13 = vector.broadcast %cst_5 : f32 to vector<128x3xf32>
      %c0_6 = arith.constant 0 : index
      %c0_7 = arith.constant 0 : index
      %14 = vector.load %arg16[%c0_6, %c0_7] : memref<128x3xf32, #tpu.memory_space<vmem>>, vector<128x3xf32>
      tpu.vector_store %arg16[%c0_6, %c0_7], %13 {strides = array<i32>} : memref<128x3xf32, #tpu.memory_space<vmem>>, vector<128x3xf32>,
      %cst_8 = arith.constant -1.000000e+30 : f32
      %15 = vector.broadcast %cst_8 : f32 to vector<128x3xf32>
      %c0_9 = arith.constant 0 : index
      %c0_10 = arith.constant 0 : index
      %16 = vector.load %arg17[%c0_9, %c0_10] : memref<128x3xf32, #tpu.memory_space<vmem>>, vector<128x3xf32>
      tpu.vector_store %arg17[%c0_9, %c0_10], %15 {strides = array<i32>} : memref<128x3xf32, #tpu.memory_space<vmem>>, vector<128x3xf32>,
    } else {
    }
    %3 = arith.index_cast %arg0 : i32 to index
    %4 = memref.load %arg3[%3] : memref<1xi32, #tpu.memory_space<smem>>
    %5 = arith.cmpi slt, %arg1, %4 : i32
    %6 = arith.extui %5 : i1 to i32
    %c0_i32_1 = arith.constant 0 : i32
    %7 = arith.cmpi ne, %6, %c0_i32_1 : i32
    scf.if %7 {
      %c0 = arith.constant 0 : index
      %c0_4 = arith.constant 0 : index
      %11 = vector.load %arg4[%c0, %c0_4] : memref<128x128xf32, #tpu.memory_space<vmem>>, vector<128x128xf32>
      %c0_5 = arith.constant 0 : index
      %c0_6 = arith.constant 0 : index
      %12 = vector.load %arg5[%c0_5, %c0_6] : memref<128x128xbf16, #tpu.memory_space<vmem>>, vector<128x128xbf16>
      %13 = arith.extf %12 : vector<128x128xbf16> to vector<128x128xf32>
      %c0_7 = arith.constant 0 : index
      %c0_8 = arith.constant 0 : index
      %14 = vector.load %arg6[%c0_7, %c0_8] : memref<128x128xbf16, #tpu.memory_space<vmem>>, vector<128x128xbf16>
      %15 = arith.extf %14 : vector<128x128xbf16> to vector<128x128xf32>
      %c0_9 = arith.constant 0 : index
      %c0_10 = arith.constant 0 : index
      %16 = vector.load %arg7[%c0_9, %c0_10] : memref<1x128xi32, #tpu.memory_space<vmem>>, vector<1x128xi32>
      %c128_i32 = arith.constant 128 : i32
      %17 = arith.muli %arg0, %c128_i32 : i32
      %18 = vector.broadcast %17 : i32 to vector<1x128xi32>
      %19 = arith.subi %16, %18 : vector<1x128xi32>
      %c0_i32_11 = arith.constant 0 : i32
      %20 = vector.broadcast %c0_i32_11 : i32 to vector<1x128xi32>
      %21 = arith.cmpi sge, %19, %20 : vector<1x128xi32>
      %c128_i32_12 = arith.constant 128 : i32
      %22 = vector.broadcast %c128_i32_12 : i32 to vector<1x128xi32>
      %23 = arith.cmpi slt, %19, %22 : vector<1x128xi32>
      %24 = arith.andi %21, %23 : vector<1x128xi1>
      %25 = tpu.iota {dimensions = array<i32: 0>} : vector<128x128xi32>
      %26 = vector.broadcast %19 : vector<1x128xi32> to vector<128x128xi32>
      %27 = arith.cmpi eq, %25, %26 : vector<128x128xi32>
      %28 = vector.broadcast %24 : vector<1x128xi1> to vector<128x128xi1>
      %29 = arith.andi %27, %28 : vector<128x128xi1>
      %30 = arith.extui %29 : vector<128x128xi1> to vector<128x128xi32>
      %31 = arith.sitofp %30 : vector<128x128xi32> to vector<128x128xf32>
      %cst = arith.constant dense<0.000000e+00> : vector<128x128xf32>
      %32 = tpu.matmul %31, %11, %cst {dimension_numbers = #tpu.dot_dimension_numbers<[0], [0], [1], [1], [0, 1, 1, 1], [], []>} : vector<128x128xf32>, vector<128x128xf32>, vector<128x128xf32> -> vector<128x128xf32>
      %33 = arith.mulf %13, %15 : vector<128x128xf32>
      %34 = arith.mulf %33, %32 : vector<128x128xf32>
      %cst_13 = arith.constant dense<0.000000e+00> : vector<128xf32>
      %35 = vector.multi_reduction <add>, %34, %cst_13 [1] : vector<128x128xf32> to vector<128xf32>
      %36 = vector.shape_cast %35 : vector<128xf32> to vector<128x1xf32>
      %37 = arith.mulf %15, %32 : vector<128x128xf32>
      %cst_14 = arith.constant dense<0.000000e+00> : vector<128xf32>
      %38 = vector.multi_reduction <add>, %37, %cst_14 [1] : vector<128x128xf32> to vector<128xf32>
      %39 = vector.shape_cast %38 : vector<128xf32> to vector<128x1xf32>
      %40 = arith.mulf %13, %32 : vector<128x128xf32>
      %cst_15 = arith.constant dense<0.000000e+00> : vector<128xf32>
      %41 = vector.multi_reduction <add>, %40, %cst_15 [1] : vector<128x128xf32> to vector<128xf32>
      %42 = vector.shape_cast %41 : vector<128xf32> to vector<128x1xf32>
      %c0_16 = arith.constant 0 : index
      %c0_17 = arith.constant 0 : index
      %43 = vector.load %arg17[%c0_16, %c0_17] : memref<128x3xf32, #tpu.memory_space<vmem>>, vector<128x3xf32>
      %44 = tpu.transpose %36, [1, 0] : vector<128x1xf32> -> vector<1x128xf32>
      %cst_18 = arith.constant -1.000000e+30 : f32
      %45 = vector.shape_cast %44 : vector<1x128xf32> to vector<1x128xf32>
      %46 = vector.broadcast %45 : vector<1x128xf32> to vector<128x128xf32>
      %47 = vector.broadcast %cst_18 : f32 to vector<128x128xf32>
      %48 = arith.select %29, %46, %47 : vector<128x128xi1>, vector<128x128xf32>
      %cst_19 = arith.constant dense<0xFF800000> : vector<128xf32>
      %49 = vector.multi_reduction <maximumf>, %48, %cst_19 [1] : vector<128x128xf32> to vector<128xf32>
      %50 = vector.shape_cast %49 : vector<128xf32> to vector<128x1xf32>
      %51 = tpu.transpose %39, [1, 0] : vector<128x1xf32> -> vector<1x128xf32>
      %cst_20 = arith.constant -1.000000e+30 : f32
      %52 = vector.shape_cast %51 : vector<1x128xf32> to vector<1x128xf32>
      %53 = vector.broadcast %52 : vector<1x128xf32> to vector<128x128xf32>
      %54 = vector.broadcast %cst_20 : f32 to vector<128x128xf32>
      %55 = arith.select %29, %53, %54 : vector<128x128xi1>, vector<128x128xf32>
      %cst_21 = arith.constant dense<0xFF800000> : vector<128xf32>
      %56 = vector.multi_reduction <maximumf>, %55, %cst_21 [1] : vector<128x128xf32> to vector<128xf32>
      %57 = vector.shape_cast %56 : vector<128xf32> to vector<128x1xf32>
      %58 = tpu.transpose %42, [1, 0] : vector<128x1xf32> -> vector<1x128xf32>
      %cst_22 = arith.constant -1.000000e+30 : f32
      %59 = vector.shape_cast %58 : vector<1x128xf32> to vector<1x128xf32>
      %60 = vector.broadcast %59 : vector<1x128xf32> to vector<128x128xf32>
      %61 = vector.broadcast %cst_22 : f32 to vector<128x128xf32>
      %62 = arith.select %29, %60, %61 : vector<128x128xi1>, vector<128x128xf32>
      %cst_23 = arith.constant dense<0xFF800000> : vector<128xf32>
      %63 = vector.multi_reduction <maximumf>, %62, %cst_23 [1] : vector<128x128xf32> to vector<128xf32>
      %64 = vector.shape_cast %63 : vector<128xf32> to vector<128x1xf32>
      %65 = tpu.concatenate %50, %57, %64 in 1 : vector<128x1xf32>, vector<128x1xf32>, vector<128x1xf32> -> vector<128x3xf32>
      %66 = arith.maximumf %43, %65 : vector<128x3xf32>
      %67 = arith.subf %43, %66 : vector<128x3xf32>
      %68 = math.exp %67 : vector<128x3xf32>
      %c0_24 = arith.constant 0 : index
      %c0_25 = arith.constant 0 : index
      %69 = vector.load %arg17[%c0_24, %c0_25] : memref<128x3xf32, #tpu.memory_space<vmem>>, vector<128x3xf32>
      tpu.vector_store %arg17[%c0_24, %c0_25], %66 {strides = array<i32>} : memref<128x3xf32, #tpu.memory_space<vmem>>, vector<128x3xf32>,
      %cst_26 = arith.constant dense<0.000000e+00> : vector<128x3xf32>
      %70 = tpu.matmul %31, %66, %cst_26 {dimension_numbers = #tpu.dot_dimension_numbers<[0], [0], [1], [1], [0, 1, 1, 1], [], []>} : vector<128x128xf32>, vector<128x3xf32>, vector<128x3xf32> -> vector<128x3xf32>
      %71 = tpu.concatenate %36, %39, %42 in 1 : vector<128x1xf32>, vector<128x1xf32>, vector<128x1xf32> -> vector<128x3xf32>
      %72 = arith.extui %24 : vector<1x128xi1> to vector<1x128xi32>
      %73 = arith.sitofp %72 : vector<1x128xi32> to vector<1x128xf32>
      %74 = tpu.transpose %73, [1, 0] : vector<1x128xf32> -> vector<128x1xf32>
      %75 = arith.subf %71, %70 : vector<128x3xf32>
      %76 = math.exp %75 : vector<128x3xf32>
      %77 = vector.broadcast %74 : vector<128x1xf32> to vector<128x3xf32>
      %78 = arith.mulf %76, %77 : vector<128x3xf32>
      %79 = vector.extract_strided_slice %78 {offsets = [0, 0], sizes = [128, 1], strides = [1, 1]} : vector<128x3xf32> to vector<128x1xf32>
      %80 = vector.extract_strided_slice %78 {offsets = [0, 1], sizes = [128, 1], strides = [1, 1]} : vector<128x3xf32> to vector<128x1xf32>
      %81 = vector.extract_strided_slice %78 {offsets = [0, 2], sizes = [128, 1], strides = [1, 1]} : vector<128x3xf32> to vector<128x1xf32>
      %c0_27 = arith.constant 0 : index
      %c0_28 = arith.constant 0 : index
      %82 = vector.load %arg8[%c0_27, %c0_28] : memref<1x128xf32, #tpu.memory_space<vmem>>, vector<1x128xf32>
      %83 = tpu.transpose %82, [1, 0] : vector<1x128xf32> -> vector<128x1xf32>
      %cst_29 = arith.constant 1.000000e+00 : f32
      %84 = vector.broadcast %cst_29 : f32 to vector<128x1xf32>
      %85 = arith.subf %84, %83 : vector<128x1xf32>
      %86 = arith.mulf %79, %83 : vector<128x1xf32>
      %87 = vector.broadcast %86 : vector<128x1xf32> to vector<128x128xf32>
      %88 = arith.mulf %33, %87 : vector<128x128xf32>
      %89 = arith.mulf %79, %85 : vector<128x1xf32>
      %90 = vector.broadcast %89 : vector<128x1xf32> to vector<128x128xf32>
      %91 = arith.mulf %33, %90 : vector<128x128xf32>
      %92 = arith.mulf %80, %83 : vector<128x1xf32>
      %93 = vector.broadcast %92 : vector<128x1xf32> to vector<128x128xf32>
      %94 = arith.mulf %13, %93 : vector<128x128xf32>
      %95 = arith.mulf %80, %85 : vector<128x1xf32>
      %96 = vector.broadcast %95 : vector<128x1xf32> to vector<128x128xf32>
      %97 = arith.mulf %13, %96 : vector<128x128xf32>
      %98 = vector.broadcast %81 : vector<128x1xf32> to vector<128x128xf32>
      %99 = arith.mulf %13, %98 : vector<128x128xf32>
      %100 = tpu.concatenate %88, %91, %94, %97, %99 in 1 : vector<128x128xf32>, vector<128x128xf32>, vector<128x128xf32>, vector<128x128xf32>, vector<128x128xf32> -> vector<128x640xf32>
      %101 = arith.truncf %31 : vector<128x128xf32> to vector<128x128xbf16>
      %102 = arith.truncf %100 : vector<128x640xf32> to vector<128x640xbf16>
      %cst_30 = arith.constant dense<0.000000e+00> : vector<128x640xf32>
      %103 = tpu.matmul %101, %102, %cst_30 {dimension_numbers = #tpu.dot_dimension_numbers<[1], [0], [0], [1], [0, 0, 1, 1], [], []>} : vector<128x128xbf16>, vector<128x640xbf16>, vector<128x640xf32> -> vector<128x640xf32>
      %cst_31 = arith.constant dense<0.000000e+00> : vector<128x3xf32>
      %104 = tpu.matmul %31, %78, %cst_31 {dimension_numbers = #tpu.dot_dimension_numbers<[1], [0], [0], [1], [0, 0, 1, 1], [], []>} : vector<128x128xf32>, vector<128x3xf32>, vector<128x3xf32> -> vector<128x3xf32>
      %105 = vector.extract_strided_slice %68 {offsets = [0, 0], sizes = [128, 1], strides = [1, 1]} : vector<128x3xf32> to vector<128x1xf32>
      %106 = vector.extract_strided_slice %68 {offsets = [0, 1], sizes = [128, 1], strides = [1, 1]} : vector<128x3xf32> to vector<128x1xf32>
      %107 = vector.extract_strided_slice %68 {offsets = [0, 2], sizes = [128, 1], strides = [1, 1]} : vector<128x3xf32> to vector<128x1xf32>
      %108 = vector.shape_cast %105 : vector<128x1xf32> to vector<128x1xf32>
      %109 = vector.broadcast %108 : vector<128x1xf32> to vector<128x256xf32>
      %110 = vector.shape_cast %106 : vector<128x1xf32> to vector<128x1xf32>
      %111 = vector.broadcast %110 : vector<128x1xf32> to vector<128x256xf32>
      %112 = vector.shape_cast %107 : vector<128x1xf32> to vector<128x1xf32>
      %113 = vector.broadcast %112 : vector<128x1xf32> to vector<128x128xf32>
      %114 = tpu.concatenate %109, %111, %113 in 1 : vector<128x256xf32>, vector<128x256xf32>, vector<128x128xf32> -> vector<128x640xf32>
      %c0_32 = arith.constant 0 : index
      %c0_33 = arith.constant 0 : index
      %115 = vector.load %arg15[%c0_32, %c0_33] : memref<128x640xf32, #tpu.memory_space<vmem>>, vector<128x640xf32>
      %116 = arith.mulf %114, %115 : vector<128x640xf32>
      %117 = arith.addf %116, %103 : vector<128x640xf32>
      %c0_34 = arith.constant 0 : index
      %c0_35 = arith.constant 0 : index
      %118 = vector.load %arg15[%c0_34, %c0_35] : memref<128x640xf32, #tpu.memory_space<vmem>>, vector<128x640xf32>
      tpu.vector_store %arg15[%c0_34, %c0_35], %117 {strides = array<i32>} : memref<128x640xf32, #tpu.memory_space<vmem>>, vector<128x640xf32>,
      %c0_36 = arith.constant 0 : index
      %c0_37 = arith.constant 0 : index
      %119 = vector.load %arg16[%c0_36, %c0_37] : memref<128x3xf32, #tpu.memory_space<vmem>>, vector<128x3xf32>
      %120 = arith.mulf %68, %119 : vector<128x3xf32>
      %121 = arith.addf %120, %104 : vector<128x3xf32>
      %c0_38 = arith.constant 0 : index
      %c0_39 = arith.constant 0 : index
      %122 = vector.load %arg16[%c0_38, %c0_39] : memref<128x3xf32, #tpu.memory_space<vmem>>, vector<128x3xf32>
      tpu.vector_store %arg16[%c0_38, %c0_39], %121 {strides = array<i32>} : memref<128x3xf32, #tpu.memory_space<vmem>>, vector<128x3xf32>,
    } else {
    }
    %c0_i32_2 = arith.constant 0 : i32
    %8 = arith.cmpi eq, %arg1, %c0_i32_2 : i32
    %9 = arith.extui %8 : i1 to i32
    %c0_i32_3 = arith.constant 0 : i32
    %10 = arith.cmpi ne, %9, %c0_i32_3 : i32
    scf.if %10 {
      %c0 = arith.constant 0 : index
      %c0_4 = arith.constant 0 : index
      %11 = vector.load %arg15[%c0, %c0_4] : memref<128x640xf32, #tpu.memory_space<vmem>>, vector<128x640xf32>
      %c0_5 = arith.constant 0 : index
      %c0_6 = arith.constant 0 : index
      %12 = vector.load %arg16[%c0_5, %c0_6] : memref<128x3xf32, #tpu.memory_space<vmem>>, vector<128x3xf32>
      %cst = arith.constant 1.000000e-30 : f32
      %13 = vector.broadcast %cst : f32 to vector<128x3xf32>
      %14 = arith.maximumf %12, %13 : vector<128x3xf32>
      %15 = tpu.reciprocal %14 {approx = true} : vector<128x3xf32> -> vector<128x3xf32>
      %16 = vector.extract_strided_slice %11 {offsets = [0, 0], sizes = [128, 128], strides = [1, 1]} : vector<128x640xf32> to vector<128x128xf32>
      %c0_7 = arith.constant 0 : index
      %c0_8 = arith.constant 0 : index
      %17 = vector.load %arg9[%c0_7, %c0_8] : memref<128x128xf32, #tpu.memory_space<vmem>>, vector<128x128xf32>
      %cst_9 = arith.constant dense<0.000000e+00> : vector<128x128xf32>
      %18 = tpu.matmul %16, %17, %cst_9 {dimension_numbers = #tpu.dot_dimension_numbers<[1], [0], [0], [1], [0, 0, 1, 1], [], []>} : vector<128x128xf32>, vector<128x128xf32>, vector<128x128xf32> -> vector<128x128xf32>
      %19 = vector.extract_strided_slice %11 {offsets = [0, 128], sizes = [128, 128], strides = [1, 1]} : vector<128x640xf32> to vector<128x128xf32>
      %c0_10 = arith.constant 0 : index
      %c0_11 = arith.constant 0 : index
      %20 = vector.load %arg10[%c0_10, %c0_11] : memref<128x128xf32, #tpu.memory_space<vmem>>, vector<128x128xf32>
      %cst_12 = arith.constant dense<0.000000e+00> : vector<128x128xf32>
      %21 = tpu.matmul %19, %20, %cst_12 {dimension_numbers = #tpu.dot_dimension_numbers<[1], [0], [0], [1], [0, 0, 1, 1], [], []>} : vector<128x128xf32>, vector<128x128xf32>, vector<128x128xf32> -> vector<128x128xf32>
      %22 = arith.addf %18, %21 : vector<128x128xf32>
      %23 = vector.extract_strided_slice %15 {offsets = [0, 0], sizes = [128, 1], strides = [1, 1]} : vector<128x3xf32> to vector<128x1xf32>
      %24 = vector.broadcast %23 : vector<128x1xf32> to vector<128x128xf32>
      %25 = arith.mulf %22, %24 : vector<128x128xf32>
      %26 = vector.extract_strided_slice %11 {offsets = [0, 256], sizes = [128, 128], strides = [1, 1]} : vector<128x640xf32> to vector<128x128xf32>
      %c0_13 = arith.constant 0 : index
      %c0_14 = arith.constant 0 : index
      %27 = vector.load %arg11[%c0_13, %c0_14] : memref<128x128xf32, #tpu.memory_space<vmem>>, vector<128x128xf32>
      %cst_15 = arith.constant dense<0.000000e+00> : vector<128x128xf32>
      %28 = tpu.matmul %26, %27, %cst_15 {dimension_numbers = #tpu.dot_dimension_numbers<[1], [0], [0], [1], [0, 0, 1, 1], [], []>} : vector<128x128xf32>, vector<128x128xf32>, vector<128x128xf32> -> vector<128x128xf32>
      %29 = vector.extract_strided_slice %11 {offsets = [0, 384], sizes = [128, 128], strides = [1, 1]} : vector<128x640xf32> to vector<128x128xf32>
      %c0_16 = arith.constant 0 : index
      %c0_17 = arith.constant 0 : index
      %30 = vector.load %arg12[%c0_16, %c0_17] : memref<128x128xf32, #tpu.memory_space<vmem>>, vector<128x128xf32>
      %cst_18 = arith.constant dense<0.000000e+00> : vector<128x128xf32>
      %31 = tpu.matmul %29, %30, %cst_18 {dimension_numbers = #tpu.dot_dimension_numbers<[1], [0], [0], [1], [0, 0, 1, 1], [], []>} : vector<128x128xf32>, vector<128x128xf32>, vector<128x128xf32> -> vector<128x128xf32>
      %32 = arith.addf %28, %31 : vector<128x128xf32>
      %33 = vector.extract_strided_slice %15 {offsets = [0, 1], sizes = [128, 1], strides = [1, 1]} : vector<128x3xf32> to vector<128x1xf32>
      %34 = vector.broadcast %33 : vector<128x1xf32> to vector<128x128xf32>
      %35 = arith.mulf %32, %34 : vector<128x128xf32>
      %36 = vector.extract_strided_slice %11 {offsets = [0, 512], sizes = [128, 128], strides = [1, 1]} : vector<128x640xf32> to vector<128x128xf32>
      %c0_19 = arith.constant 0 : index
      %c0_20 = arith.constant 0 : index
      %37 = vector.load %arg13[%c0_19, %c0_20] : memref<128x128xf32, #tpu.memory_space<vmem>>, vector<128x128xf32>
      %cst_21 = arith.constant dense<0.000000e+00> : vector<128x128xf32>
      %38 = tpu.matmul %36, %37, %cst_21 {dimension_numbers = #tpu.dot_dimension_numbers<[1], [0], [0], [1], [0, 0, 1, 1], [], []>} : vector<128x128xf32>, vector<128x128xf32>, vector<128x128xf32> -> vector<128x128xf32>
      %39 = vector.extract_strided_slice %15 {offsets = [0, 2], sizes = [128, 1], strides = [1, 1]} : vector<128x3xf32> to vector<128x1xf32>
      %40 = vector.broadcast %39 : vector<128x1xf32> to vector<128x128xf32>
      %41 = arith.mulf %38, %40 : vector<128x128xf32>
      %c0_22 = arith.constant 0 : index
      %c0_23 = arith.constant 0 : index
      %42 = vector.load %arg4[%c0_22, %c0_23] : memref<128x128xf32, #tpu.memory_space<vmem>>, vector<128x128xf32>
      %43 = math.tanh %25 : vector<128x128xf32>
      %44 = arith.addf %42, %43 : vector<128x128xf32>
      %c0_24 = arith.constant 0 : index
      %c0_25 = arith.constant 0 : index
      %45 = vector.load %arg14[%c0_24, %c0_25] : memref<128x128xf32, #tpu.memory_space<vmem>>, vector<128x128xf32>
      tpu.vector_store %arg14[%c0_24, %c0_25], %44 {strides = array<i32>} : memref<128x128xf32, #tpu.memory_space<vmem>>, vector<128x128xf32>,
      %c0_26 = arith.constant 0 : index
      %c0_27 = arith.constant 0 : index
      %46 = vector.load %arg14[%c0_26, %c0_27] : memref<128x128xf32, #tpu.memory_space<vmem>>, vector<128x128xf32>
      %47 = math.tanh %35 : vector<128x128xf32>
      %48 = arith.addf %46, %47 : vector<128x128xf32>
      %c0_28 = arith.constant 0 : index
      %c0_29 = arith.constant 0 : index
      %49 = vector.load %arg14[%c0_28, %c0_29] : memref<128x128xf32, #tpu.memory_space<vmem>>, vector<128x128xf32>
      tpu.vector_store %arg14[%c0_28, %c0_29], %48 {strides = array<i32>} : memref<128x128xf32, #tpu.memory_space<vmem>>, vector<128x128xf32>,
      %c0_30 = arith.constant 0 : index
      %c0_31 = arith.constant 0 : index
      %50 = vector.load %arg14[%c0_30, %c0_31] : memref<128x128xf32, #tpu.memory_space<vmem>>, vector<128x128xf32>
      %51 = math.tanh %41 : vector<128x128xf32>
      %52 = arith.addf %50, %51 : vector<128x128xf32>
      %c0_32 = arith.constant 0 : index
      %c0_33 = arith.constant 0 : index
      %53 = vector.load %arg14[%c0_32, %c0_33] : memref<128x128xf32, #tpu.memory_space<vmem>>, vector<128x128xf32>
      tpu.vector_store %arg14[%c0_32, %c0_33], %52 {strides = array<i32>} : memref<128x128xf32, #tpu.memory_space<vmem>>, vector<128x128xf32>,
    } else {
    }
    return
  }
  func.func @transform_0(%arg0: i32, %arg1: i32, %arg2: memref<1xi32, #tpu.memory_space<smem>>, %arg3: memref<1xi32, #tpu.memory_space<smem>>) -> (i32, i32) {
    %c0_i32 = arith.constant 0 : i32
    %c0_i32_0 = arith.constant 0 : i32
    return %arg0, %c0_i32 : i32, i32
  }
  func.func @transform_1(%arg0: i32, %arg1: i32, %arg2: memref<1xi32, #tpu.memory_space<smem>>, %arg3: memref<1xi32, #tpu.memory_space<smem>>) -> (i32, i32) {
    %0 = arith.index_cast %arg0 : i32 to index
    %1 = memref.load %arg2[%0] : memref<1xi32, #tpu.memory_space<smem>>
    %2 = arith.addi %1, %arg1 : i32
    %c0_i32 = arith.constant 0 : i32
    %3 = arith.minsi %2, %c0_i32 : i32
    %c0_i32_0 = arith.constant 0 : i32
    %c0_i32_1 = arith.constant 0 : i32
    return %3, %c0_i32_0 : i32, i32
  }
  func.func @transform_2(%arg0: i32, %arg1: i32, %arg2: memref<1xi32, #tpu.memory_space<smem>>, %arg3: memref<1xi32, #tpu.memory_space<smem>>) -> (i32, i32) {
    %0 = arith.index_cast %arg0 : i32 to index
    %1 = memref.load %arg2[%0] : memref<1xi32, #tpu.memory_space<smem>>
    %2 = arith.addi %1, %arg1 : i32
    %c0_i32 = arith.constant 0 : i32
    %3 = arith.minsi %2, %c0_i32 : i32
    %c0_i32_0 = arith.constant 0 : i32
    %c0_i32_1 = arith.constant 0 : i32
    return %3, %c0_i32_0 : i32, i32
  }
  func.func @transform_3(%arg0: i32, %arg1: i32, %arg2: memref<1xi32, #tpu.memory_space<smem>>, %arg3: memref<1xi32, #tpu.memory_space<smem>>) -> (i32, i32) {
    %0 = arith.index_cast %arg0 : i32 to index
    %1 = memref.load %arg2[%0] : memref<1xi32, #tpu.memory_space<smem>>
    %2 = arith.addi %1, %arg1 : i32
    %c0_i32 = arith.constant 0 : i32
    %3 = arith.minsi %2, %c0_i32 : i32
    %c0_i32_0 = arith.constant 0 : i32
    %c0_i32_1 = arith.constant 0 : i32
    return %c0_i32_0, %3 : i32, i32
  }
  func.func @transform_4(%arg0: i32, %arg1: i32, %arg2: memref<1xi32, #tpu.memory_space<smem>>, %arg3: memref<1xi32, #tpu.memory_space<smem>>) -> (i32, i32) {
    %0 = arith.index_cast %arg0 : i32 to index
    %1 = memref.load %arg2[%0] : memref<1xi32, #tpu.memory_space<smem>>
    %2 = arith.addi %1, %arg1 : i32
    %c0_i32 = arith.constant 0 : i32
    %3 = arith.minsi %2, %c0_i32 : i32
    %c0_i32_0 = arith.constant 0 : i32
    %c0_i32_1 = arith.constant 0 : i32
    return %c0_i32_0, %3 : i32, i32
  }
  func.func @transform_5(%arg0: i32, %arg1: i32, %arg2: memref<1xi32, #tpu.memory_space<smem>>, %arg3: memref<1xi32, #tpu.memory_space<smem>>) -> (i32, i32) {
    %c0_i32 = arith.constant 0 : i32
    %c0_i32_0 = arith.constant 0 : i32
    %c0_i32_1 = arith.constant 0 : i32
    return %c0_i32, %c0_i32_0 : i32, i32
  }
  func.func @transform_6(%arg0: i32, %arg1: i32, %arg2: memref<1xi32, #tpu.memory_space<smem>>, %arg3: memref<1xi32, #tpu.memory_space<smem>>) -> (i32, i32) {
    %c0_i32 = arith.constant 0 : i32
    %c0_i32_0 = arith.constant 0 : i32
    %c0_i32_1 = arith.constant 0 : i32
    return %c0_i32, %c0_i32_0 : i32, i32
  }
  func.func @transform_7(%arg0: i32, %arg1: i32, %arg2: memref<1xi32, #tpu.memory_space<smem>>, %arg3: memref<1xi32, #tpu.memory_space<smem>>) -> (i32, i32) {
    %c0_i32 = arith.constant 0 : i32
    %c0_i32_0 = arith.constant 0 : i32
    %c0_i32_1 = arith.constant 0 : i32
    return %c0_i32, %c0_i32_0 : i32, i32
  }
  func.func @transform_8(%arg0: i32, %arg1: i32, %arg2: memref<1xi32, #tpu.memory_space<smem>>, %arg3: memref<1xi32, #tpu.memory_space<smem>>) -> (i32, i32) {
    %c0_i32 = arith.constant 0 : i32
    %c0_i32_0 = arith.constant 0 : i32
    %c0_i32_1 = arith.constant 0 : i32
    return %c0_i32, %c0_i32_0 : i32, i32
  }
  func.func @transform_9(%arg0: i32, %arg1: i32, %arg2: memref<1xi32, #tpu.memory_space<smem>>, %arg3: memref<1xi32, #tpu.memory_space<smem>>) -> (i32, i32) {
    %c0_i32 = arith.constant 0 : i32
    %c0_i32_0 = arith.constant 0 : i32
    %c0_i32_1 = arith.constant 0 : i32
    return %c0_i32, %c0_i32_0 : i32, i32
  }
  func.func @transform_10(%arg0: i32, %arg1: i32, %arg2: memref<1xi32, #tpu.memory_space<smem>>, %arg3: memref<1xi32, #tpu.memory_space<smem>>) -> (i32, i32) {
    %c0_i32 = arith.constant 0 : i32
    %c0_i32_0 = arith.constant 0 : i32
    return %arg0, %c0_i32 : i32, i32
  }
}

</mosaic_0001>

<bundles_post_ra>
// kernel: tpu_custom_call.1
= control target key start
LH: loop header
LB: loop body
LE: loop exit
PB: predicated region body
PF: predicated region fallthrough
CT: control target
= control target key end

     0   :  { %19 = vsyncpa [#allocation9], 0  ;;  %s9219_s0 = inlined_call_operand.<no memory space> [shape: s32[1], index: 0, kind: input, shape index: {}]   ;;  %s9220_s1 = inlined_call_operand.<no memory space> [shape: s32[1], index: 1, kind: input, shape index: {}]   ;;  %s9221_s2 = inlined_call_operand.hbm [shape: f32[128,128], index: 2, kind: input, shape index: {}]   ;;  %s9222_s3 = inlined_call_operand.hbm [shape: bf16[128,128], index: 3, kind: input, shape index: {}]   ;;  %s9223_s4 = inlined_call_operand.hbm [shape: bf16[128,128], index: 4, kind: input, shape index: {}]   ;;  %s9224_s5 = inlined_call_operand.vmem [shape: s32[1,128], index: 5, kind: input, shape index: {}]   ;;  %s9225_s6 = inlined_call_operand.vmem [shape: f32[1,128], index: 6, kind: input, shape index: {}]   ;;  %s9226_s7 = inlined_call_operand.hbm [shape: f32[128,128], index: 7, kind: input, shape index: {}]   ;;  %s9227_s8 = inlined_call_operand.hbm [shape: f32[128,128], index: 8, kind: input, shape index: {}]   ;;  %s9228_s9 = inlined_call_operand.hbm [shape: f32[128,128], index: 9, kind: input, shape index: {}]   ;;  %s9229_s10 = inlined_call_operand.hbm [shape: f32[128,128], index: 10, kind: input, shape index: {}]   ;;  %s9230_s11 = inlined_call_operand.hbm [shape: f32[128,128], index: 11, kind: input, shape index: {}]   ;;  %s9231_s12 = inlined_call_operand.hbm [shape: f32[128,128], index: 12, kind: output, shape index: {}]  }
   0x1   :  { %20 = vsyncpa [#allocation12], 0 }
   0x2   :  { %21 = vsyncpa [#allocation15], 0 }
   0x3   :  { %22 = vsyncpa [#allocation18], 0 }
   0x4   :  { %23 = vsyncpa [#allocation21], 0  ;;  %p41_p0 = scmp.lt.s32.totalorder %s9219_s0, 0 }
   0x5   :  { %24 = vsyncpa [#allocation10], 0  ;;  %s6294_s23 = smov [#allocation11]   ;;  %s6100_s22 = scalar_lea.hbm %s9222_s3, 1024 }
   0x6   :  { %s49_s24 = sshll.u32 %s6294_s23, 4  ;;  %s50_s24 = int_to_ptr.vmem [resolvable:$true] %s49_s24 }
   0x7   :  { %s6394_s29 = scalar_select %p41_p0, %s9219_s0, 0 }
   0x9   :  { %s4943_s30 = sshll.u32 %s6394_s29, 10 }
   0xa   :  { %s48_s15 = scalar_lea.hbm %s9222_s3, %s4943_s30  ;;  %s6403_s18 = scalar_lea.hbm %s9223_s4, %s4943_s30 }
   0xb   :  { %s6098_s19 = scalar_lea.hbm %s48_s15, 1024  ;;  %p6101_p2 = scmp.lt.s32.totalorder %s48_s15, %s9222_s3 }
   0xc   :  { %p6099_p1 = scmp.ne.s32.totalorder %s48_s15, %s6098_s19  ;;  %p6102_p3 = scmp.lt.s32.totalorder %s6100_s22, %s6098_s19 }
   0xe   :  { %p6103_p4 = por %p6102_p3, %p6101_p2 }
  0x10   :  { %p6104_p5 = pnand %p6103_p4, %p6099_p1 }
  0x12   :  { %6107 = shalt.err (!%p6104_p5)
}
  0x13   :  { %s6108_s26 = scalar_lea.vmem %s50_s24, 1024  ;;  %p6113_p7 = scmp.lt.s32.totalorder %s50_s24, %s50_s24 }
  0x14   :  { %p6109_p6 = scmp.ne.s32.totalorder %s50_s24, %s6108_s26  ;;  %p6114_p8 = scmp.lt.s32.totalorder %s6108_s26, %s6108_s26 }
  0x16   :  { %p6115_p9 = por %p6114_p8, %p6113_p7 }
  0x18   :  { %p6116_p10 = pnand %p6115_p9, %p6109_p6 }
  0x1a   :  { %6119 = shalt.err (!%p6116_p10)
}
  0x1b   :  { %s6295_s27 = smov 64   ;;  %s6296_s28 = smov 4  }
  0x1c   :  { %55 = dma.hbm_to_vmem [thread:$0]  %s48_s15, 1024, %s50_s24, [#allocation12], %s6295_s27, %s6295_s27, %s6296_s28  }
  0x1d   :  { %s6297_s30 = smov [#allocation14]   ;;  %s6298_s3 = smov [#allocation17]  }
  0x1e   :  { %s106_s13 = sshll.u32 %s6297_s30, 4  ;;  %s130_s14 = sshll.u32 %s6298_s3, 4  ;;  %s107_s13 = int_to_ptr.vmem [resolvable:$true] %s106_s13  ;;  %s131_s14 = int_to_ptr.vmem [resolvable:$true] %s130_s14 }
  0x1f   :  { %s6128_s16 = scalar_lea.vmem %s107_s13, 2048  ;;  %p6133_p12 = scmp.lt.s32.totalorder %s107_s13, %s107_s13 }
  0x20   :  { %p6129_p11 = scmp.ne.s32.totalorder %s107_s13, %s6128_s16  ;;  %p6134_p13 = scmp.lt.s32.totalorder %s6128_s16, %s6128_s16 }
  0x22   :  { %p6135_p1 = por %p6134_p13, %p6133_p12 }
  0x24   :  { %p6136_p2 = pnand %p6135_p1, %p6129_p11 }
  0x26   :  { %6139 = shalt.err (!%p6136_p2)
}
  0x27   :  { %s6299_s17 = smov 128   ;;  %s6300_s19 = smov 8  }
  0x28   :  { %112 = dma.hbm_to_vmem [thread:$0]  %s9226_s7, 2048, %s107_s13, [#allocation15], %s6299_s17, %s6299_s17, %s6300_s19  }
  0x29   :  { %s6148_s24 = scalar_lea.vmem %s131_s14, 2048  ;;  %p6153_p4 = scmp.lt.s32.totalorder %s131_s14, %s131_s14 }
  0x2a   :  { %p6149_p3 = scmp.ne.s32.totalorder %s131_s14, %s6148_s24  ;;  %p6154_p5 = scmp.lt.s32.totalorder %s6148_s24, %s6148_s24 }
  0x2c   :  { %p6155_p6 = por %p6154_p5, %p6153_p4 }
  0x2e   :  { %p6156_p7 = pnand %p6155_p6, %p6149_p3 }
  0x30   :  { %6159 = shalt.err (!%p6156_p7)
}
  0x31   :  { %136 = dma.hbm_to_vmem [thread:$0]  %s9228_s9, 2048, %s131_s14, [#allocation18], %s6299_s17, %s6299_s17, %s6300_s19  }
  0x32   :  { %s6301_s23 = smov [#allocation8]   ;;  %s6302_s26 = smov [#allocation13]  }
  0x33   :  { %s30_s25 = sshll.u32 %s6301_s23, 4  ;;  %s68_s7 = sshll.u32 %s6302_s26, 4  ;;  %s31_s25 = int_to_ptr.vmem [resolvable:$true] %s30_s25  ;;  %s69_s7 = int_to_ptr.vmem [resolvable:$true] %s68_s7 }
  0x34   :  { %s6168_s30 = scalar_lea.vmem %s31_s25, 2048  ;;  %p6173_p9 = scmp.lt.s32.totalorder %s31_s25, %s31_s25 }
  0x35   :  { %p6169_p8 = scmp.ne.s32.totalorder %s31_s25, %s6168_s30  ;;  %p6174_p10 = scmp.lt.s32.totalorder %s6168_s30, %s6168_s30 }
  0x37   :  { %p6175_p11 = por %p6174_p10, %p6173_p9 }
  0x39   :  { %p6176_p12 = pnand %p6175_p11, %p6169_p8 }
  0x3b   :  { %6179 = shalt.err (!%p6176_p12)
}
  0x3c   :  { %36 = dma.hbm_to_vmem [thread:$0]  %s9221_s2, 2048, %s31_s25, [#allocation9], %s6299_s17, %s6299_s17, %s6300_s19  }
  0x3d   :  { %s6180_s9 = scalar_lea.hbm %s6403_s18, 1024  ;;  %s6182_s20 = scalar_lea.hbm %s9223_s4, 1024 }
  0x3e   :  { %p6181_p13 = scmp.ne.s32.totalorder %s6403_s18, %s6180_s9  ;;  %p6183_p1 = scmp.lt.s32.totalorder %s6403_s18, %s9223_s4 }
  0x3f   :  { %p6184_p2 = scmp.lt.s32.totalorder %s6182_s20, %s6180_s9 }
  0x41   :  { %p6185_p3 = por %p6184_p2, %p6183_p1 }
  0x43   :  { %p6186_p4 = pnand %p6185_p3, %p6181_p13 }
  0x45   :  { %6189 = shalt.err (!%p6186_p4)
}
  0x46   :  { %s6190_s15 = scalar_lea.vmem %s69_s7, 1024  ;;  %p6195_p6 = scmp.lt.s32.totalorder %s69_s7, %s69_s7 }
  0x47   :  { %p6191_p5 = scmp.ne.s32.totalorder %s69_s7, %s6190_s15  ;;  %p6196_p7 = scmp.lt.s32.totalorder %s6190_s15, %s6190_s15 }
  0x49   :  { %p6197_p8 = por %p6196_p7, %p6195_p6 }
  0x4b   :  { %p6198_p9 = pnand %p6197_p8, %p6191_p5 }
  0x4d   :  { %6201 = shalt.err (!%p6198_p9)
}
  0x4e   :  { %74 = dma.hbm_to_vmem [thread:$0]  %s6403_s18, 1024, %s69_s7, [#allocation12], %s6295_s27, %s6295_s27, %s6296_s28  }
  0x4f   :  { %s6303_s2 = smov [#allocation16]   ;;  %s6304_s4 = smov [#allocation19]  }
  0x50   :  { %s118_s22 = sshll.u32 %s6303_s2, 4  ;;  %s142_s23 = sshll.u32 %s6304_s4, 4  ;;  %s119_s22 = int_to_ptr.vmem [resolvable:$true] %s118_s22  ;;  %s143_s23 = int_to_ptr.vmem [resolvable:$true] %s142_s23 }
  0x51   :  { %s6210_s25 = scalar_lea.vmem %s119_s22, 2048  ;;  %p6215_p11 = scmp.lt.s32.totalorder %s119_s22, %s119_s22 }
  0x52   :  { %p6211_p10 = scmp.ne.s32.totalorder %s119_s22, %s6210_s25  ;;  %p6216_p12 = scmp.lt.s32.totalorder %s6210_s25, %s6210_s25 }
  0x54   :  { %p6217_p13 = por %p6216_p12, %p6215_p11 }
  0x56   :  { %p6218_p1 = pnand %p6217_p13, %p6211_p10 }
  0x58   :  { %6221 = shalt.err (!%p6218_p1)
}
  0x59   :  { %124 = dma.hbm_to_vmem [thread:$0]  %s9227_s8, 2048, %s119_s22, [#allocation15], %s6299_s17, %s6299_s17, %s6300_s19  }
  0x5a   :  { %s6230_s18 = scalar_lea.vmem %s143_s23, 2048  ;;  %p6235_p3 = scmp.lt.s32.totalorder %s143_s23, %s143_s23 }
  0x5b   :  { %p6231_p2 = scmp.ne.s32.totalorder %s143_s23, %s6230_s18  ;;  %p6236_p4 = scmp.lt.s32.totalorder %s6230_s18, %s6230_s18 }
  0x5d   :  { %p6237_p5 = por %p6236_p4, %p6235_p3 }
  0x5f   :  { %p6238_p6 = pnand %p6237_p5, %p6231_p2 }
  0x61   :  { %6241 = shalt.err (!%p6238_p6)
}
  0x62   :  { %148 = dma.hbm_to_vmem [thread:$0]  %s9229_s10, 2048, %s143_s23, [#allocation18], %s6299_s17, %s6299_s17, %s6300_s19  }
  0x63   :  { %s6305_s7 = smov [#allocation20]  }
  0x64   :  { %s154_s13 = sshll.u32 %s6305_s7, 4  ;;  %s155_s13 = int_to_ptr.vmem [resolvable:$true] %s154_s13 }
  0x65   :  { %s6250_s3 = scalar_lea.vmem %s155_s13, 2048  ;;  %p6255_p8 = scmp.lt.s32.totalorder %s155_s13, %s155_s13 }
  0x66   :  { %p6251_p7 = scmp.ne.s32.totalorder %s155_s13, %s6250_s3  ;;  %p6256_p9 = scmp.lt.s32.totalorder %s6250_s3, %s6250_s3 }
  0x68   :  { %p6257_p10 = por %p6256_p9, %p6255_p8 }
  0x6a   :  { %p6258_p11 = pnand %p6257_p10, %p6251_p7 }
  0x6c   :  { %6261 = shalt.err (!%p6258_p11)
}
  0x6d   :  { %160 = dma.hbm_to_vmem [thread:$0]  %s9230_s11, 2048, %s155_s13, [#allocation21], %s6299_s17, %s6299_s17, %s6300_s19  }
  0x6e   :  { %6282 = dma.done.wait [#allocation9], 2048  }
  0x6f   :  { %6283 = vsyncadd [#allocation9], 4294965248 }
  0x70   :  { %6284 = dma.done.wait [#allocation12], 2048  }
  0x71   :  { %6285 = vsyncadd [#allocation12], 4294965248 }
  0x72   :  { %6286 = dma.done.wait [#allocation15], 4096  }
  0x73   :  { %6287 = vsyncadd [#allocation15], 4294963200 }
  0x74   :  { %6288 = dma.done.wait [#allocation18], 4096  }
  0x75   :  { %6289 = vsyncadd [#allocation18], 4294963200 }
  0x76   :  { %6290 = dma.done.wait [#allocation21], 2048  }
  0x77   :  { %6291 = vsyncadd [#allocation21], 4294965248  ;;  %s9951_s29 = smov (!%p41_p0, %s6394_s29), 0  ;;  %vm9232_vm0 = vcmask 23552   ;;  %v6306_v0 = vmov 0.0   ;;  %p4861_p0 = scmp.le.s32.totalorder %s9220_s1, 0 }
  0x78   :  { %236 = vst [vmem:[#allocation2 + $0xc8] sm:$0xff] %v6306_v0  ;;  %237 = vst [vmem:[#allocation2 + $0x8] sm:$0xff] %v6306_v0  ;;  %s215_s16 = scalar_lea.vmem %s9224_s5, %s9951_s29  ;;  %s226_s24 = scalar_lea.vmem %s9225_s6, %s9951_s29  ;;  %v6307_v1 = vmov -1e+30  }
  0x79   :  { %238 = vst [vmem:[#allocation2 + $0x40] sm:$0xff] %v6306_v0  ;;  %239 = vst [vmem:[#allocation2 + $0x28] sm:$0xff] %v6306_v0 }
  0x7a   :  { %240 = vst [vmem:[#allocation2 + $0xe8] sm:$0xff] %v6306_v0  ;;  %241 = vst [vmem:[#allocation2 + $0xf0] sm:$0xff] %v6306_v0 }
  0x7b   :  { %242 = vst [vmem:[#allocation2 + $0x70] sm:$0xff] %v6306_v0  ;;  %243 = vst [vmem:[#allocation2 + $0x120] sm:$0xff] %v6306_v0 }
  0x7c   :  { %244 = vst [vmem:[#allocation2 + $0xd8] sm:$0xff] %v6306_v0  ;;  %245 = vst [vmem:[#allocation2 + $0x148] sm:$0xff] %v6306_v0 }
  0x7d   :  { %246 = vst [vmem:[#allocation2 + $0x158] sm:$0xff] %v6306_v0  ;;  %247 = vst [vmem:[#allocation2 + $0x108] sm:$0xff] %v6306_v0 }
  0x7e   :  { %248 = vst [vmem:[#allocation2 + $0x220] sm:$0xff] %v6306_v0  ;;  %249 = vst [vmem:[#allocation2 + $0xc0] sm:$0xff] %v6306_v0 }
  0x7f   :  { %250 = vst [vmem:[#allocation2 + $0x140] sm:$0xff] %v6306_v0  ;;  %251 = vst [vmem:[#allocation2 + $0x200] sm:$0xff] %v6306_v0 }
  0x80   :  { %252 = vst [vmem:[#allocation2 + $0x80] sm:$0xff] %v6306_v0  ;;  %253 = vst [vmem:[#allocation2 + $0x30] sm:$0xff] %v6306_v0 }
  0x81   :  { %254 = vst [vmem:[#allocation2 + $0x10] sm:$0xff] %v6306_v0  ;;  %255 = vst [vmem:[#allocation2 + $0x160] sm:$0xff] %v6306_v0 }
  0x82   :  { %256 = vst [vmem:[#allocation2 + $0x1d8] sm:$0xff] %v6306_v0  ;;  %257 = vst [vmem:[#allocation2 + $0x1a0] sm:$0xff] %v6306_v0 }
  0x83   :  { %258 = vst [vmem:[#allocation2 + $0x248] sm:$0xff] %v6306_v0  ;;  %259 = vst [vmem:[#allocation2 + $0x218] sm:$0xff] %v6306_v0 }
  0x84   :  { %260 = vst [vmem:[#allocation2 + $0x190] sm:$0xff] %v6306_v0  ;;  %261 = vst [vmem:[#allocation2 + $0x48] sm:$0xff] %v6306_v0 }
  0x85   :  { %262 = vst [vmem:[#allocation2 + $0x68] sm:$0xff] %v6306_v0  ;;  %263 = vst [vmem:[#allocation2 + $0x238] sm:$0xff] %v6306_v0 }
  0x86   :  { %264 = vst [vmem:[#allocation2 + $0x188] sm:$0xff] %v6306_v0  ;;  %265 = vst [vmem:[#allocation2 + $0x250] sm:$0xff] %v6306_v0 }
  0x87   :  { %266 = vst [vmem:[#allocation2 + $0xb8] sm:$0xff] %v6306_v0  ;;  %267 = vst [vmem:[#allocation2 + $0x268] sm:$0xff] %v6306_v0 }
  0x88   :  { %268 = vst [vmem:[#allocation2 + $0xf8] sm:$0xff] %v6306_v0  ;;  %269 = vst [vmem:[#allocation2 + $0x98] sm:$0xff] %v6306_v0 }
  0x89   :  { %270 = vst [vmem:[#allocation2 + $0xe0] sm:$0xff] %v6306_v0  ;;  %271 = vst [vmem:[#allocation2 + $0x198] sm:$0xff] %v6306_v0 }
  0x8a   :  { %272 = vst [vmem:[#allocation2 + $0x1d0] sm:$0xff] %v6306_v0  ;;  %273 = vst [vmem:[#allocation2 + $0x1e0] sm:$0xff] %v6306_v0 }
  0x8b   :  { %274 = vst [vmem:[#allocation2 + $0x1a8] sm:$0xff] %v6306_v0  ;;  %275 = vst [vmem:[#allocation2 + $0x228] sm:$0xff] %v6306_v0 }
  0x8c   :  { %276 = vst [vmem:[#allocation2] sm:$0xff] %v6306_v0  ;;  %277 = vst [vmem:[#allocation2 + $0x1b0] sm:$0xff] %v6306_v0 }
  0x8d   :  { %278 = vst [vmem:[#allocation2 + $0x90] sm:$0xff] %v6306_v0  ;;  %279 = vst [vmem:[#allocation2 + $0x270] sm:$0xff] %v6306_v0 }
  0x8e   :  { %280 = vst [vmem:[#allocation2 + $0x1e8] sm:$0xff] %v6306_v0  ;;  %281 = vst [vmem:[#allocation2 + $0x38] sm:$0xff] %v6306_v0 }
  0x8f   :  { %282 = vst [vmem:[#allocation2 + $0x1c8] sm:$0xff] %v6306_v0  ;;  %283 = vst [vmem:[#allocation2 + $0x18] sm:$0xff] %v6306_v0 }
  0x90   :  { %284 = vst [vmem:[#allocation2 + $0x78] sm:$0xff] %v6306_v0  ;;  %285 = vst [vmem:[#allocation2 + $0x1f0] sm:$0xff] %v6306_v0 }
  0x91   :  { %286 = vst [vmem:[#allocation2 + $0xa0] sm:$0xff] %v6306_v0  ;;  %287 = vst [vmem:[#allocation2 + $0x1f8] sm:$0xff] %v6306_v0 }
  0x92   :  { %288 = vst [vmem:[#allocation2 + $0x58] sm:$0xff] %v6306_v0  ;;  %289 = vst [vmem:[#allocation2 + $0x258] sm:$0xff] %v6306_v0 }
  0x93   :  { %290 = vst [vmem:[#allocation2 + $0x260] sm:$0xff] %v6306_v0  ;;  %291 = vst [vmem:[#allocation2 + $0x100] sm:$0xff] %v6306_v0 }
  0x94   :  { %292 = vst [vmem:[#allocation2 + $0x1b8] sm:$0xff] %v6306_v0  ;;  %293 = vst [vmem:[#allocation2 + $0x168] sm:$0xff] %v6306_v0 }
  0x95   :  { %294 = vst [vmem:[#allocation2 + $0xd0] sm:$0xff] %v6306_v0  ;;  %295 = vst [vmem:[#allocation2 + $0x278] sm:$0xff] %v6306_v0 }
  0x96   :  { %296 = vst [vmem:[#allocation2 + $0x210] sm:$0xff] %v6306_v0  ;;  %297 = vst [vmem:[#allocation2 + $0x180] sm:$0xff] %v6306_v0 }
  0x97   :  { %298 = vst [vmem:[#allocation2 + $0x130] sm:$0xff] %v6306_v0  ;;  %299 = vst [vmem:[#allocation2 + $0x110] sm:$0xff] %v6306_v0 }
  0x98   :  { %300 = vst [vmem:[#allocation2 + $0xa8] sm:$0xff] %v6306_v0  ;;  %301 = vst [vmem:[#allocation2 + $0x60] sm:$0xff] %v6306_v0 }
  0x99   :  { %302 = vst [vmem:[#allocation2 + $0x138] sm:$0xff] %v6306_v0  ;;  %303 = vst [vmem:[#allocation2 + $0x208] sm:$0xff] %v6306_v0 }
  0x9a   :  { %304 = vst [vmem:[#allocation2 + $0x240] sm:$0xff] %v6306_v0  ;;  %305 = vst [vmem:[#allocation2 + $0x88] sm:$0xff] %v6306_v0 }
  0x9b   :  { %306 = vst [vmem:[#allocation2 + $0x118] sm:$0xff] %v6306_v0  ;;  %307 = vst [vmem:[#allocation2 + $0x128] sm:$0xff] %v6306_v0 }
  0x9c   :  { %308 = vst [vmem:[#allocation2 + $0x1c0] sm:$0xff] %v6306_v0  ;;  %309 = vst [vmem:[#allocation2 + $0x230] sm:$0xff] %v6306_v0 }
  0x9d   :  { %310 = vst [vmem:[#allocation2 + $0x170] sm:$0xff] %v6306_v0  ;;  %311 = vst [vmem:[#allocation2 + $0x150] sm:$0xff] %v6306_v0 }
  0x9e   :  { %312 = vst [vmem:[#allocation2 + $0x20] sm:$0xff] %v6306_v0  ;;  %313 = vst [vmem:[#allocation2 + $0x178] sm:$0xff] %v6306_v0 }
  0x9f   :  { %314 = vst [vmem:[#allocation2 + $0x50] sm:$0xff] %v6306_v0  ;;  %315 = vst [vmem:[#allocation2 + $0xb0] sm:$0xff] %v6306_v0 }
  0xa0   :  { %317 = vst.msk [vmem:[#allocation3] sm:$0xff] %vm9232_vm0, %v6306_v0  ;;  %318 = vst.msk [vmem:[#allocation3 + $0x8] sm:$0xff] %vm9232_vm0, %v6306_v0 }
  0xa1   :  { %319 = vst.msk [vmem:[#allocation3 + $0x10] sm:$0xff] %vm9232_vm0, %v6306_v0  ;;  %320 = vst.msk [vmem:[#allocation3 + $0x18] sm:$0xff] %vm9232_vm0, %v6306_v0 }
  0xa2   :  { %321 = vst.msk [vmem:[#allocation3 + $0x20] sm:$0xff] %vm9232_vm0, %v6306_v0  ;;  %322 = vst.msk [vmem:[#allocation3 + $0x28] sm:$0xff] %vm9232_vm0, %v6306_v0 }
  0xa3   :  { %323 = vst.msk [vmem:[#allocation3 + $0x30] sm:$0xff] %vm9232_vm0, %v6306_v0  ;;  %324 = vst.msk [vmem:[#allocation3 + $0x38] sm:$0xff] %vm9232_vm0, %v6306_v0 }
  0xa4   :  { %325 = vst.msk [vmem:[#allocation3 + $0x40] sm:$0xff] %vm9232_vm0, %v6306_v0  ;;  %326 = vst.msk [vmem:[#allocation3 + $0x48] sm:$0xff] %vm9232_vm0, %v6306_v0 }
  0xa5   :  { %327 = vst.msk [vmem:[#allocation3 + $0x50] sm:$0xff] %vm9232_vm0, %v6306_v0  ;;  %328 = vst.msk [vmem:[#allocation3 + $0x58] sm:$0xff] %vm9232_vm0, %v6306_v0 }
  0xa6   :  { %329 = vst.msk [vmem:[#allocation3 + $0x60] sm:$0xff] %vm9232_vm0, %v6306_v0  ;;  %330 = vst.msk [vmem:[#allocation3 + $0x68] sm:$0xff] %vm9232_vm0, %v6306_v0 }
  0xa7   :  { %331 = vst.msk [vmem:[#allocation3 + $0x70] sm:$0xff] %vm9232_vm0, %v6306_v0  ;;  %332 = vst.msk [vmem:[#allocation3 + $0x78] sm:$0xff] %vm9232_vm0, %v6306_v0 }
  0xa8   :  { %333 = vst.msk [vmem:[#allocation4] sm:$0xff] %vm9232_vm0, %v6307_v1  ;;  %334 = vst.msk [vmem:[#allocation4 + $0x8] sm:$0xff] %vm9232_vm0, %v6307_v1 }
  0xa9   :  { %335 = vst.msk [vmem:[#allocation4 + $0x10] sm:$0xff] %vm9232_vm0, %v6307_v1  ;;  %336 = vst.msk [vmem:[#allocation4 + $0x18] sm:$0xff] %vm9232_vm0, %v6307_v1 }
  0xaa   :  { %337 = vst.msk [vmem:[#allocation4 + $0x20] sm:$0xff] %vm9232_vm0, %v6307_v1  ;;  %338 = vst.msk [vmem:[#allocation4 + $0x28] sm:$0xff] %vm9232_vm0, %v6307_v1 }
  0xab   :  { %339 = vst.msk [vmem:[#allocation4 + $0x30] sm:$0xff] %vm9232_vm0, %v6307_v1  ;;  %340 = vst.msk [vmem:[#allocation4 + $0x38] sm:$0xff] %vm9232_vm0, %v6307_v1  ;;  %353 = sbr.rel (%p4861_p0) target bundleno = 2136 (0x858), region = 81 }
  0xac   :  { %341 = vst.msk [vmem:[#allocation4 + $0x40] sm:$0xff] %vm9232_vm0, %v6307_v1  ;;  %342 = vst.msk [vmem:[#allocation4 + $0x48] sm:$0xff] %vm9232_vm0, %v6307_v1 }
  0xad   :  { %343 = vst.msk [vmem:[#allocation4 + $0x50] sm:$0xff] %vm9232_vm0, %v6307_v1  ;;  %344 = vst.msk [vmem:[#allocation4 + $0x58] sm:$0xff] %vm9232_vm0, %v6307_v1 }
  0xae   :  { %345 = vst.msk [vmem:[#allocation4 + $0x60] sm:$0xff] %vm9232_vm0, %v6307_v1  ;;  %346 = vst.msk [vmem:[#allocation4 + $0x68] sm:$0xff] %vm9232_vm0, %v6307_v1 }
  0xaf   :  { %347 = vst.msk [vmem:[#allocation4 + $0x70] sm:$0xff] %vm9232_vm0, %v6307_v1  ;;  %348 = vst.msk [vmem:[#allocation4 + $0x78] sm:$0xff] %vm9232_vm0, %v6307_v1 }
  0xb0   :  { %v434_v2 = vld [vmem:[%s215_s16] sm:$0x1]  ;;  %v441_v3 = vlaneseq  ;;  %v369_v4 = vld [vmem:[#allocation8 + $0x78] sm:$0xff]  ;;  %v368_v5 = vld [vmem:[#allocation8 + $0x70] sm:$0xff]  ;;  %v9476_v6 = vmov 0  ;;  %v9241_v9 = vmov 0  }
  0xb1   :  { %vm438_vm1 = vcmp.ge.s32.totalorder %v434_v2, 0  ;;  %vm439_vm2 = vcmp.lt.s32.totalorder %v434_v2, 128  ;;  %5295 = vmatprep.subr.mxu0 %v369_v4  ;;  %v367_v8 = vld [vmem:[#allocation8 + $0x68] sm:$0xff]  ;;  %v366_v13 = vld [vmem:[#allocation8 + $0x60] sm:$0xff]  ;;  %v365_v17 = vld [vmem:[#allocation8 + $0x58] sm:$0xff]  ;;  %v9480_v20 = vmov 0 }
  0xb2   :  { %vm6609_vm3 = vmand %vm438_vm1, %vm439_vm2  ;;  %v6613_v7 = vshrl.u32 %v441_v3, 7  ;;  %5296 = vmatpush3.msra.mxu0 %v369_v4  ;;  %v364_v19 = vld [vmem:[#allocation8 + $0x50] sm:$0xff]  ;;  %v9240_v21 = vmov 0.0   ;;  %v9483_v23 = vmov 0  ;;  %v363_v25 = vld [vmem:[#allocation8 + $0x48] sm:$0xff]  ;;  %v9486_v28 = vmov 0 }
  0xb3   :  { %v9477_v6 = vsel %vm6609_vm3, 4294967295, %v9476_v6  ;;  %v478_v10 = vsel %vm6609_vm3, 1, %v9241_v9  ;;  %5297 = vmatprep.subr.mxu0 %v368_v5  ;;  %v362_v27 = vld [vmem:[#allocation8 + $0x40] sm:$0xff]  ;;  %v361_v30 = vld [vmem:[#allocation8 + $0x38] sm:$0xff]  ;;  %v360_v32 = vld [vmem:[#allocation8 + $0x30] sm:$0xff]  ;;  %v9489_v33 = vmov 0 }
  0xb4   :  { %v6619_v11 = vsub.s32 0, %v6613_v7  ;;  %v443_v12 = vadd.s32 8, %v6613_v7  ;;  %5298 = vmatpush3.msra.mxu0 %v368_v5  ;;  %v444_v16 = vadd.s32 16, %v6613_v7  ;;  %v445_v24 = vadd.s32 24, %v6613_v7  ;;  %v359_v35 = vld [vmem:[#allocation8 + $0x28] sm:$0xff]  ;;  %v358_v37 = vld [vmem:[#allocation8 + $0x20] sm:$0xff] }
  0xb5   :  { %5299 = vmatprep.subr.mxu0 %v367_v8  ;;  %v446_v29 = vadd.s32 32, %v6613_v7  ;;  %v447_v34 = vadd.s32 40, %v6613_v7  ;;  %v9492_v38 = vmov 0  ;;  %v448_v39 = vadd.s32 48, %v6613_v7  ;;  %v357_v40 = vld [vmem:[#allocation8 + $0x18] sm:$0xff]  ;;  %v356_v42 = vld [vmem:[#allocation8 + $0x10] sm:$0xff] }
  0xb6   :  { %v6623_v14 = vrot.slane %v434_v2, %v6619_v11  ;;  %v482_v15 = vrot.slane %v478_v10, %v6619_v11  ;;  %5300 = vmatpush3.msra.mxu0 %v367_v8  ;;  %v9495_v43 = vmov 0  ;;  %v449_v44 = vadd.s32 56, %v6613_v7  ;;  %v355_v45 = vld [vmem:[#allocation8 + $0x8] sm:$0xff]  ;;  %v354_v47 = vld [vmem:[#allocation8] sm:$0xff]  ;;  %s6310_s6 = smov 1  }
  0xb7   :  { %5301 = vmatprep.subr.mxu0 %v366_v13  ;;  %v9498_v48 = vmov 0  ;;  %v450_v49 = vadd.s32 64, %v6613_v7  ;;  %v9501_v51 = vmov 0  ;;  %v451_v52 = vadd.s32 72, %v6613_v7 }
  0xb8   :  { %vm462_vm4 = vcmp.eq.s32.totalorder %v6613_v7, %v6623_v14  ;;  %vm6629_vm5 = vcmp.eq.s32.totalorder %v482_v15, 1  ;;  %vm463_vm6 = vcmp.eq.s32.totalorder %v443_v12, %v6623_v14  ;;  %5302 = vmatpush3.msra.mxu0 %v366_v13  ;;  %vm464_vm9 = vcmp.eq.s32.totalorder %v444_v16, %v6623_v14 }
  0xb9   :  { %vm6636_vm7 = vmand %vm462_vm4, %vm6629_vm5  ;;  %5303 = vmatprep.subr.mxu0 %v365_v17  ;;  %vm465_vm11 = vcmp.eq.s32.totalorder %v445_v24, %v6623_v14  ;;  %vm466_vm13 = vcmp.eq.s32.totalorder %v446_v29, %v6623_v14  ;;  %vm467_vm15 = vcmp.eq.s32.totalorder %v447_v34, %v6623_v14  ;;  %vm468_vm2 = vcmp.eq.s32.totalorder %v448_v39, %v6623_v14 }
  0xba   :  { %v9481_v20 = vsel %vm6636_vm7, 4294967295, %v9480_v20  ;;  %v4862_v22 = vsel %vm6636_vm7, 1.0, %v9240_v21  ;;  %vm6645_vm8 = vmand %vm463_vm6, %vm6629_vm5  ;;  %5304 = vmatpush3.msra.mxu0 %v365_v17  ;;  %vm469_vm6 = vcmp.eq.s32.totalorder %v449_v44, %v6623_v14  ;;  %v9504_v54 = vmov 0 }
  0xbb   :  { %9482 = vst [vmem:[#allocation29_spill] sm:$0xff] %v9481_v20  ;;  %v9484_v23 = vsel %vm6645_vm8, 4294967295, %v9483_v23  ;;  %532 = vxpose.xlu0.b32.start [1/16] %v4862_v22, 128  ;;  %5305 = vmatprep.subr.mxu0 %v364_v19  ;;  %v4863_v26 = vsel %vm6645_vm8, 1.0, %v9240_v21  ;;  %vm6656_vm10 = vmand %vm464_vm9, %vm6629_vm5  ;;  %v452_v55 = vadd.s32 80, %v6613_v7  ;;  %v9507_v57 = vmov 0 }
  0xbc   :  { %9485 = vst [vmem:[#allocation30_spill] sm:$0xff] %v9484_v23  ;;  %5306 = vmatpush3.msra.mxu0 %v364_v19  ;;  %v9487_v28 = vsel %vm6656_vm10, 4294967295, %v9486_v28  ;;  %v4864_v31 = vsel %vm6656_vm10, 1.0, %v9240_v21  ;;  %vm6667_vm12 = vmand %vm465_vm11, %vm6629_vm5  ;;  %vm470_vm11 = vcmp.eq.s32.totalorder %v450_v49, %v6623_v14  ;;  %v453_v58 = vadd.s32 88, %v6613_v7 }
  0xbd   :  { %9488 = vst [vmem:[#allocation31_spill] sm:$0xff] %v9487_v28  ;;  %5307 = vmatprep.subr.mxu0 %v363_v25  ;;  %v9490_v33 = vsel %vm6667_vm12, 4294967295, %v9489_v33  ;;  %v4865_v36 = vsel %vm6667_vm12, 1.0, %v9240_v21  ;;  %vm6678_vm14 = vmand %vm466_vm13, %vm6629_vm5  ;;  %v9510_v60 = vmov 0  ;;  %v454_v61 = vadd.s32 96, %v6613_v7  ;;  %v7351_v28 = vld [vmem:[#allocation4 + $0x8] sm:$0xff] }
  0xbe   :  { %5308 = vmatpush3.msra.mxu0 %v363_v25  ;;  %9491 = vst [vmem:[#allocation32_spill] sm:$0xff] %v9490_v33  ;;  %v9493_v38 = vsel %vm6678_vm14, 4294967295, %v9492_v38  ;;  %v4866_v41 = vsel %vm6678_vm14, 1.0, %v9240_v21  ;;  %vm6689_vm1 = vmand %vm467_vm15, %vm6629_vm5  ;;  %vm471_vm15 = vcmp.eq.s32.totalorder %v451_v52, %v6623_v14  ;;  %v9513_v63 = vmov 0  ;;  %v5016_v52 = vld [vmem:[#allocation13 + $0x8] sm:$0xff]  }
  0xbf   :  { %533 = vxpose.xlu0.b32.cont [2/16] %v4863_v26, 128  ;;  %5309 = vmatprep.subr.mxu0 %v362_v27  ;;  %9494 = vst [vmem:[#allocation33_spill] sm:$0xff] %v9493_v38  ;;  %v9496_v43 = vsel %vm6689_vm1, 4294967295, %v9495_v43  ;;  %v4867_v46 = vsel %vm6689_vm1, 1.0, %v9240_v21  ;;  %vm6700_vm4 = vmand %vm468_vm2, %vm6629_vm5  ;;  %v455_v0 = vadd.s32 104, %v6613_v7  ;;  %v9516_v2 = vmov 0  ;;  %v7343_v38 = vld [vmem:[#allocation4] sm:$0xff] }
  0xc0   :  { %5310 = vmatpush3.msra.mxu0 %v362_v27  ;;  %9497 = vst [vmem:[#allocation34_spill] sm:$0xff] %v9496_v43  ;;  %v9499_v48 = vsel %vm6700_vm4, 4294967295, %v9498_v48  ;;  %v4868_v50 = vsel %vm6700_vm4, 1.0, %v9240_v21  ;;  %vm6711_vm9 = vmand %vm469_vm6, %vm6629_vm5  ;;  %vm472_vm6 = vcmp.eq.s32.totalorder %v452_v55, %v6623_v14  ;;  %v456_v3 = vadd.s32 112, %v6613_v7 }
  0xc1   :  { %5311 = vmatprep.subr.mxu0 %v361_v30  ;;  %9500 = vst [vmem:[#allocation35_spill] sm:$0xff] %v9499_v48  ;;  %v9502_v51 = vsel %vm6711_vm9, 4294967295, %v9501_v51  ;;  %v4869_v53 = vsel %vm6711_vm9, 1.0, %v9240_v21  ;;  %vm6722_vm13 = vmand %vm470_vm11, %vm6629_vm5  ;;  %v9519_v5 = vmov 0  ;;  %v457_v8 = vadd.s32 120, %v6613_v7 }
  0xc2   :  { %5312 = vmatpush3.msra.mxu0 %v361_v30  ;;  %9503 = vst [vmem:[#allocation36_spill] sm:$0xff] %v9502_v51  ;;  %v9505_v54 = vsel %vm6722_vm13, 4294967295, %v9504_v54  ;;  %v4870_v56 = vsel %vm6722_vm13, 1.0, %v9240_v21  ;;  %vm6733_vm2 = vmand %vm471_vm15, %vm6629_vm5  ;;  %vm473_vm15 = vcmp.eq.s32.totalorder %v453_v58, %v6623_v14  ;;  %v9522_v12 = vmov 0 }
  0xc3   :  { %534 = vxpose.xlu0.b32.cont [3/16] %v4864_v31, 128  ;;  %5313 = vmatprep.subr.mxu0 %v360_v32  ;;  %9506 = vst [vmem:[#allocation37_spill] sm:$0xff] %v9505_v54  ;;  %v9508_v57 = vsel %vm6733_vm2, 4294967295, %v9507_v57  ;;  %v4871_v59 = vsel %vm6733_vm2, 1.0, %v9240_v21  ;;  %vm6744_vm11 = vmand %vm472_vm6, %vm6629_vm5  ;;  %vm474_vm6 = vcmp.eq.s32.totalorder %v454_v61, %v6623_v14  ;;  %v9525_v7 = vmov 0 }
  0xc4   :  { %5314 = vmatpush3.msra.mxu0 %v360_v32  ;;  %9509 = vst [vmem:[#allocation38_spill] sm:$0xff] %v9508_v57  ;;  %v9511_v60 = vsel %vm6744_vm11, 4294967295, %v9510_v60  ;;  %v4872_v62 = vsel %vm6744_vm11, 1.0, %v9240_v21  ;;  %vm6755_vm0 = vmand %vm473_vm15, %vm6629_vm5  ;;  %vm475_vm15 = vcmp.eq.s32.totalorder %v455_v0, %v6623_v14 }
  0xc5   :  { %5315 = vmatprep.subr.mxu0 %v359_v35  ;;  %9512 = vst [vmem:[#allocation39_spill] sm:$0xff] %v9511_v60  ;;  %v9514_v63 = vsel %vm6755_vm0, 4294967295, %v9513_v63  ;;  %v4873_v1 = vsel %vm6755_vm0, 1.0, %v9240_v21  ;;  %vm6766_vm3 = vmand %vm474_vm6, %vm6629_vm5  ;;  %vm476_vm6 = vcmp.eq.s32.totalorder %v456_v3, %v6623_v14  ;;  %v5010_v3 = vld [vmem:[#allocation11 + $0x10] sm:$0xff]  }
  0xc6   :  { %5316 = vmatpush3.msra.mxu0 %v359_v35  ;;  %9515 = vst [vmem:[#allocation40_spill] sm:$0xff] %v9514_v63  ;;  %v9517_v2 = vsel %vm6766_vm3, 4294967295, %v9516_v2  ;;  %v4874_v4 = vsel %vm6766_vm3, 1.0, %v9240_v21  ;;  %vm6777_vm11 = vmand %vm475_vm15, %vm6629_vm5  ;;  %vm477_vm15 = vcmp.eq.s32.totalorder %v457_v8, %v6623_v14 }
  0xc7   :  { %535 = vxpose.xlu0.b32.cont [4/16] %v4865_v36, 128  ;;  %5317 = vmatprep.subr.mxu0 %v358_v37  ;;  %9518 = vst [vmem:[#allocation41_spill] sm:$0xff] %v9517_v2  ;;  %v9520_v5 = vsel %vm6777_vm11, 4294967295, %v9519_v5  ;;  %v4875_v10 = vsel %vm6777_vm11, 1.0, %v9240_v21  ;;  %vm6788_vm0 = vmand %vm476_vm6, %vm6629_vm5  ;;  %v4946_v36 = vld [vmem:[#allocation11] sm:$0xff]   ;;  %vm9598_vm6 = vnez %v9511_v60 }
  0xc8   :  { %5318 = vmatpush3.msra.mxu0 %v358_v37  ;;  %9521 = vst [vmem:[#allocation42_spill] sm:$0xff] %v9520_v5  ;;  %v9523_v12 = vsel %vm6788_vm0, 4294967295, %v9522_v12  ;;  %v4876_v13 = vsel %vm6788_vm0, 1.0, %v9240_v21  ;;  %vm6798_vm3 = vmand %vm477_vm15, %vm6629_vm5  ;;  %v4978_v37 = vld [vmem:[#allocation13] sm:$0xff]   ;;  %v6851_v39 = vunpack.c.h.bf16 %v4946_v36  ;;  %v6856_v44 = vunpack.c.l.bf16 %v4946_v36 }
  0xc9   :  { %5319 = vmatprep.subr.mxu0 %v357_v40  ;;  %9524 = vst [vmem:[#allocation43_spill] sm:$0xff] %v9523_v12  ;;  %v9526_v7 = vsel %vm6798_vm3, 4294967295, %v9525_v7  ;;  %v4877_v15 = vsel %vm6798_vm3, 1.0, %v9240_v21  ;;  %v4983_v36 = vunpack.c.l.bf16 %v5016_v52  ;;  %vm9326_vm5 = vcmask 7168   ;;  %9604 = vst [vmem:[#allocation113_spill] sm:$0xff] %v7343_v38 }
  0xca   :  { %5320 = vmatpush3.msra.mxu0 %v357_v40  ;;  %9527 = vst [vmem:[#allocation44_spill] sm:$0xff] %v9526_v7  ;;  %9530 = vst [vmem:[#allocation47_spill] sm:$0xff] %v6851_v39  ;;  %v4980_v40 = vunpack.c.h.bf16 %v4978_v37  ;;  %vm9599_vm15 = vnez %v9514_v63 }
  0xcb   :  { %536 = vxpose.xlu0.b32.cont [5/16] %v4866_v41, 128  ;;  %5321 = vmatprep.subr.mxu0 %v356_v42  ;;  %9532 = vst [vmem:[#allocation49_spill] sm:$0xff] %v6856_v44 }
  0xcc   :  { %5322 = vmatpush3.msra.mxu0 %v356_v42  ;;  %v6854_v41 = vmul.f32 %v4980_v40, %v6851_v39 }
  0xcd   :  { %5323 = vmatprep.subr.mxu0 %v355_v45 }
  0xce   :  { %5324 = vmatpush3.msra.mxu0 %v355_v45  ;;  %9531 = vst [vmem:[#allocation48_spill] sm:$0xff] %v6854_v41 }
  0xcf   :  { %537 = vxpose.xlu0.b32.cont [6/16] %v4867_v46, 128  ;;  %5325 = vmatprep.subr.mxu0 %v354_v47 }
  0xd0   :  { %5326 = vmatpush3.msra.mxu0 %v354_v47  ;;  %v4979_v47 = vunpack.c.l.bf16 %v4978_v37 }
  0xd2   :  { %v6861_v55 = vmul.f32 %v4979_v47, %v6856_v44 }
  0xd3   :  { %538 = vxpose.xlu0.b32.cont [7/16] %v4868_v50, 128  ;;  %v5009_v50 = vld [vmem:[#allocation11 + $0x8] sm:$0xff]  }
  0xd4   :  { %9533 = vst [vmem:[#allocation50_spill] sm:$0xff] %v6861_v55  ;;  %v6863_v58 = vunpack.c.h.bf16 %v5009_v50 }
  0xd6   :  { %9534 = vst [vmem:[#allocation51_spill] sm:$0xff] %v6863_v58 }
  0xd7   :  { %539 = vxpose.xlu0.b32.cont [8/16] %v4869_v53, 128 }
  0xdb   :  { %540 = vxpose.xlu0.b32.cont [9/16] %v4870_v56, 128 }
  0xdf   :  { %541 = vxpose.xlu0.b32.cont [10/16] %v4871_v59, 128  ;;  %v4984_v59 = vunpack.c.h.bf16 %v5016_v52 }
  0xe3   :  { %542 = vxpose.xlu0.b32.cont [11/16] %v4872_v62, 128 }
  0xe7   :  { %543 = vxpose.xlu0.b32.cont [12/16] %v4873_v1, 128  ;;  %v6868_v1 = vmul.f32 %v4984_v59, %v6863_v58 }
  0xe9   :  { %9535 = vst [vmem:[#allocation52_spill] sm:$0xff] %v6868_v1 }
  0xeb   :  { %544 = vxpose.xlu0.b32.cont [13/16] %v4874_v4, 128 }
  0xef   :  { %545 = vxpose.xlu0.b32.cont [14/16] %v4875_v10, 128 }
  0xf3   :  { %546 = vxpose.xlu0.b32.cont [15/16] %v4876_v13, 128  ;;  %v6872_v13 = vunpack.c.h.bf16 %v5010_v3 }
  0xf5   :  { %9536 = vst [vmem:[#allocation53_spill] sm:$0xff] %v6872_v13 }
  0xf7   :  { %547 = vxpose.xlu0.b32.end [16/16] %v4877_v15, 128 }
 0x137   :  { %v548_v16 = vpop.trf.xlu0 }
 0x138   :  { %5327 = vmatprep.mubr.f32.mxu0 %v548_v16  ;;  %5383 = vmatprep.mubr.f32.mxu1 %v548_v16  ;;  %v6874_v16 = vunpack.c.l.bf16 %v5009_v50 }
 0x13a   :  { %9537 = vst [vmem:[#allocation54_spill] sm:$0xff] %v6874_v16 }
 0x13b   :  { %v6805_v14 = vpop.trf.xlu0 }
 0x13c   :  { %5328 = vmatmul.mubr.f32.vlgmr.msra.gmra.mxu0 %v6805_v14 }
 0x13f   :  { %v6808_v17 = vpop.trf.xlu0 }
 0x140   :  { %5330 = vmatprep.mubr.f32.mxu0 %v6808_v17 }
 0x143   :  { %v6811_v18 = vpop.trf.xlu0 }
 0x144   :  { %5331 = vmatmul.mubr.f32.gmra.mxu0 %v6811_v18 }
 0x147   :  { %v6814_v19 = vpop.trf.xlu0 }
 0x148   :  { %5333 = vmatprep.mubr.f32.mxu0 %v6814_v19 }
 0x14b   :  { %v6817_v22 = vpop.trf.xlu0 }
 0x14c   :  { %5334 = vmatmul.mubr.f32.gmra.mxu0 %v6817_v22 }
 0x14f   :  { %v6820_v24 = vpop.trf.xlu0 }
 0x150   :  { %5336 = vmatprep.mubr.f32.mxu0 %v6820_v24 }
 0x153   :  { %v6823_v25 = vpop.trf.xlu0 }
 0x154   :  { %5337 = vmatmul.mubr.f32.gmra.mxu0 %v6823_v25 }
 0x157   :  { %v6826_v26 = vpop.trf.xlu0 }
 0x158   :  { %5339 = vmatprep.mubr.f32.mxu0 %v6826_v26 }
 0x15b   :  { %v6829_v27 = vpop.trf.xlu0 }
 0x15c   :  { %5340 = vmatmul.mubr.f32.gmra.mxu0 %v6829_v27 }
 0x15f   :  { %v6832_v29 = vpop.trf.xlu0 }
 0x160   :  { %5342 = vmatprep.mubr.f32.mxu0 %v6832_v29 }
 0x163   :  { %v6835_v30 = vpop.trf.xlu0 }
 0x164   :  { %5343 = vmatmul.mubr.f32.gmra.mxu0 %v6835_v30 }
 0x167   :  { %v6838_v31 = vpop.trf.xlu0 }
 0x168   :  { %5345 = vmatprep.mubr.f32.mxu0 %v6838_v31 }
 0x16b   :  { %v6841_v32 = vpop.trf.xlu0 }
 0x16c   :  { %5346 = vmatmul.mubr.f32.gmra.mxu0 %v6841_v32 }
 0x16f   :  { %v6844_v34 = vpop.trf.xlu0 }
 0x170   :  { %9528 = vst [vmem:[#allocation45_spill] sm:$0xff] %v6844_v34  ;;  %5348 = vmatprep.mubr.f32.mxu0 %v6844_v34 }
 0x173   :  { %v6847_v35 = vpop.trf.xlu0 }
 0x174   :  { %9529 = vst [vmem:[#allocation46_spill] sm:$0xff] %v6847_v35  ;;  %5349 = vmatmul.mubr.f32.gmra.mxu0 %v6847_v35 }
 0x175   :  { %2407 = vmatprep.mubr.bf16.mxu0 %v9241_v9 }
 0x1fc   :  { %v5329_v42 = vpop.f32.mrf.mxu0 }
 0x1fd   :  { %v822_v45 = vmul.f32 %v5329_v42, %v6851_v39  ;;  %v726_v46 = vmul.f32 %v5329_v42, %v6854_v41  ;;  %v774_v53 = vmul.f32 %v5329_v42, %v4980_v40  ;;  %v6877_v40 = vld [vmem:[#allocation11 + $0x18] sm:$0xff]  }
 0x1fe   :  { %v630_v49 = vpop.f32.mrf.mxu0  ;;  %v6963_v35 = vunpack.c.l.bf16 %v6877_v40 }
 0x1ff   :  { %839 = vadd.xlane.f32.xlu0 %v822_v45  ;;  %743 = vadd.xlane.f32.xlu1 %v726_v46  ;;  %v773_v56 = vmul.f32 %v4979_v47, %v630_v49  ;;  %v725_v62 = vmul.f32 %v6861_v55, %v630_v49  ;;  %v821_v4 = vmul.f32 %v6856_v44, %v630_v49  ;;  %v6883_v47 = vunpack.c.h.bf16 %v6877_v40  ;;  %v5017_v49 = vld [vmem:[#allocation13 + $0x10] sm:$0xff]  }
 0x200   :  { %v6880_v45 = vmul.f32 %v4983_v36, %v6874_v16  ;;  %9548 = vst [vmem:[#allocation65_spill] sm:$0xff] %v6963_v35 }
 0x201   :  { %9539 = vst [vmem:[#allocation56_spill] sm:$0xff] %v6883_v47 }
 0x202   :  { %9538 = vst [vmem:[#allocation55_spill] sm:$0xff] %v6880_v45 }
 0x203   :  { %791 = vadd.xlane.f32.xlu1 %v774_v53  ;;  %789 = vadd.xlane.f32.xlu0 %v773_v56  ;;  %v4988_v56 = vunpack.c.h.bf16 %v5017_v49 }
 0x204   :  { %v5332_v61 = vpop.f32.mrf.mxu0 }
 0x205   :  { %v824_v0 = vmul.f32 %v5332_v61, %v6863_v58  ;;  %v728_v10 = vmul.f32 %v5332_v61, %v6868_v1  ;;  %v776_v42 = vmul.f32 %v5332_v61, %v4984_v59  ;;  %v6890_v59 = vld [vmem:[#allocation11 + $0x20] sm:$0xff]   ;;  %v6941_v1 = vld [vmem:[#allocation13 + $0x38] sm:$0xff]  }
 0x206   :  { %v640_v8 = vpop.f32.mrf.mxu0 }
 0x207   :  { %741 = vadd.xlane.f32.xlu1 %v725_v62  ;;  %843 = vadd.xlane.f32.xlu0 %v824_v0  ;;  %v727_v50 = vmul.f32 %v6880_v45, %v640_v8  ;;  %v775_v61 = vmul.f32 %v4983_v36, %v640_v8  ;;  %v6895_v0 = vmul.f32 %v4988_v56, %v6872_v13 }
 0x209   :  { %9540 = vst [vmem:[#allocation57_spill] sm:$0xff] %v6895_v0 }
 0x20b   :  { %837 = vadd.xlane.f32.xlu1 %v821_v4  ;;  %v6898_v4 = vunpack.c.h.bf16 %v6890_v59 }
 0x20c   :  { %v5335_v15 = vpop.f32.mrf.mxu0 }
 0x20d   :  { %v826_v37 = vmul.f32 %v5335_v15, %v6872_v13  ;;  %9541 = vst [vmem:[#allocation58_spill] sm:$0xff] %v6898_v4  ;;  %v730_v36 = vmul.f32 %v5335_v15, %v6895_v0  ;;  %v6953_v0 = vld [vmem:[#allocation11 + $0x38] sm:$0xff]  }
 0x20e   :  { %v650_v46 = vpop.f32.mrf.mxu0 }
 0x20f   :  { %747 = vadd.xlane.f32.xlu1 %v728_v10  ;;  %847 = vadd.xlane.f32.xlu0 %v826_v37  ;;  %v823_v37 = vmul.f32 %v6874_v16, %v640_v8  ;;  %v778_v8 = vmul.f32 %v5335_v15, %v4988_v56  ;;  %v6922_v16 = vld [vmem:[#allocation13 + $0x30] sm:$0xff]  }
 0x210   :  { %v9263_v58 = vunpack.c.h.bf16 %v6922_v16 }
 0x213   :  { %795 = vadd.xlane.f32.xlu1 %v776_v42 }
 0x214   :  { %v6885_v53 = vpop.f32.mrf.mxu0 }
 0x215   :  { %v828_v52 = vmul.f32 %v6885_v53, %v6883_v47 }
 0x216   :  { %v6892_v62 = vpop.f32.mrf.mxu0 }
 0x217   :  { %745 = vadd.xlane.f32.xlu1 %v727_v50  ;;  %851 = vadd.xlane.f32.xlu0 %v828_v52  ;;  %v6905_v50 = vld [vmem:[#allocation11 + $0x28] sm:$0xff]   ;;  %v6908_v52 = vunpack.c.l.bf16 %v5010_v3  ;;  %v5018_v3 = vld [vmem:[#allocation13 + $0x18] sm:$0xff]  }
 0x218   :  { %v6911_v21 = vunpack.c.h.bf16 %v6905_v50  ;;  %v4992_v15 = vunpack.c.h.bf16 %v5018_v3 }
 0x219   :  { %9542 = vst [vmem:[#allocation59_spill] sm:$0xff] %v6908_v52 }
 0x21a   :  { %9543 = vst [vmem:[#allocation60_spill] sm:$0xff] %v6911_v21 }
 0x21b   :  { %793 = vadd.xlane.f32.xlu1 %v775_v61  ;;  %v4987_v61 = vunpack.c.l.bf16 %v5017_v49 }
 0x21c   :  { %v6900_v10 = vpop.f32.mrf.mxu0 }
 0x21d   :  { %v830_v42 = vmul.f32 %v6900_v10, %v6898_v4  ;;  %v6918_v44 = vmul.f32 %v4987_v61, %v6908_v52  ;;  %v777_v55 = vmul.f32 %v4987_v61, %v650_v46 }
 0x21e   :  { %v6913_v9 = vpop.f32.mrf.mxu0 }
 0x21f   :  { %841 = vadd.xlane.f32.xlu1 %v823_v37  ;;  %855 = vadd.xlane.f32.xlu0 %v830_v42  ;;  %9544 = vst [vmem:[#allocation61_spill] sm:$0xff] %v6918_v44  ;;  %v6926_v42 = vld [vmem:[#allocation11 + $0x30] sm:$0xff]  }
 0x220   :  { %v6931_v56 = vunpack.c.h.bf16 %v6926_v42 }
 0x222   :  { %9545 = vst [vmem:[#allocation62_spill] sm:$0xff] %v6931_v56 }
 0x223   :  { %751 = vadd.xlane.f32.xlu1 %v730_v36  ;;  %v729_v36 = vmul.f32 %v6918_v44, %v650_v46  ;;  %v5008_v44 = vunpack.c.h.bf16 %v6941_v1 }
 0x224   :  { %v6915_v39 = vpop.f32.mrf.mxu0 }
 0x225   :  { %v832_v37 = vmul.f32 %v6915_v39, %v6911_v21 }
 0x226   :  { %v6924_v49 = vpop.f32.mrf.mxu0 }
 0x227   :  { %799 = vadd.xlane.f32.xlu1 %v778_v8  ;;  %859 = vadd.xlane.f32.xlu0 %v832_v37  ;;  %v9269_v8 = vunpack.c.l.bf16 %v6922_v16 }
 0x22b   :  { %749 = vadd.xlane.f32.xlu1 %v729_v36  ;;  %v6944_v36 = vmul.f32 %v4992_v15, %v6883_v47 }
 0x22c   :  { %v6933_v41 = vpop.f32.mrf.mxu0 }
 0x22d   :  { %v786_v37 = vmul.f32 %v6933_v41, %v9263_v58  ;;  %9546 = vst [vmem:[#allocation63_spill] sm:$0xff] %v6944_v36  ;;  %v834_v45 = vmul.f32 %v6933_v41, %v6931_v56  ;;  %v825_v58 = vmul.f32 %v6908_v52, %v650_v46  ;;  %v780_v52 = vmul.f32 %v6885_v53, %v4992_v15 }
 0x22e   :  { %v6939_v13 = vpop.f32.mrf.mxu0  ;;  %v6981_v15 = vunpack.c.l.bf16 %v6890_v59 }
 0x22f   :  { %797 = vadd.xlane.f32.xlu1 %v777_v55  ;;  %815 = vadd.xlane.f32.xlu0 %v786_v37  ;;  %v6951_v61 = vmul.f32 %v9269_v8, %v6939_v13  ;;  %v732_v55 = vmul.f32 %v6885_v53, %v6944_v36  ;;  %v6960_v37 = vunpack.c.h.bf16 %v6953_v0  ;;  %v4991_v8 = vunpack.c.l.bf16 %v5018_v3 }
 0x230   :  { %v827_v53 = vmul.f32 %v6963_v35, %v6892_v62  ;;  %9551 = vst [vmem:[#allocation68_spill] sm:$0xff] %v6981_v15 }
 0x231   :  { %9547 = vst [vmem:[#allocation64_spill] sm:$0xff] %v6960_v37  ;;  %v779_v3 = vmul.f32 %v4991_v8, %v6892_v62 }
 0x233   :  { %845 = vadd.xlane.f32.xlu1 %v825_v58  ;;  %863 = vadd.xlane.f32.xlu0 %v834_v45  ;;  %v6968_v58 = vmul.f32 %v4991_v8, %v6963_v35  ;;  %v5019_v45 = vld [vmem:[#allocation13 + $0x20] sm:$0xff]  }
 0x234   :  { %v5350_v47 = vpop.f32.mrf.mxu0  ;;  %v4996_v40 = vunpack.c.h.bf16 %v5019_v45 }
 0x235   :  { %v788_v34 = vmul.f32 %v5350_v47, %v5008_v44  ;;  %v836_v46 = vmul.f32 %v5350_v47, %v6960_v37  ;;  %9549 = vst [vmem:[#allocation66_spill] sm:$0xff] %v6968_v58  ;;  %v731_v36 = vmul.f32 %v6968_v58, %v6892_v62 }
 0x237   :  { %755 = vadd.xlane.f32.xlu1 %v732_v55  ;;  %819 = vadd.xlane.f32.xlu0 %v788_v34  ;;  %v6974_v34 = vmul.f32 %v4996_v40, %v6898_v4  ;;  %v4995_v55 = vunpack.c.l.bf16 %v5019_v45  ;;  %v829_v45 = vmul.f32 %v6981_v15, %v6913_v9 }
 0x239   :  { %9550 = vst [vmem:[#allocation67_spill] sm:$0xff] %v6974_v34  ;;  %v6985_v8 = vmul.f32 %v4995_v55, %v6981_v15 }
 0x23b   :  { %803 = vadd.xlane.f32.xlu1 %v780_v52  ;;  %867 = vadd.xlane.f32.xlu0 %v836_v46  ;;  %v734_v52 = vmul.f32 %v6900_v10, %v6974_v34  ;;  %9552 = vst [vmem:[#allocation69_spill] sm:$0xff] %v6985_v8  ;;  %v5020_v46 = vld [vmem:[#allocation13 + $0x28] sm:$0xff]  }
 0x23c   :  { %v5000_v62 = vunpack.c.h.bf16 %v5020_v46 }
 0x23e   :  { %v6991_v59 = vmul.f32 %v5000_v62, %v6911_v21 }
 0x23f   :  { %753 = vadd.xlane.f32.xlu1 %v731_v36  ;;  %v782_v36 = vmul.f32 %v6900_v10, %v4996_v40  ;;  %v6998_v40 = vunpack.c.l.bf16 %v6905_v50 }
 0x240   :  { %9553 = vst [vmem:[#allocation70_spill] sm:$0xff] %v6991_v59  ;;  %v736_v10 = vmul.f32 %v6915_v39, %v6991_v59 }
 0x241   :  { %9554 = vst [vmem:[#allocation71_spill] sm:$0xff] %v6998_v40  ;;  %v831_v50 = vmul.f32 %v6998_v40, %v6924_v49 }
 0x243   :  { %801 = vadd.xlane.f32.xlu1 %v779_v3  ;;  %v733_v3 = vmul.f32 %v6985_v8, %v6913_v9 }
 0x247   :  { %849 = vadd.xlane.f32.xlu1 %v827_v53  ;;  %v781_v53 = vmul.f32 %v4995_v55, %v6913_v9 }
 0x24b   :  { %759 = vadd.xlane.f32.xlu1 %v734_v52  ;;  %v4999_v52 = vunpack.c.l.bf16 %v5020_v46 }
 0x24d   :  { %v7002_v55 = vmul.f32 %v4999_v52, %v6998_v40  ;;  %v783_v9 = vmul.f32 %v4999_v52, %v6924_v49 }
 0x24f   :  { %807 = vadd.xlane.f32.xlu1 %v782_v36  ;;  %v784_v36 = vmul.f32 %v6915_v39, %v5000_v62  ;;  %9555 = vst [vmem:[#allocation72_spill] sm:$0xff] %v7002_v55  ;;  %v7015_v39 = vunpack.c.l.bf16 %v6926_v42  ;;  %v9559_v62 = vunpack.c.l.bf16 %v6922_v16  ;;  %v7034_v42 = vunpack.c.l.bf16 %v6953_v0 }
 0x251   :  { %9558 = vst [vmem:[#allocation74_spill] sm:$0xff] %v7015_v39  ;;  %9562 = vst [vmem:[#allocation77_spill] sm:$0xff] %v7034_v42 }
 0x253   :  { %757 = vadd.xlane.f32.xlu1 %v733_v3  ;;  %v735_v3 = vmul.f32 %v7002_v55, %v6924_v49  ;;  %v5007_v49 = vunpack.c.l.bf16 %v6941_v1 }
 0x257   :  { %805 = vadd.xlane.f32.xlu1 %v781_v53  ;;  %v9556_v53 = vunpack.c.h.bf16 %v6922_v16 }
 0x25b   :  { %853 = vadd.xlane.f32.xlu1 %v829_v45  ;;  %v7010_v45 = vmul.f32 %v9556_v53, %v6931_v56 }
 0x25d   :  { %9557 = vst [vmem:[#allocation73_spill] sm:$0xff] %v7010_v45  ;;  %v738_v46 = vmul.f32 %v6933_v41, %v7010_v45  ;;  %v833_v41 = vmul.f32 %v7015_v39, %v6939_v13 }
 0x25f   :  { %763 = vadd.xlane.f32.xlu1 %v736_v10  ;;  %v7022_v10 = vmul.f32 %v9559_v62, %v7015_v39 }
 0x261   :  { %9560 = vst [vmem:[#allocation75_spill] sm:$0xff] %v7022_v10  ;;  %v737_v52 = vmul.f32 %v7022_v10, %v6939_v13 }
 0x263   :  { %811 = vadd.xlane.f32.xlu1 %v784_v36  ;;  %v7027_v36 = vmul.f32 %v5008_v44, %v6960_v37 }
 0x265   :  { %9561 = vst [vmem:[#allocation76_spill] sm:$0xff] %v7027_v36  ;;  %v740_v16 = vmul.f32 %v5350_v47, %v7027_v36 }
 0x267   :  { %761 = vadd.xlane.f32.xlu1 %v735_v3  ;;  %v7038_v3 = vmul.f32 %v5007_v49, %v7034_v42 }
 0x269   :  { %9563 = vst [vmem:[#allocation78_spill] sm:$0xff] %v7038_v3 }
 0x26b   :  { %809 = vadd.xlane.f32.xlu1 %v783_v9  ;;  %v700_v9 = vpop.f32.mrf.mxu0 }
 0x26c   :  { %v739_v44 = vmul.f32 %v7038_v3, %v700_v9  ;;  %v787_v53 = vmul.f32 %v5007_v49, %v700_v9  ;;  %v835_v47 = vmul.f32 %v7034_v42, %v700_v9 }
 0x26f   :  { %857 = vadd.xlane.f32.xlu1 %v831_v50 }
 0x273   :  { %767 = vadd.xlane.f32.xlu1 %v738_v46 }
 0x277   :  { %765 = vadd.xlane.f32.xlu1 %v737_v52 }
 0x27b   :  { %813 = vadd.xlane.f32.xlu1 %v6951_v61 }
 0x27f   :  { %861 = vadd.xlane.f32.xlu1 %v833_v41 }
 0x283   :  { %771 = vadd.xlane.f32.xlu1 %v740_v16 }
 0x287   :  { %769 = vadd.xlane.f32.xlu1 %v739_v44 }
 0x288   :  { %v7041_v61 = vpop.xlane.xlu0 %839  ;;  %v7043_v1 = vpop.xlane.xlu1 %743 }
 0x28b   :  { %817 = vadd.xlane.f32.xlu1 %v787_v53 }
 0x28c   :  { %v7045_v13 = vpop.xlane.xlu1 %791  ;;  %v7047_v0 = vpop.xlane.xlu0 %789 }
 0x28d   :  { %969 = vxpose.xlu0.b32.start [1/16] (narrow) %v7047_v0, 8 }
 0x28f   :  { %865 = vadd.xlane.f32.xlu1 %v835_v47 }
 0x290   :  { %v7051_v50 = vpop.xlane.xlu1 %741 }
 0x291   :  { %970 = vxpose.xlu0.b32.cont [2/16] (narrow) %v7045_v13, 8 }
 0x294   :  { %v7054_v46 = vpop.xlane.xlu1 %837 }
 0x298   :  { %v7056_v62 = vpop.xlane.xlu1 %747 }
 0x29c   :  { %v7058_v52 = vpop.xlane.xlu1 %795 }
 0x2a0   :  { %v746_v49 = vpop.xlane.xlu1 %745 }
 0x2a4   :  { %v794_v41 = vpop.xlane.xlu1 %793 }
 0x2a5   :  { %v7061_v16 = vsel %vm9326_vm5, %v746_v49, %v794_v41  ;;  %971 = vxpose.xlu0.b32.cont [3/16] (narrow) %v794_v41, 8 }
 0x2a6   :  { %9564 = vst [vmem:[#allocation79_spill] sm:$0xff] %v7061_v16 }
 0x2a8   :  { %v7063_v44 = vpop.xlane.xlu1 %841 }
 0x2a9   :  { %9565 = vst [vmem:[#allocation80_spill] sm:$0xff] %v7063_v44  ;;  %972 = vxpose.xlu0.b32.cont [4/16] (narrow) %v7058_v52, 8 }
 0x2ac   :  { %v752_v9 = vpop.xlane.xlu1 %751 }
 0x2b0   :  { %v800_v53 = vpop.xlane.xlu1 %799 }
 0x2b1   :  { %v7067_v47 = vsel %vm9326_vm5, %v752_v9, %v800_v53 }
 0x2b2   :  { %9566 = vst [vmem:[#allocation81_spill] sm:$0xff] %v7067_v47 }
 0x2b4   :  { %v750_v35 = vpop.xlane.xlu1 %749 }
 0x2b8   :  { %v798_v15 = vpop.xlane.xlu1 %797 }
 0x2b9   :  { %v7070_v4 = vsel %vm9326_vm5, %v750_v35, %v798_v15  ;;  %973 = vxpose.xlu0.b32.cont [5/16] (narrow) %v798_v15, 8 }
 0x2ba   :  { %9567 = vst [vmem:[#allocation82_spill] sm:$0xff] %v7070_v4 }
 0x2bc   :  { %v7072_v58 = vpop.xlane.xlu1 %845 }
 0x2bd   :  { %9568 = vst [vmem:[#allocation83_spill] sm:$0xff] %v7072_v58  ;;  %974 = vxpose.xlu0.b32.cont [6/16] (narrow) %v800_v53, 8 }
 0x2c0   :  { %v756_v40 = vpop.xlane.xlu1 %755 }
 0x2c2   :  { %885 = vxpose.xlu1.b32.start [1/16] (narrow) %v7051_v50, 8 }
 0x2c4   :  { %v804_v41 = vpop.xlane.xlu1 %803 }
 0x2c5   :  { %v7076_v21 = vsel %vm9326_vm5, %v756_v40, %v804_v41 }
 0x2c6   :  { %9569 = vst [vmem:[#allocation84_spill] sm:$0xff] %v7076_v21  ;;  %886 = vxpose.xlu1.b32.cont [2/16] (narrow) %v7043_v1, 8 }
 0x2c8   :  { %v754_v34 = vpop.xlane.xlu1 %753 }
 0x2ca   :  { %887 = vxpose.xlu1.b32.cont [3/16] (narrow) %v746_v49, 8 }
 0x2cc   :  { %v802_v8 = vpop.xlane.xlu1 %801 }
 0x2cd   :  { %v7080_v39 = vsel %vm9326_vm5, %v754_v34, %v802_v8  ;;  %975 = vxpose.xlu0.b32.cont [7/16] (narrow) %v802_v8, 8  ;;  %vm9600_vm5 = vnez %v9517_v2 }
 0x2ce   :  { %9570 = vst [vmem:[#allocation85_spill] sm:$0xff] %v7080_v39  ;;  %888 = vxpose.xlu1.b32.cont [4/16] (narrow) %v7056_v62, 8 }
 0x2d0   :  { %v7083_v15 = vpop.xlane.xlu1 %849 }
 0x2d1   :  { %9571 = vst [vmem:[#allocation86_spill] sm:$0xff] %v7083_v15  ;;  %976 = vxpose.xlu0.b32.cont [8/16] (narrow) %v804_v41, 8 }
 0x2d2   :  { %889 = vxpose.xlu1.b32.cont [5/16] (narrow) %v750_v35, 8 }
 0x2d4   :  { %v7085_v53 = vpop.xlane.xlu1 %759 }
 0x2d5   :  { %9572 = vst [vmem:[#allocation87_spill] sm:$0xff] %v7085_v53 }
 0x2d6   :  { %890 = vxpose.xlu1.b32.cont [6/16] (narrow) %v752_v9, 8 }
 0x2d8   :  { %v7087_v56 = vpop.xlane.xlu1 %807 }
 0x2d9   :  { %9573 = vst [vmem:[#allocation88_spill] sm:$0xff] %v7087_v56 }
 0x2da   :  { %891 = vxpose.xlu1.b32.cont [7/16] (narrow) %v754_v34, 8 }
 0x2dc   :  { %v7089_v59 = vpop.xlane.xlu1 %757 }
 0x2dd   :  { %9574 = vst [vmem:[#allocation89_spill] sm:$0xff] %v7089_v59 }
 0x2de   :  { %892 = vxpose.xlu1.b32.cont [8/16] (narrow) %v756_v40, 8  ;;  %v7106_v40 = vpop.xlane.xlu0 %843 }
 0x2e0   :  { %v7091_v49 = vpop.xlane.xlu1 %805 }
 0x2e1   :  { %9575 = vst [vmem:[#allocation90_spill] sm:$0xff] %v7091_v49  ;;  %977 = vxpose.xlu0.b32.cont [9/16] (narrow) %v7091_v49, 8 }
 0x2e2   :  { %893 = vxpose.xlu1.b32.cont [9/16] (narrow) %v7089_v59, 8  ;;  %v7112_v42 = vpop.xlane.xlu0 %847 }
 0x2e3   :  { %9581 = vst [vmem:[#allocation96_spill] sm:$0xff] %v7112_v42 }
 0x2e4   :  { %v7095_v8 = vpop.xlane.xlu1 %853 }
 0x2e5   :  { %9576 = vst [vmem:[#allocation91_spill] sm:$0xff] %v7095_v8  ;;  %978 = vxpose.xlu0.b32.cont [10/16] (narrow) %v7087_v56, 8 }
 0x2e6   :  { %894 = vxpose.xlu1.b32.cont [10/16] (narrow) %v7085_v53, 8  ;;  %v7117_v55 = vpop.xlane.xlu0 %851 }
 0x2e7   :  { %9583 = vst [vmem:[#allocation98_spill] sm:$0xff] %v7117_v55 }
 0x2e8   :  { %v7099_v35 = vpop.xlane.xlu1 %763 }
 0x2e9   :  { %9577 = vst [vmem:[#allocation92_spill] sm:$0xff] %v7099_v35 }
 0x2ea   :  { %v7121_v10 = vpop.xlane.xlu0 %855 }
 0x2eb   :  { %9585 = vst [vmem:[#allocation100_spill] sm:$0xff] %v7121_v10 }
 0x2ec   :  { %v7101_v9 = vpop.xlane.xlu1 %811 }
 0x2ed   :  { %9578 = vst [vmem:[#allocation93_spill] sm:$0xff] %v7101_v9 }
 0x2ee   :  { %v7126_v3 = vpop.xlane.xlu0 %859 }
 0x2ef   :  { %9587 = vst [vmem:[#allocation102_spill] sm:$0xff] %v7126_v3 }
 0x2f0   :  { %v7103_v34 = vpop.xlane.xlu1 %761 }
 0x2f1   :  { %9579 = vst [vmem:[#allocation94_spill] sm:$0xff] %v7103_v34  ;;  %895 = vxpose.xlu1.b32.cont [11/16] (narrow) %v7103_v34, 8 }
 0x2f4   :  { %v7108_v41 = vpop.xlane.xlu1 %809 }
 0x2f5   :  { %9580 = vst [vmem:[#allocation95_spill] sm:$0xff] %v7108_v41  ;;  %979 = vxpose.xlu0.b32.cont [11/16] (narrow) %v7108_v41, 8  ;;  %896 = vxpose.xlu1.b32.cont [12/16] (narrow) %v7099_v35, 8  ;;  %v7132_v41 = vpop.xlane.xlu0 %815 }
 0x2f6   :  { %9589 = vst [vmem:[#allocation104_spill] sm:$0xff] %v7132_v41 }
 0x2f8   :  { %v7114_v37 = vpop.xlane.xlu1 %857 }
 0x2f9   :  { %9582 = vst [vmem:[#allocation97_spill] sm:$0xff] %v7114_v37  ;;  %980 = vxpose.xlu0.b32.cont [12/16] (narrow) %v7101_v9, 8 }
 0x2fc   :  { %v7119_v45 = vpop.xlane.xlu1 %767 }
 0x2fd   :  { %9584 = vst [vmem:[#allocation99_spill] sm:$0xff] %v7119_v45 }
 0x300   :  { %v7123_v36 = vpop.xlane.xlu1 %765 }
 0x301   :  { %9586 = vst [vmem:[#allocation101_spill] sm:$0xff] %v7123_v36  ;;  %897 = vxpose.xlu1.b32.cont [13/16] (narrow) %v7123_v36, 8  ;;  %v7142_v36 = vpop.xlane.xlu0 %863 }
 0x302   :  { %9593 = vst [vmem:[#allocation108_spill] sm:$0xff] %v7142_v36 }
 0x304   :  { %v7128_v34 = vpop.xlane.xlu1 %813 }
 0x305   :  { %9588 = vst [vmem:[#allocation103_spill] sm:$0xff] %v7128_v34  ;;  %981 = vxpose.xlu0.b32.cont [13/16] (narrow) %v7128_v34, 8  ;;  %898 = vxpose.xlu1.b32.cont [14/16] (narrow) %v7119_v45, 8  ;;  %v7148_v34 = vpop.xlane.xlu0 %819 }
 0x306   :  { %9595 = vst [vmem:[#allocation110_spill] sm:$0xff] %v7148_v34 }
 0x308   :  { %v7134_v35 = vpop.xlane.xlu1 %861 }
 0x309   :  { %9590 = vst [vmem:[#allocation105_spill] sm:$0xff] %v7134_v35  ;;  %982 = vxpose.xlu0.b32.cont [14/16] (narrow) %v7132_v41, 8  ;;  %v7153_v41 = vpop.xlane.xlu0 %867 }
 0x30a   :  { %9597 = vst [vmem:[#allocation112_spill] sm:$0xff] %v7153_v41 }
 0x30c   :  { %v7137_v9 = vpop.xlane.xlu1 %771 }
 0x30d   :  { %9591 = vst [vmem:[#allocation106_spill] sm:$0xff] %v7137_v9 }
 0x310   :  { %v7139_v4 = vpop.xlane.xlu1 %769 }
 0x311   :  { %9592 = vst [vmem:[#allocation107_spill] sm:$0xff] %v7139_v4  ;;  %899 = vxpose.xlu1.b32.cont [15/16] (narrow) %v7139_v4, 8 }
 0x314   :  { %v7144_v59 = vpop.xlane.xlu1 %817 }
 0x315   :  { %9594 = vst [vmem:[#allocation109_spill] sm:$0xff] %v7144_v59  ;;  %900 = vxpose.xlu1.b32.end [16/16] (narrow) %v7137_v9, 8  ;;  %983 = vxpose.xlu0.b32.cont [15/16] (narrow) %v7144_v59, 8 }
 0x318   :  { %v7151_v45 = vpop.xlane.xlu1 %865 }
 0x319   :  { %984 = vxpose.xlu0.b32.end [16/16] (narrow) %v7148_v34, 8  ;;  %9596 = vst [vmem:[#allocation111_spill] sm:$0xff] %v7151_v45 }
 0x355   :  { %v901_v49 = vpop.trf.xlu1 }
 0x356   :  { %v7156_v39 = vrot.slane %v901_v49, %v6619_v11 }
 0x358   :  { %v921_v4 = vsel %vm6636_vm7, %v7156_v39, -1e+30  ;;  %v922_v9 = vsel %vm6645_vm8, %v7156_v39, -1e+30  ;;  %v923_v49 = vsel %vm6656_vm10, %v7156_v39, -1e+30 }
 0x359   :  { %v985_v16 = vpop.trf.xlu0  ;;  %937 = vmax.xlane.f32.xlu0 %v921_v4  ;;  %v924_v4 = vsel %vm6667_vm12, %v7156_v39, -1e+30 }
 0x35a   :  { %v1004_v59 = vrot.slane %v985_v16, %v6619_v11 }
 0x35c   :  { %v1005_v34 = vsel %vm6636_vm7, %v1004_v59, -1e+30  ;;  %v1006_v53 = vsel %vm6645_vm8, %v1004_v59, -1e+30  ;;  %v1007_v16 = vsel %vm6656_vm10, %v1004_v59, -1e+30 }
 0x35d   :  { %1021 = vmax.xlane.f32.xlu1 %v1005_v34  ;;  %939 = vmax.xlane.f32.xlu0 %v922_v9  ;;  %v925_v9 = vsel %vm6678_vm14, %v7156_v39, -1e+30  ;;  %v1008_v34 = vsel %vm6667_vm12, %v1004_v59, -1e+30 }
 0x361   :  { %1023 = vmax.xlane.f32.xlu1 %v1006_v53  ;;  %941 = vmax.xlane.f32.xlu0 %v923_v49  ;;  %v926_v53 = vsel %vm6689_vm1, %v7156_v39, -1e+30  ;;  %v1009_v49 = vsel %vm6678_vm14, %v1004_v59, -1e+30 }
 0x365   :  { %1025 = vmax.xlane.f32.xlu1 %v1007_v16  ;;  %943 = vmax.xlane.f32.xlu0 %v924_v4  ;;  %v927_v4 = vsel %vm6700_vm4, %v7156_v39, -1e+30  ;;  %v1010_v16 = vsel %vm6689_vm1, %v1004_v59, -1e+30 }
 0x369   :  { %1027 = vmax.xlane.f32.xlu1 %v1008_v34  ;;  %945 = vmax.xlane.f32.xlu0 %v925_v9  ;;  %v928_v9 = vsel %vm6711_vm9, %v7156_v39, -1e+30  ;;  %v1012_v34 = vsel %vm6711_vm9, %v1004_v59, -1e+30 }
 0x36d   :  { %1029 = vmax.xlane.f32.xlu1 %v1009_v49  ;;  %947 = vmax.xlane.f32.xlu0 %v926_v53  ;;  %v929_v53 = vsel %vm6722_vm13, %v7156_v39, -1e+30  ;;  %v1013_v49 = vsel %vm6722_vm13, %v1004_v59, -1e+30 }
 0x371   :  { %1031 = vmax.xlane.f32.xlu1 %v1010_v16  ;;  %949 = vmax.xlane.f32.xlu0 %v927_v4  ;;  %v930_v4 = vsel %vm6733_vm2, %v7156_v39, -1e+30  ;;  %v1014_v16 = vsel %vm6733_vm2, %v1004_v59, -1e+30 }
 0x375   :  { %1035 = vmax.xlane.f32.xlu1 %v1012_v34  ;;  %951 = vmax.xlane.f32.xlu0 %v928_v9  ;;  %v931_v9 = vsel %vm9598_vm6, %v7156_v39, -1e+30  ;;  %v1015_v34 = vsel %vm9598_vm6, %v1004_v59, -1e+30 }
 0x379   :  { %1037 = vmax.xlane.f32.xlu1 %v1013_v49  ;;  %953 = vmax.xlane.f32.xlu0 %v929_v53  ;;  %v932_v53 = vsel %vm9599_vm15, %v7156_v39, -1e+30  ;;  %v1016_v49 = vsel %vm9599_vm15, %v1004_v59, -1e+30 }
 0x37d   :  { %1039 = vmax.xlane.f32.xlu1 %v1014_v16  ;;  %955 = vmax.xlane.f32.xlu0 %v930_v4  ;;  %v933_v4 = vsel %vm9600_vm5, %v7156_v39, -1e+30  ;;  %v1017_v16 = vsel %vm9600_vm5, %v1004_v59, -1e+30 }
 0x381   :  { %1041 = vmax.xlane.f32.xlu1 %v1015_v34  ;;  %957 = vmax.xlane.f32.xlu0 %v931_v9  ;;  %v934_v9 = vsel %vm6777_vm11, %v7156_v39, -1e+30  ;;  %v1018_v34 = vsel %vm6777_vm11, %v1004_v59, -1e+30 }
 0x385   :  { %1043 = vmax.xlane.f32.xlu1 %v1016_v49  ;;  %959 = vmax.xlane.f32.xlu0 %v932_v53  ;;  %v935_v53 = vsel %vm6788_vm0, %v7156_v39, -1e+30  ;;  %v1019_v49 = vsel %vm6788_vm0, %v1004_v59, -1e+30 }
 0x389   :  { %1045 = vmax.xlane.f32.xlu1 %v1017_v16  ;;  %961 = vmax.xlane.f32.xlu0 %v933_v4  ;;  %v936_v4 = vsel %vm6798_vm3, %v7156_v39, -1e+30  ;;  %v1020_v16 = vsel %vm6798_vm3, %v1004_v59, -1e+30 }
 0x38d   :  { %1047 = vmax.xlane.f32.xlu1 %v1018_v34  ;;  %963 = vmax.xlane.f32.xlu0 %v934_v9  ;;  %v1011_v9 = vsel %vm6700_vm4, %v1004_v59, -1e+30 }
 0x391   :  { %1049 = vmax.xlane.f32.xlu1 %v1019_v49  ;;  %965 = vmax.xlane.f32.xlu0 %v935_v53 }
 0x395   :  { %1051 = vmax.xlane.f32.xlu1 %v1020_v16  ;;  %967 = vmax.xlane.f32.xlu0 %v936_v4  ;;  %v1606_v4 = vld [vmem:[%s226_s24] sm:$0x1] }
 0x399   :  { %1033 = vmax.xlane.f32.xlu0 %v1011_v9 }
 0x3c8   :  { %1053 = vxpose.xlu1.b32.start [1/16] (narrow) %v7054_v46, 8 }
 0x3cc   :  { %1054 = vxpose.xlu1.b32.cont [2/16] (narrow) %v7041_v61, 8 }
 0x3d0   :  { %1055 = vxpose.xlu1.b32.cont [3/16] (narrow) %v7063_v44, 8 }
 0x3d4   :  { %1056 = vxpose.xlu1.b32.cont [4/16] (narrow) %v7106_v40, 8 }
 0x3d8   :  { %1057 = vxpose.xlu1.b32.cont [5/16] (narrow) %v7072_v58, 8 }
 0x3dc   :  { %1058 = vxpose.xlu1.b32.cont [6/16] (narrow) %v7112_v42, 8 }
 0x3e0   :  { %1059 = vxpose.xlu1.b32.cont [7/16] (narrow) %v7083_v15, 8 }
 0x3e4   :  { %1060 = vxpose.xlu1.b32.cont [8/16] (narrow) %v7117_v55, 8 }
 0x3e6   :  { %v7248_v59 = vpop.xlane.xlu1 %1021 }
 0x3e8   :  { %1061 = vxpose.xlu1.b32.cont [9/16] (narrow) %v7095_v8, 8 }
 0x3ea   :  { %v7252_v39 = vpop.xlane.xlu1 %1023 }
 0x3ec   :  { %1062 = vxpose.xlu1.b32.cont [10/16] (narrow) %v7121_v10, 8 }
 0x3ee   :  { %v7255_v34 = vpop.xlane.xlu1 %1025 }
 0x3f0   :  { %1063 = vxpose.xlu1.b32.cont [11/16] (narrow) %v7114_v37, 8 }
 0x3f2   :  { %v7259_v53 = vpop.xlane.xlu1 %1027 }
 0x3f4   :  { %1064 = vxpose.xlu1.b32.cont [12/16] (narrow) %v7126_v3, 8 }
 0x3f6   :  { %v7262_v49 = vpop.xlane.xlu1 %1029 }
 0x3f8   :  { %1065 = vxpose.xlu1.b32.cont [13/16] (narrow) %v7134_v35, 8 }
 0x3fa   :  { %v7270_v16 = vpop.xlane.xlu1 %1031 }
 0x3fc   :  { %1066 = vxpose.xlu1.b32.cont [14/16] (narrow) %v7142_v36, 8 }
 0x3fe   :  { %v7272_v9 = vpop.xlane.xlu1 %1035 }
 0x400   :  { %1067 = vxpose.xlu1.b32.cont [15/16] (narrow) %v7151_v45, 8  ;;  %v9601_v45 = vmov 0  }
 0x402   :  { %v7274_v35 = vpop.xlane.xlu1 %1037 }
 0x404   :  { %1068 = vxpose.xlu1.b32.end [16/16] (narrow) %v7153_v41, 8 }
 0x406   :  { %v7276_v36 = vpop.xlane.xlu1 %1039 }
 0x408   :  { %1607 = vxpose.xlu1.b32.start.end [1/1] (short) %v1606_v4, 128 }
 0x40a   :  { %v7278_v37 = vpop.xlane.xlu1 %1041 }
 0x40e   :  { %v7281_v3 = vpop.xlane.xlu1 %1043 }
 0x412   :  { %v7283_v41 = vpop.xlane.xlu1 %1045 }
 0x416   :  { %v7285_v58 = vpop.xlane.xlu1 %1047 }
 0x41a   :  { %v7287_v8 = vpop.xlane.xlu1 %1049 }
 0x41e   :  { %v7289_v4 = vpop.xlane.xlu1 %1051 }
 0x426   :  { %5838 = vset.pattern.permute.xlu1 %v9601_v45 }
 0x444   :  { %v1069_v10 = vpop.trf.xlu1 }
 0x445   :  { %v1088_v15 = vrot.slane %v1069_v10, %v6619_v11 }
 0x447   :  { %v1089_v44 = vsel %vm6636_vm7, %v1088_v15, -1e+30  ;;  %v1090_v56 = vsel %vm6645_vm8, %v1088_v15, -1e+30  ;;  %v1091_v21 = vsel %vm6656_vm10, %v1088_v15, -1e+30 }
 0x448   :  { %1105 = vmax.xlane.f32.xlu0 %v1089_v44  ;;  %v1092_v55 = vsel %vm6667_vm12, %v1088_v15, -1e+30  ;;  %v1093_v47 = vsel %vm6678_vm14, %v1088_v15, -1e+30  ;;  %v1094_v11 = vsel %vm6689_vm1, %v1088_v15, -1e+30  ;;  %v938_v44 = vpop.xlane.xlu0 %937 }
 0x449   :  { %v1095_v10 = vsel %vm6700_vm4, %v1088_v15, -1e+30  ;;  %v1103_v60 = vsel %vm6788_vm0, %v1088_v15, -1e+30  ;;  %vm1154_vm0 = vcmask 15360  }
 0x44c   :  { %1107 = vmax.xlane.f32.xlu0 %v1090_v56  ;;  %v1096_v56 = vsel %vm6711_vm9, %v1088_v15, -1e+30 }
 0x450   :  { %1109 = vmax.xlane.f32.xlu0 %v1091_v21  ;;  %v1097_v21 = vsel %vm6722_vm13, %v1088_v15, -1e+30 }
 0x454   :  { %1111 = vmax.xlane.f32.xlu0 %v1092_v55  ;;  %v1098_v55 = vsel %vm6733_vm2, %v1088_v15, -1e+30 }
 0x458   :  { %1113 = vmax.xlane.f32.xlu0 %v1093_v47  ;;  %v1099_v47 = vsel %vm9598_vm6, %v1088_v15, -1e+30 }
 0x45c   :  { %1115 = vmax.xlane.f32.xlu0 %v1094_v11  ;;  %v940_v11 = vpop.xlane.xlu0 %939 }
 0x460   :  { %1117 = vmax.xlane.f32.xlu0 %v1095_v10  ;;  %v1100_v10 = vsel %vm9599_vm15, %v1088_v15, -1e+30  ;;  %v942_v54 = vpop.xlane.xlu0 %941 }
 0x464   :  { %1119 = vmax.xlane.f32.xlu0 %v1096_v56  ;;  %v1101_v56 = vsel %vm9600_vm5, %v1088_v15, -1e+30  ;;  %vm9608_vm5 = vcmask 23552  }
 0x465   :  { %vm9609_vm15 = vmmov %vm9608_vm5 }
 0x468   :  { %1121 = vmax.xlane.f32.xlu0 %v1097_v21  ;;  %v1102_v21 = vsel %vm6777_vm11, %v1088_v15, -1e+30  ;;  %vm9603_vm11 = vnez %v9477_v6 }
 0x46c   :  { %1123 = vmax.xlane.f32.xlu0 %v1098_v55  ;;  %v944_v55 = vpop.xlane.xlu0 %943 }
 0x470   :  { %1125 = vmax.xlane.f32.xlu0 %v1099_v47  ;;  %v1104_v47 = vsel %vm6798_vm3, %v1088_v15, -1e+30  ;;  %v946_v63 = vpop.xlane.xlu0 %945  ;;  %vm9605_vm3 = vcmask 7168  }
 0x471   :  { %v1138_v33 = vsel %vm9605_vm3, %v938_v44, %v7248_v59  ;;  %v7361_v44 = vld [vmem:[#allocation4 + $0x10] sm:$0xff] }
 0x474   :  { %1127 = vmax.xlane.f32.xlu0 %v1100_v10  ;;  %v948_v10 = vpop.xlane.xlu0 %947 }
 0x478   :  { %1129 = vmax.xlane.f32.xlu0 %v1101_v56  ;;  %v950_v57 = vpop.xlane.xlu0 %949 }
 0x47c   :  { %1131 = vmax.xlane.f32.xlu0 %v1102_v21  ;;  %v952_v2 = vpop.xlane.xlu0 %951  ;;  %v9602_v21 = vmov 0.0  }
 0x47d   :  { %v4878_v12 = vsel %vm9603_vm11, 1.0, %v9602_v21  ;;  %vm9607_vm11 = vmmov %vm9605_vm3 }
 0x47e   :  { %v1139_v23 = vsel %vm9607_vm11, %v940_v11, %v7252_v39  ;;  %vm9612_vm11 = vmmov %vm9609_vm15 }
 0x480   :  { %1133 = vmax.xlane.f32.xlu0 %v1103_v60  ;;  %v7324_v51 = vpop.xlane.xlu0 %953 }
 0x484   :  { %1135 = vmax.xlane.f32.xlu0 %v1104_v47  ;;  %v7326_v56 = vpop.xlane.xlu0 %955 }
 0x488   :  { %v7328_v5 = vpop.xlane.xlu0 %957 }
 0x48c   :  { %v7333_v48 = vpop.xlane.xlu0 %959 }
 0x490   :  { %v7335_v60 = vpop.xlane.xlu0 %961 }
 0x494   :  { %v7337_v15 = vpop.xlane.xlu0 %963 }
 0x498   :  { %v7339_v47 = vpop.xlane.xlu0 %965 }
 0x49c   :  { %v7341_v7 = vpop.xlane.xlu0 %967 }
 0x4a0   :  { %v1034_v43 = vpop.xlane.xlu0 %1033 }
 0x4b1   :  { %1430 = vxpose.xlu0.b32.start.end [1/1] (short) %v4878_v12, 128 }
 0x4d1   :  { %v1106_v6 = vpop.xlane.xlu0 %1105 }
 0x4d2   :  { %v1155_v21 = vsel %vm1154_vm0, %v1138_v33, %v1106_v6  ;;  %v1140_v33 = vsel %vm9605_vm3, %v942_v54, %v7255_v34 }
 0x4d3   :  { %v7349_v12 = vmax.f32 %v7343_v38, %v1155_v21  ;;  %v7382_v21 = vld [vmem:[#allocation4 + $0x20] sm:$0xff] }
 0x4d5   :  { %9606 = vst [vmem:[#allocation114_spill] sm:$0xff] %v7349_v12  ;;  %1236 = vst.msk [vmem:[#allocation4] sm:$0xff] %vm9608_vm5, %v7349_v12  ;;  %v1108_v20 = vpop.xlane.xlu0 %1107 }
 0x4d6   :  { %v1156_v42 = vsel %vm1154_vm0, %v1139_v23, %v1108_v20  ;;  %v7372_v20 = vld [vmem:[#allocation4 + $0x18] sm:$0xff]  ;;  %vm9611_vm5 = vmmov %vm9605_vm3 }
 0x4d7   :  { %v7359_v59 = vmax.f32 %v7351_v28, %v1156_v42  ;;  %9610 = vst [vmem:[#allocation115_spill] sm:$0xff] %v7372_v20  ;;  %v1141_v23 = vsel %vm9611_vm5, %v944_v55, %v7259_v53 }
 0x4d9   :  { %1237 = vst.msk [vmem:[#allocation4 + $0x8] sm:$0xff] %vm9609_vm15, %v7359_v59  ;;  %v1110_v6 = vpop.xlane.xlu0 %1109  ;;  %vm9614_vm15 = vmmov %vm9605_vm3 }
 0x4da   :  { %v1157_v39 = vsel %vm1154_vm0, %v1140_v33, %v1110_v6  ;;  %5832 = vset.pattern.permute.xlu0 %v9601_v45  ;;  %v1142_v33 = vsel %vm9614_vm15, %v946_v63, %v7262_v49  ;;  %vm9615_vm3 = vmmov %vm9612_vm11 }
 0x4db   :  { %v7370_v11 = vmax.f32 %v7361_v44, %v1157_v39  ;;  %v7392_v39 = vld [vmem:[#allocation4 + $0x28] sm:$0xff]  ;;  %vm9619_vm15 = vmmov %vm9611_vm5 }
 0x4dc   :  { %9616 = vst [vmem:[#allocation117_spill] sm:$0xff] %v7392_v39 }
 0x4dd   :  { %1238 = vst.msk [vmem:[#allocation4 + $0x10] sm:$0xff] %vm9612_vm11, %v7370_v11  ;;  %v1112_v54 = vpop.xlane.xlu0 %1111  ;;  %vm9617_vm11 = vmmov %vm9615_vm3 }
 0x4de   :  { %v1158_v42 = vsel %vm1154_vm0, %v1141_v23, %v1112_v54  ;;  %v1143_v23 = vsel %vm9611_vm5, %v948_v10, %v7270_v16 }
 0x4df   :  { %v7380_v34 = vmax.f32 %v7372_v20, %v1158_v42  ;;  %v7398_v42 = vpop.trf.xlu1 }
 0x4e1   :  { %9613 = vst [vmem:[#allocation116_spill] sm:$0xff] %v7380_v34  ;;  %1239 = vst.msk [vmem:[#allocation4 + $0x18] sm:$0xff] %vm9615_vm3, %v7380_v34  ;;  %v1114_v6 = vpop.xlane.xlu0 %1113 }
 0x4e2   :  { %v1159_v53 = vsel %vm1154_vm0, %v1142_v33, %v1114_v6  ;;  %v7404_v33 = vld [vmem:[#allocation4 + $0x30] sm:$0xff]  ;;  %v1144_v6 = vsel %vm9619_vm15, %v950_v57, %v1034_v43  ;;  %vm9623_vm15 = vmmov %vm9611_vm5 }
 0x4e3   :  { %v7390_v55 = vmax.f32 %v7382_v21, %v1159_v53 }
 0x4e5   :  { %1240 = vst.msk [vmem:[#allocation4 + $0x20] sm:$0xff] %vm9617_vm11, %v7390_v55  ;;  %v1116_v54 = vpop.xlane.xlu0 %1115  ;;  %vm9621_vm11 = vmmov %vm9615_vm3 }
 0x4e6   :  { %v1160_v63 = vsel %vm1154_vm0, %v1143_v23, %v1116_v54  ;;  %v7415_v23 = vpop.trf.xlu1  ;;  %v7417_v54 = vld [vmem:[#allocation4 + $0x38] sm:$0xff] }
 0x4e7   :  { %v7402_v49 = vmax.f32 %v7392_v39, %v1160_v63  ;;  %9620 = vst [vmem:[#allocation119_spill] sm:$0xff] %v7417_v54  ;;  %v1145_v63 = vsel %vm9611_vm5, %v952_v2, %v7272_v9  ;;  %v1149_v39 = vsel %vm9611_vm5, %v7333_v48, %v7281_v3 }
 0x4e9   :  { %9618 = vst [vmem:[#allocation118_spill] sm:$0xff] %v7402_v49  ;;  %1241 = vst.msk [vmem:[#allocation4 + $0x28] sm:$0xff] %vm9615_vm3, %v7402_v49  ;;  %v1118_v16 = vpop.xlane.xlu0 %1117 }
 0x4ea   :  { %v1161_v10 = vsel %vm1154_vm0, %v1144_v6, %v1118_v16  ;;  %v7429_v16 = vld [vmem:[#allocation4 + $0x40] sm:$0xff]  ;;  %v7438_v43 = vpop.trf.xlu1 }
 0x4eb   :  { %v7413_v20 = vmax.f32 %v7404_v33, %v1161_v10  ;;  %v1146_v10 = vsel %vm9623_vm15, %v7324_v51, %v7274_v35  ;;  %v1147_v51 = vsel %vm9611_vm5, %v7326_v56, %v7276_v36  ;;  %vm9627_vm15 = vmmov %vm9611_vm5 }
 0x4ec   :  { %v1148_v36 = vsel %vm9627_vm15, %v7328_v5, %v7278_v37  ;;  %vm9633_vm15 = vmmov %vm9611_vm5 }
 0x4ed   :  { %1242 = vst.msk [vmem:[#allocation4 + $0x30] sm:$0xff] %vm9621_vm11, %v7413_v20  ;;  %v1120_v57 = vpop.xlane.xlu0 %1119  ;;  %vm9625_vm11 = vmmov %vm9615_vm3  ;;  %v1150_v48 = vsel %vm9633_vm15, %v7335_v60, %v7283_v41  ;;  %v1151_v41 = vsel %vm9611_vm5, %v7337_v15, %v7285_v58 }
 0x4ee   :  { %v1162_v53 = vsel %vm1154_vm0, %v1145_v63, %v1120_v57  ;;  %v7444_v57 = vld [vmem:[#allocation4 + $0x48] sm:$0xff]  ;;  %vm9639_vm15 = vmmov %vm9611_vm5 }
 0x4ef   :  { %v7427_v6 = vmax.f32 %v7417_v54, %v1162_v53  ;;  %9624 = vst [vmem:[#allocation121_spill] sm:$0xff] %v7444_v57 }
 0x4f1   :  { %9622 = vst [vmem:[#allocation120_spill] sm:$0xff] %v7427_v6  ;;  %1243 = vst.msk [vmem:[#allocation4 + $0x38] sm:$0xff] %vm9615_vm3, %v7427_v6  ;;  %v1122_v9 = vpop.xlane.xlu0 %1121 }
 0x4f2   :  { %v1163_v63 = vsel %vm1154_vm0, %v1146_v10, %v1122_v9  ;;  %v7457_v9 = vpop.trf.xlu1 }
 0x4f3   :  { %v7442_v53 = vmax.f32 %v7429_v16, %v1163_v63  ;;  %v7459_v63 = vld [vmem:[#allocation4 + $0x50] sm:$0xff] }
 0x4f5   :  { %1244 = vst.msk [vmem:[#allocation4 + $0x40] sm:$0xff] %vm9625_vm11, %v7442_v53  ;;  %v1124_v2 = vpop.xlane.xlu0 %1123  ;;  %vm9630_vm11 = vmmov %vm9615_vm3 }
 0x4f6   :  { %v1164_v54 = vsel %vm1154_vm0, %v1147_v51, %v1124_v2  ;;  %v7472_v51 = vld [vmem:[#allocation4 + $0x58] sm:$0xff]  ;;  %v7481_v56 = vpop.trf.xlu1 }
 0x4f7   :  { %v7455_v10 = vmax.f32 %v7444_v57, %v1164_v54  ;;  %9629 = vst [vmem:[#allocation124_spill] sm:$0xff] %v7472_v51 }
 0x4f9   :  { %9626 = vst [vmem:[#allocation122_spill] sm:$0xff] %v7455_v10  ;;  %1245 = vst.msk [vmem:[#allocation4 + $0x48] sm:$0xff] %vm9615_vm3, %v7455_v10  ;;  %v1126_v35 = vpop.xlane.xlu0 %1125 }
 0x4fa   :  { %v1165_v2 = vsel %vm1154_vm0, %v1148_v36, %v1126_v35 }
 0x4fb   :  { %v7470_v54 = vmax.f32 %v7459_v63, %v1165_v2  ;;  %v7487_v2 = vld [vmem:[#allocation4 + $0x60] sm:$0xff] }
 0x4fc   :  { %9632 = vst [vmem:[#allocation126_spill] sm:$0xff] %v7487_v2 }
 0x4fd   :  { %9628 = vst [vmem:[#allocation123_spill] sm:$0xff] %v7470_v54  ;;  %1246 = vst.msk [vmem:[#allocation4 + $0x50] sm:$0xff] %vm9630_vm11, %v7470_v54  ;;  %v1128_v37 = vpop.xlane.xlu0 %1127 }
 0x4fe   :  { %v1166_v35 = vsel %vm1154_vm0, %v1149_v39, %v1128_v37  ;;  %v7500_v37 = vpop.trf.xlu1  ;;  %vm9636_vm11 = vmmov %vm9615_vm3 }
 0x4ff   :  { %v7485_v36 = vmax.f32 %v7472_v51, %v1166_v35  ;;  %v7502_v35 = vld [vmem:[#allocation4 + $0x68] sm:$0xff]  ;;  %v1152_v51 = vsel %vm9639_vm15, %v7339_v47, %v7287_v8  ;;  %v1153_v8 = vsel %vm9611_vm5, %v7341_v7, %v7289_v4  ;;  %vm9644_vm15 = vmmov %vm9615_vm3 }
 0x500   :  { %9635 = vst [vmem:[#allocation128_spill] sm:$0xff] %v7502_v35 }
 0x501   :  { %9631 = vst [vmem:[#allocation125_spill] sm:$0xff] %v7485_v36  ;;  %1247 = vst.msk [vmem:[#allocation4 + $0x58] sm:$0xff] %vm9615_vm3, %v7485_v36  ;;  %v1130_v5 = vpop.xlane.xlu0 %1129 }
 0x502   :  { %v1167_v57 = vsel %vm1154_vm0, %v1150_v48, %v1130_v5  ;;  %v7515_v48 = vld [vmem:[#allocation4 + $0x70] sm:$0xff]  ;;  %v7524_v60 = vpop.trf.xlu1 }
 0x503   :  { %v7498_v39 = vmax.f32 %v7487_v2, %v1167_v57  ;;  %9638 = vst [vmem:[#allocation130_spill] sm:$0xff] %v7515_v48 }
 0x505   :  { %9634 = vst [vmem:[#allocation127_spill] sm:$0xff] %v7498_v39  ;;  %1248 = vst.msk [vmem:[#allocation4 + $0x60] sm:$0xff] %vm9636_vm11, %v7498_v39  ;;  %v1132_v3 = vpop.xlane.xlu0 %1131 }
 0x506   :  { %v1168_v5 = vsel %vm1154_vm0, %v1151_v41, %v1132_v3  ;;  %vm9642_vm11 = vmmov %vm9615_vm3 }
 0x507   :  { %v7513_v57 = vmax.f32 %v7502_v35, %v1168_v5  ;;  %v7530_v5 = vld [vmem:[#allocation4 + $0x78] sm:$0xff] }
 0x508   :  { %9641 = vst [vmem:[#allocation132_spill] sm:$0xff] %v7530_v5 }
 0x509   :  { %9637 = vst [vmem:[#allocation129_spill] sm:$0xff] %v7513_v57  ;;  %1249 = vst.msk [vmem:[#allocation4 + $0x68] sm:$0xff] %vm9615_vm3, %v7513_v57  ;;  %v1134_v15 = vpop.xlane.xlu0 %1133 }
 0x50a   :  { %v1169_v3 = vsel %vm1154_vm0, %v1152_v51, %v1134_v15  ;;  %v7543_v15 = vpop.trf.xlu1  ;;  %vm9647_vm3 = vmmov %vm9611_vm5 }
 0x50b   :  { %v7528_v41 = vmax.f32 %v7515_v48, %v1169_v3  ;;  %vm9648_vm5 = vmmov %vm9647_vm3 }
 0x50d   :  { %9640 = vst [vmem:[#allocation131_spill] sm:$0xff] %v7528_v41  ;;  %1250 = vst.msk [vmem:[#allocation4 + $0x70] sm:$0xff] %vm9642_vm11, %v7528_v41  ;;  %v1136_v58 = vpop.xlane.xlu0 %1135 }
 0x50e   :  { %v1170_v35 = vsel %vm1154_vm0, %v1153_v8, %v1136_v58  ;;  %v7554_v7 = vpop.trf.xlu1  ;;  %vm9649_vm11 = vmmov %vm9647_vm3 }
 0x50f   :  { %v7541_v51 = vmax.f32 %v7530_v5, %v1170_v35 }
 0x511   :  { %9643 = vst [vmem:[#allocation133_spill] sm:$0xff] %v7541_v51  ;;  %1251 = vst.msk [vmem:[#allocation4 + $0x78] sm:$0xff] %vm9644_vm15, %v7541_v51  ;;  %5351 = vmatprep.subr.mxu1 %v7541_v51 }
 0x512   :  { %5352 = vmatpush3.msra.mxu1 %v7541_v51  ;;  %v7562_v4 = vpop.trf.xlu1  ;;  %vm9656_vm15 = vmmov %vm9647_vm3 }
 0x513   :  { %5353 = vmatprep.subr.mxu1 %v7528_v41 }
 0x514   :  { %5354 = vmatpush3.msra.mxu1 %v7528_v41 }
 0x515   :  { %5355 = vmatprep.subr.mxu1 %v7513_v57 }
 0x516   :  { %5356 = vmatpush3.msra.mxu1 %v7513_v57  ;;  %v7570_v35 = vpop.trf.xlu1 }
 0x517   :  { %5357 = vmatprep.subr.mxu1 %v7498_v39 }
 0x518   :  { %5358 = vmatpush3.msra.mxu1 %v7498_v39 }
 0x519   :  { %5359 = vmatprep.subr.mxu1 %v7485_v36 }
 0x51a   :  { %5360 = vmatpush3.msra.mxu1 %v7485_v36  ;;  %v7578_v58 = vpop.trf.xlu1 }
 0x51b   :  { %5361 = vmatprep.subr.mxu1 %v7470_v54 }
 0x51c   :  { %5362 = vmatpush3.msra.mxu1 %v7470_v54 }
 0x51d   :  { %5363 = vmatprep.subr.mxu1 %v7455_v10 }
 0x51e   :  { %5364 = vmatpush3.msra.mxu1 %v7455_v10  ;;  %v7586_v3 = vpop.trf.xlu1 }
 0x51f   :  { %5365 = vmatprep.subr.mxu1 %v7442_v53 }
 0x520   :  { %5366 = vmatpush3.msra.mxu1 %v7442_v53 }
 0x521   :  { %5367 = vmatprep.subr.mxu1 %v7427_v6 }
 0x522   :  { %5368 = vmatpush3.msra.mxu1 %v7427_v6  ;;  %v7593_v5 = vpop.trf.xlu1 }
 0x523   :  { %5369 = vmatprep.subr.mxu1 %v7413_v20 }
 0x524   :  { %5370 = vmatpush3.msra.mxu1 %v7413_v20 }
 0x525   :  { %5371 = vmatprep.subr.mxu1 %v7402_v49 }
 0x526   :  { %5372 = vmatpush3.msra.mxu1 %v7402_v49  ;;  %v7598_v10 = vpop.trf.xlu1 }
 0x527   :  { %5373 = vmatprep.subr.mxu1 %v7390_v55 }
 0x528   :  { %5374 = vmatpush3.msra.mxu1 %v7390_v55 }
 0x529   :  { %5375 = vmatprep.subr.mxu1 %v7380_v34 }
 0x52a   :  { %5376 = vmatpush3.msra.mxu1 %v7380_v34 }
 0x52b   :  { %5377 = vmatprep.subr.mxu1 %v7370_v11 }
 0x52c   :  { %5378 = vmatpush3.msra.mxu1 %v7370_v11 }
 0x52d   :  { %5379 = vmatprep.subr.mxu1 %v7359_v59  ;;  %v1446_v8 = vpop.trf.xlu0 }
 0x52e   :  { %5380 = vmatpush3.msra.mxu1 %v7359_v59 }
 0x52f   :  { %5381 = vmatprep.subr.mxu1 %v7349_v12 }
 0x530   :  { %5382 = vmatpush3.msra.mxu1 %v7349_v12 }
 0x531   :  { %5384 = vmatmul.mubr.f32.vlgmr.msra.gmra.mxu1 %v6805_v14  ;;  %v1447_v47 = vpop.trf.xlu0  ;;  %v9393_v14 = vsub.f32 1.0, %v7598_v10 }
 0x532   :  { %v5839_v51 = vpack.i.bf16 %v1447_v47, %v1446_v8  ;;  %5386 = vmatprep.mubr.f32.mxu1 %v6808_v17  ;;  %v9399_v8 = vsub.f32 1.0, %v7524_v60 }
 0x534   :  { %5840 = vperm.xlu1 %5838, %v5839_v51  }
 0x535   :  { %5387 = vmatmul.mubr.f32.gmra.mxu1 %v6811_v18  ;;  %v1448_v57 = vpop.trf.xlu0 }
 0x536   :  { %5389 = vmatprep.mubr.f32.mxu1 %v6814_v19 }
 0x539   :  { %5390 = vmatmul.mubr.f32.gmra.mxu1 %v6817_v22  ;;  %v1449_v36 = vpop.trf.xlu0  ;;  %v9394_v22 = vsub.f32 1.0, %v7586_v3 }
 0x53a   :  { %v5833_v6 = vpack.i.bf16 %v1449_v36, %v1448_v57  ;;  %5392 = vmatprep.mubr.f32.mxu1 %v6820_v24  ;;  %v9396_v36 = vsub.f32 1.0, %v7554_v7 }
 0x53c   :  { %5834 = vperm.xlu0 %5832, %v5833_v6  }
 0x53d   :  { %5393 = vmatmul.mubr.f32.gmra.mxu1 %v6823_v25  ;;  %v1450_v17 = vpop.trf.xlu0 }
 0x53e   :  { %5395 = vmatprep.mubr.f32.mxu1 %v6826_v26 }
 0x540   :  { %2099 = vrot.lane.b32.xlu0 %v9393_v14, %s6310_s6 }
 0x541   :  { %5396 = vmatmul.mubr.f32.gmra.mxu1 %v6829_v27  ;;  %v1451_v18 = vpop.trf.xlu0  ;;  %v9645_v27 = vld [vmem:[#allocation45_spill] sm:$0xff] }
 0x542   :  { %v5844_v19 = vpack.i.bf16 %v1451_v18, %v1450_v17  ;;  %5398 = vmatprep.mubr.f32.mxu1 %v6832_v29  ;;  %v9395_v29 = vsub.f32 1.0, %v7570_v35 }
 0x544   :  { %1923 = vrot.lane.b32.xlu0 %v7598_v10, %s6310_s6  ;;  %5845 = vperm.xlu1 %5838, %v5844_v19  }
 0x545   :  { %5399 = vmatmul.mubr.f32.gmra.mxu1 %v6835_v30  ;;  %v1452_v24 = vpop.trf.xlu0  ;;  %v9646_v30 = vld [vmem:[#allocation46_spill] sm:$0xff] }
 0x546   :  { %5401 = vmatprep.mubr.f32.mxu1 %v6838_v31 }
 0x548   :  { %2095 = vrot.lane.b32.xlu0 %v9394_v22, %s6310_s6  ;;  %v1398_v22 = vsel %vm9647_vm3, %v7043_v1, %v7045_v13 }
 0x549   :  { %5402 = vmatmul.mubr.f32.gmra.mxu1 %v6841_v32  ;;  %v1453_v25 = vpop.trf.xlu0 }
 0x54a   :  { %v5849_v26 = vpack.i.bf16 %v1453_v25, %v1452_v24  ;;  %5404 = vmatprep.mubr.f32.mxu1 %v9645_v27  ;;  %v9401_v24 = vsub.f32 1.0, %v7481_v56  ;;  %v7645_v27 = vpop.trf.xlu1 }
 0x54c   :  { %1919 = vrot.lane.b32.xlu0 %v7586_v3, %s6310_s6  ;;  %5850 = vperm.xlu1 %5838, %v5849_v26  }
 0x54d   :  { %5405 = vmatmul.mubr.f32.gmra.mxu1 %v9646_v30  ;;  %v1454_v6 = vpop.trf.xlu0 }
 0x54e   :  { %2520 = vmatprep.mubr.bf16.mxu1 %v9601_v45 }
 0x550   :  { %2091 = vrot.lane.b32.xlu0 %v9395_v29, %s6310_s6 }
 0x551   :  { %v1455_v31 = vpop.trf.xlu0 }
 0x552   :  { %v5854_v32 = vpack.i.bf16 %v1455_v31, %v1454_v6  ;;  %v9402_v6 = vsub.f32 1.0, %v7438_v43  ;;  %v9397_v31 = vsub.f32 1.0, %v7645_v27 }
 0x554   :  { %1915 = vrot.lane.b32.xlu0 %v7570_v35, %s6310_s6  ;;  %5855 = vperm.xlu1 %5838, %v5854_v32   ;;  %v9407_v32 = vsub.f32 1.0, %v7398_v42 }
 0x555   :  { %v1456_v57 = vpop.trf.xlu0 }
 0x558   :  { %2087 = vrot.lane.b32.xlu0 %v9396_v36, %s6310_s6 }
 0x559   :  { %v1457_v47 = vpop.trf.xlu0 }
 0x55a   :  { %v5859_v51 = vpack.i.bf16 %v1457_v47, %v1456_v57  ;;  %v9398_v57 = vsub.f32 1.0, %v7593_v5  ;;  %v9400_v47 = vsub.f32 1.0, %v7578_v58 }
 0x55c   :  { %1911 = vrot.lane.b32.xlu0 %v7554_v7, %s6310_s6  ;;  %5860 = vperm.xlu1 %5838, %v5859_v51   ;;  %v9403_v51 = vsub.f32 1.0, %v7562_v4 }
 0x55d   :  { %v1458_v17 = vpop.trf.xlu0 }
 0x560   :  { %2083 = vrot.lane.b32.xlu0 %v9399_v8, %s6310_s6 }
 0x561   :  { %v1459_v18 = vpop.trf.xlu0 }
 0x562   :  { %v5864_v19 = vpack.i.bf16 %v1459_v18, %v1458_v17  ;;  %v9405_v17 = vsub.f32 1.0, %v7543_v15  ;;  %v9406_v18 = vsub.f32 1.0, %v7500_v37 }
 0x564   :  { %1907 = vrot.lane.b32.xlu0 %v7524_v60, %s6310_s6  ;;  %5865 = vperm.xlu1 %5838, %v5864_v19   ;;  %v9404_v19 = vsub.f32 1.0, %v7457_v9 }
 0x565   :  { %v1460_v25 = vpop.trf.xlu0 }
 0x568   :  { %2079 = vrot.lane.b32.xlu0 %v9401_v24, %s6310_s6 }
 0x569   :  { %v1461_v26 = vpop.trf.xlu0 }
 0x56a   :  { %v5869_v30 = vpack.i.bf16 %v1461_v26, %v1460_v25  ;;  %v9408_v25 = vsub.f32 1.0, %v7415_v23 }
 0x56c   :  { %5870 = vperm.xlu1 %5838, %v5869_v30   ;;  %1903 = vrot.lane.b32.xlu0 %v7481_v56, %s6310_s6 }
 0x570   :  { %2075 = vrot.lane.b32.xlu0 %v9402_v6, %s6310_s6  ;;  %2101 = vrot.lane.b32.xlu1 %v9397_v31, %s6310_s6  ;;  %v1414_v31 = vsel %vm1154_vm0, %v1398_v22, %v7041_v61 }
 0x574   :  { %1899 = vrot.lane.b32.xlu0 %v7438_v43, %s6310_s6  ;;  %1925 = vrot.lane.b32.xlu1 %v7645_v27, %s6310_s6 }
 0x578   :  { %2071 = vrot.lane.b32.xlu0 %v9407_v32, %s6310_s6  ;;  %2097 = vrot.lane.b32.xlu1 %v9398_v57, %s6310_s6  ;;  %v1397_v57 = vsel %vm9648_vm5, %v7051_v50, %v7047_v0  ;;  %v9653_v32 = vld [vmem:[#allocation84_spill] sm:$0xff]  ;;  %vm9671_vm5 = vmmov %vm9647_vm3 }
 0x579   :  { %v1413_v1 = vsel %vm1154_vm0, %v1397_v57, %v7054_v46 }
 0x57c   :  { %1895 = vrot.lane.b32.xlu0 %v7398_v42, %s6310_s6  ;;  %1921 = vrot.lane.b32.xlu1 %v7593_v5, %s6310_s6 }
 0x580   :  { %2093 = vrot.lane.b32.xlu1 %v9400_v47, %s6310_s6  ;;  %v1400_v47 = vsel %vm9649_vm11, %v7056_v62, %v7058_v52  ;;  %vm9681_vm11 = vmmov %vm9647_vm3 }
 0x581   :  { %v1416_v0 = vsel %vm1154_vm0, %v1400_v47, %v7106_v40  ;;  %v9654_v47 = vld [vmem:[#allocation88_spill] sm:$0xff] }
 0x584   :  { %1917 = vrot.lane.b32.xlu1 %v7578_v58, %s6310_s6 }
 0x588   :  { %2089 = vrot.lane.b32.xlu1 %v9403_v51, %s6310_s6 }
 0x58c   :  { %1913 = vrot.lane.b32.xlu1 %v7562_v4, %s6310_s6 }
 0x590   :  { %2085 = vrot.lane.b32.xlu1 %v9405_v17, %s6310_s6  ;;  %v9651_v17 = vld [vmem:[#allocation81_spill] sm:$0xff] }
 0x594   :  { %1909 = vrot.lane.b32.xlu1 %v7543_v15, %s6310_s6 }
 0x598   :  { %2081 = vrot.lane.b32.xlu1 %v9406_v18, %s6310_s6  ;;  %v9652_v18 = vld [vmem:[#allocation98_spill] sm:$0xff] }
 0x599   :  { %v1420_v40 = vsel %vm1154_vm0, %v9653_v32, %v9652_v18 }
 0x59c   :  { %1905 = vrot.lane.b32.xlu1 %v7500_v37, %s6310_s6 }
 0x5a0   :  { %2077 = vrot.lane.b32.xlu1 %v9404_v19, %s6310_s6 }
 0x5a4   :  { %1901 = vrot.lane.b32.xlu1 %v7457_v9, %s6310_s6 }
 0x5a8   :  { %2073 = vrot.lane.b32.xlu1 %v9408_v25, %s6310_s6  ;;  %v9658_v25 = vld [vmem:[#allocation79_spill] sm:$0xff] }
 0x5ac   :  { %1897 = vrot.lane.b32.xlu1 %v7415_v23, %s6310_s6 }
 0x5af   :  { %v5841_v29 = vpop.permute.xlu1 %5840 }
 0x5b7   :  { %v7709_v26 = vpop.permute.xlu0 %5834 }
 0x5bb   :  { %v7711_v30 = vpop.permute.xlu0 %2099 }
 0x5bf   :  { %v7713_v14 = vpop.permute.xlu0 %1923  ;;  %v7730_v19 = vpop.permute.xlu1 %5845 }
 0x5c3   :  { %v7726_v24 = vpop.permute.xlu0 %2095 }
 0x5c7   :  { %v7734_v62 = vpop.permute.xlu0 %1919 }
 0x5f1   :  { %v5385_v36 = vpop.f32.mrf.mxu1 }
 0x5f2   :  { %v1463_v8 = vsub.f32 %v1414_v31, %v5385_v36  ;;  %v9650_v31 = vld [vmem:[#allocation96_spill] sm:$0xff] }
 0x5f3   :  { %v1318_v6 = vpop.f32.mrf.mxu1  ;;  %v1418_v46 = vsel %vm1154_vm0, %v9651_v17, %v9650_v31 }
 0x5f4   :  { %v1480_v13 = vmul.f32 1.442695, %v1463_v8  ;;  %v1462_v51 = vsub.f32 %v1413_v1, %v1318_v6  ;;  %v7739_v6 = vpop.permute.xlu1 %5850 }
 0x5f5   :  { %v5388_v61 = vpop.f32.mrf.mxu1 }
 0x5f6   :  { %5900 = vpow2.f32 %v1480_v13  ;;  %v1478_v22 = vmul.f32 1.442695, %v1462_v51  ;;  %v1465_v50 = vsub.f32 %v1416_v0, %v5388_v61  ;;  %v9655_v61 = vld [vmem:[#allocation87_spill] sm:$0xff]  ;;  %v9657_v0 = vld [vmem:[#allocation80_spill] sm:$0xff] }
 0x5f7   :  { %v1328_v36 = vpop.f32.mrf.mxu1  ;;  %v1415_v49 = vsel %vm1154_vm0, %v9658_v25, %v9657_v0  ;;  %v5843_v25 = vunpack.i.h.bf16 %v5841_v29  ;;  %v9663_v0 = vld [vmem:[#allocation89_spill] sm:$0xff] }
 0x5f8   :  { %5902 = vpow2.f32 %v1478_v22  ;;  %v1484_v57 = vmul.f32 1.442695, %v1465_v50  ;;  %v1406_v22 = vsel %vm9656_vm15, %v9655_v61, %v9654_v47  ;;  %v1464_v50 = vsub.f32 %v1415_v49, %v1328_v36  ;;  %v7755_v38 = vpop.permute.xlu1 %5855  ;;  %v9661_v61 = vld [vmem:[#allocation100_spill] sm:$0xff]  ;;  %v9662_v36 = vld [vmem:[#allocation90_spill] sm:$0xff]  ;;  %vm9689_vm15 = vmmov %vm9647_vm3 }
 0x5f9   :  { %v5391_v52 = vpop.f32.mrf.mxu1  ;;  %v1422_v12 = vsel %vm1154_vm0, %v1406_v22, %v9661_v61  ;;  %v1405_v41 = vsel %vm9647_vm3, %v9663_v0, %v9662_v36  ;;  %v9665_v22 = vld [vmem:[#allocation91_spill] sm:$0xff]  ;;  %v9668_v61 = vld [vmem:[#allocation82_spill] sm:$0xff]  ;;  %v9669_v36 = vld [vmem:[#allocation93_spill] sm:$0xff] }
 0x5fa   :  { %v1467_v8 = vsub.f32 %v1418_v46, %v5391_v52  ;;  %v7750_v52 = vpop.permute.xlu0 %2091  ;;  %v9659_v46 = vld [vmem:[#allocation86_spill] sm:$0xff]  ;;  %v9670_v0 = vld [vmem:[#allocation92_spill] sm:$0xff] }
 0x5fb   :  { %v1338_v1 = vpop.f32.mrf.mxu1 }
 0x5fc   :  { %v1488_v13 = vmul.f32 1.442695, %v1467_v8  ;;  %v9660_v8 = vld [vmem:[#allocation85_spill] sm:$0xff] }
 0x5fd   :  { %v5394_v51 = vpop.f32.mrf.mxu1  ;;  %v1419_v34 = vsel %vm1154_vm0, %v9660_v8, %v9659_v46  ;;  %v5842_v46 = vunpack.i.l.bf16 %v5841_v29  ;;  %v9667_v29 = vld [vmem:[#allocation83_spill] sm:$0xff] }
 0x5fe   :  { %5904 = vpow2.f32 %v1488_v13  ;;  %v1469_v17 = vsub.f32 %v1420_v40, %v5394_v51 }
 0x5ff   :  { %5906 = vpow2.f32 %v1484_v57  ;;  %v1348_v31 = vpop.f32.mrf.mxu1  ;;  %v1482_v57 = vmul.f32 1.442695, %v1464_v50  ;;  %v7770_v50 = vpop.permute.xlu1 %5860 }
 0x600   :  { %v1492_v32 = vmul.f32 1.442695, %v1469_v17  ;;  %v1468_v18 = vsub.f32 %v1419_v34, %v1348_v31  ;;  %v7764_v31 = vpop.permute.xlu0 %1915 }
 0x601   :  { %v5397_v47 = vpop.f32.mrf.mxu1 }
 0x602   :  { %5908 = vpow2.f32 %v1492_v32  ;;  %v1490_v13 = vmul.f32 1.442695, %v1468_v18  ;;  %v1471_v51 = vsub.f32 %v1422_v12, %v5397_v47  ;;  %v1421_v32 = vsel %vm1154_vm0, %v1405_v41, %v9665_v22 }
 0x603   :  { %v5901_v40 = vpop.eup %5900  ;;  %v1358_v49 = vpop.f32.mrf.mxu1  ;;  %v5848_v41 = vunpack.i.h.bf16 %v7730_v19 }
 0x604   :  { %v7762_v17 = vmul.f32 %v5901_v40, %v5843_v25  ;;  %5910 = vpow2.f32 %v1490_v13  ;;  %v1496_v8 = vmul.f32 1.442695, %v1471_v51  ;;  %v1470_v12 = vsub.f32 %v1421_v32, %v1358_v49 }
 0x605   :  { %v5903_v34 = vpop.eup %5902  ;;  %5912 = vpow2.f32 %v1482_v57  ;;  %v1417_v25 = vsel %vm1154_vm0, %v9668_v61, %v9667_v29  ;;  %v1408_v57 = vsel %vm9671_vm5, %v9670_v0, %v9669_v36  ;;  %v5837_v29 = vunpack.i.h.bf16 %v7709_v26  ;;  %vm9702_vm5 = vmmov %vm9647_vm3 }
 0x606   :  { %9664 = vst [vmem:[#allocation45_spill] sm:$0xff] %v7762_v17  ;;  %v7768_v18 = vmul.f32 %v5903_v34, %v5842_v46  ;;  %v1656_v47 = vmul.f32 %v7415_v23, %v7762_v17  ;;  %5914 = vpow2.f32 %v1496_v8  ;;  %v1466_v51 = vsub.f32 %v1417_v25, %v1338_v1  ;;  %v7783_v46 = vpop.permute.xlu0 %2087  ;;  %v7791_v1 = vpop.permute.xlu1 %5865  ;;  %v9674_v25 = vld [vmem:[#allocation102_spill] sm:$0xff] }
 0x607   :  { %v1494_v40 = vmul.f32 1.442695, %v1470_v12  ;;  %v9672_v34 = vsub.f32 1.0, %v7415_v23  ;;  %v5853_v12 = vunpack.i.h.bf16 %v7739_v6 }
 0x608   :  { %9666 = vst [vmem:[#allocation46_spill] sm:$0xff] %v7768_v18  ;;  %1678 = vperm.xlu0 %5832, %v1656_v47   ;;  %v1655_v13 = vmul.f32 %v7398_v42, %v7768_v18  ;;  %v5400_v47 = vpop.f32.mrf.mxu1  ;;  %v1486_v61 = vmul.f32 1.442695, %v1466_v51  ;;  %v9679_v51 = vld [vmem:[#allocation95_spill] sm:$0xff] }
 0x609   :  { %v1768_v8 = vmul.f32 %v9672_v34, %v7762_v17  ;;  %5916 = vpow2.f32 %v1494_v40  ;;  %v9677_v34 = vsub.f32 1.0, %v7500_v37  ;;  %v9680_v40 = vld [vmem:[#allocation94_spill] sm:$0xff] }
 0x60a   :  { %1673 = vperm.xlu1 %5838, %v1655_v13   ;;  %v1424_v13 = vsel %vm1154_vm0, %v1408_v57, %v9674_v25  ;;  %v1407_v2 = vsel %vm9681_vm11, %v9680_v40, %v9679_v51  ;;  %v7809_v57 = vpop.permute.xlu0 %1911  ;;  %v7814_v25 = vpop.permute.xlu1 %5870  ;;  %5918 = vpow2.f32 %v1486_v61  ;;  %v5858_v61 = vunpack.i.h.bf16 %v7755_v38  ;;  %vm9710_vm11 = vmmov %vm9647_vm3 }
 0x60b   :  { %v5905_v49 = vpop.eup %5904  ;;  %v1473_v23 = vsub.f32 %v1424_v13, %v5400_v47  ;;  %v5852_v47 = vunpack.i.l.bf16 %v7739_v6  ;;  %v5836_v6 = vunpack.i.l.bf16 %v7709_v26  ;;  %v9686_v40 = vsub.f32 1.0, %v7457_v9 }
 0x60c   :  { %v5907_v22 = vpop.eup %5906  ;;  %v7788_v32 = vmul.f32 %v5905_v49, %v5848_v41  ;;  %1790 = vperm.xlu0 %5832, %v1768_v8   ;;  %v9676_v41 = vsub.f32 1.0, %v7398_v42  ;;  %v9682_v42 = vld [vmem:[#allocation97_spill] sm:$0xff] }
 0x60d   :  { %v7796_v0 = vmul.f32 %v5907_v22, %v5837_v29  ;;  %v1368_v22 = vpop.f32.mrf.mxu1  ;;  %v1423_v29 = vsel %vm1154_vm0, %v1407_v2, %v9682_v42 }
 0x60e   :  { %9673 = vst [vmem:[#allocation96_spill] sm:$0xff] %v7788_v32  ;;  %v1767_v49 = vmul.f32 %v9676_v41, %v7768_v18  ;;  %v1772_v48 = vmul.f32 %v9677_v34, %v7788_v32 }
 0x60f   :  { %v5909_v36 = vpop.eup %5908  ;;  %9675 = vst [vmem:[#allocation81_spill] sm:$0xff] %v7796_v0  ;;  %v1658_v13 = vmul.f32 %v7457_v9, %v7796_v0  ;;  %v1770_v42 = vmul.f32 %v9686_v40, %v7796_v0 }
 0x610   :  { %v7804_v8 = vmul.f32 %v5909_v36, %v5853_v12  ;;  %1785 = vperm.xlu0 %5832, %v1767_v49   ;;  %1810 = vperm.xlu1 %5838, %v1772_v48   ;;  %v1500_v12 = vmul.f32 1.442695, %v1473_v23  ;;  %v9683_v36 = vsub.f32 1.0, %v7543_v15  ;;  %v1472_v48 = vsub.f32 %v1423_v29, %v1368_v22  ;;  %v2084_v49 = vpop.permute.xlu0 %2083  ;;  %v9688_v22 = vld [vmem:[#allocation99_spill] sm:$0xff]  ;;  %v7834_v29 = vpop.permute.xlu1 %2101 }
 0x611   :  { %v5911_v39 = vpop.eup %5910 }
 0x612   :  { %9678 = vst [vmem:[#allocation98_spill] sm:$0xff] %v7804_v8  ;;  %v1774_v41 = vmul.f32 %v9683_v36, %v7804_v8  ;;  %v5913_v34 = vpop.eup %5912  ;;  %v7821_v51 = vmul.f32 %v5911_v39, %v5852_v47  ;;  %5920 = vpow2.f32 %v1500_v12  ;;  %v1498_v36 = vmul.f32 1.442695, %v1472_v48  ;;  %v9687_v47 = vld [vmem:[#allocation104_spill] sm:$0xff]  ;;  %v5403_v12 = vpop.f32.mrf.mxu1 }
 0x613   :  { %v5915_v2 = vpop.eup %5914  ;;  %v7825_v23 = vmul.f32 %v5913_v34, %v5836_v6  ;;  %v1410_v26 = vsel %vm9689_vm15, %v9688_v22, %v9687_v47  ;;  %v5857_v48 = vunpack.i.l.bf16 %v7755_v38  ;;  %v9691_v6 = vld [vmem:[#allocation108_spill] sm:$0xff]  ;;  %v9694_v38 = vsub.f32 1.0, %v7438_v43  ;;  %vm8389_vm15 = vmpackc.low %vm6667_vm12, %vm6656_vm10 }
 0x614   :  { %9684 = vst [vmem:[#allocation84_spill] sm:$0xff] %v7821_v51  ;;  %1688 = vperm.xlu0 %5832, %v1658_v13   ;;  %1820 = vperm.xlu1 %5838, %v1774_v41   ;;  %v2125_v39 = vmul.f32 %v2084_v49, %v7821_v51  ;;  %v7836_v13 = vmul.f32 %v5915_v2, %v5858_v61  ;;  %v9417_v41 = vmov 1   ;;  %5922 = vpow2.f32 %v1498_v36  ;;  %v1378_v47 = vpop.f32.mrf.mxu1 }
 0x615   :  { %9685 = vst [vmem:[#allocation88_spill] sm:$0xff] %v7825_v23  ;;  %v1657_v9 = vmul.f32 %v7438_v43, %v7825_v23  ;;  %v1426_v49 = vsel %vm1154_vm0, %v1410_v26, %v9691_v6  ;;  %v9692_v2 = vsub.f32 1.0, %v7562_v4  ;;  %v1769_v36 = vmul.f32 %v9694_v38, %v7825_v23  ;;  %v9695_v26 = vld [vmem:[#allocation103_spill] sm:$0xff] }
 0x616   :  { %9690 = vst [vmem:[#allocation87_spill] sm:$0xff] %v7836_v13  ;;  %v5917_v34 = vpop.eup %5916  ;;  %v1475_v40 = vsub.f32 %v1426_v49, %v5403_v12  ;;  %v9696_v12 = vld [vmem:[#allocation101_spill] sm:$0xff]  ;;  %v5847_v6 = vunpack.i.l.bf16 %v7730_v19  ;;  %v9699_v43 = vmov 1   ;;  %v1660_v38 = vmul.f32 %v7500_v37, %v7788_v32 }
 0x617   :  { %v1776_v61 = vmul.f32 %v9692_v2, %v7836_v13  ;;  %v5919_v22 = vpop.eup %5918  ;;  %v5863_v19 = vunpack.i.h.bf16 %v7770_v50 }
 0x618   :  { %1800 = vperm.xlu0 %5832, %v1770_v42   ;;  %5874 = vset.pattern.permute.xlu1 %v9417_v41  ;;  %v7847_v42 = vmul.f32 %v5917_v34, %v5857_v48  ;;  %v1504_v49 = vmul.f32 1.442695, %v1475_v40  ;;  %v9697_v34 = vld [vmem:[#allocation105_spill] sm:$0xff]  ;;  %v7863_v41 = vmul.f32 %v5919_v22, %v5847_v6  ;;  %v9701_v22 = vld [vmem:[#allocation106_spill] sm:$0xff] }
 0x619   :  { %2167 = vperm.xlu1 %5874, %v2125_v39   ;;  %v7850_v39 = vpop.permute.xlu1 %1925 }
 0x61a   :  { %9693 = vst [vmem:[#allocation80_spill] sm:$0xff] %v7847_v42  ;;  %9698 = vst [vmem:[#allocation79_spill] sm:$0xff] %v7863_v41  ;;  %5924 = vpow2.f32 %v1504_v49  ;;  %v1659_v37 = vmul.f32 %v7481_v56, %v7863_v41  ;;  %v5862_v49 = vunpack.i.l.bf16 %v7770_v50 }
 0x61c   :  { %1683 = vperm.xlu0 %5832, %v1657_v9   ;;  %v1409_v9 = vsel %vm9647_vm3, %v9696_v12, %v9695_v26  ;;  %vm8419_vm3 = vmpackc.low %vm6689_vm1, %vm6678_vm14 }
 0x61d   :  { %5875 = vset.pattern.permute.xlu1 %v9601_v45  ;;  %v1425_v48 = vsel %vm1154_vm0, %v1409_v9, %v9697_v34  ;;  %v7869_v40 = vpop.permute.xlu1 %2097  ;;  %v5406_v9 = vpop.f32.mrf.mxu1  ;;  %v9704_v34 = vld [vmem:[#allocation112_spill] sm:$0xff] }
 0x61e   :  { %1830 = vperm.xlu1 %5875, %v1776_v61   ;;  %v1474_v2 = vsub.f32 %v1425_v48, %v1378_v47  ;;  %v2127_v61 = vmul.f32 %v7783_v46, %v7847_v42  ;;  %v1951_v47 = vmul.f32 %v7809_v57, %v7847_v42  ;;  %v9700_v46 = vld [vmem:[#allocation110_spill] sm:$0xff] }
 0x61f   :  { %v5921_v54 = vpop.eup %5920  ;;  %v1412_v26 = vsel %vm9702_vm5, %v9701_v22, %v9700_v46  ;;  %vm8446_vm5 = vmpackc.low %vm6711_vm9, %vm6700_vm4 }
 0x620   :  { %1795 = vperm.xlu0 %5832, %v1769_v36   ;;  %v1502_v36 = vmul.f32 1.442695, %v1474_v2  ;;  %v7876_v12 = vmul.f32 %v5921_v54, %v5863_v19  ;;  %v1428_v48 = vsel %vm1154_vm0, %v1412_v26, %v9704_v34  ;;  %v9705_v54 = vsub.f32 1.0, %v7481_v56  ;;  %v1388_v56 = vpop.f32.mrf.mxu1  ;;  %v9711_v34 = vld [vmem:[#allocation111_spill] sm:$0xff] }
 0x621   :  { %v5923_v6 = vpop.eup %5922  ;;  %v7883_v57 = vpop.permute.xlu1 %1921  ;;  %v1477_v2 = vsub.f32 %v1428_v48, %v5406_v9  ;;  %v9709_v9 = vld [vmem:[#allocation107_spill] sm:$0xff] }
 0x622   :  { %5878 = vset.pattern.permute.xlu1 %v9699_v43  ;;  %9703 = vst [vmem:[#allocation86_spill] sm:$0xff] %v7876_v12  ;;  %5926 = vpow2.f32 %v1502_v36  ;;  %v1662_v36 = vmul.f32 %v7543_v15, %v7804_v8 }
 0x623   :  { %2177 = vperm.xlu1 %5878, %v2127_v61   ;;  %v1771_v61 = vmul.f32 %v9705_v54, %v7863_v41  ;;  %v1508_v50 = vmul.f32 1.442695, %v1477_v2 }
 0x624   :  { %1698 = vperm.xlu0 %5832, %v1660_v38   ;;  %v9706_v38 = vsub.f32 1.0, %v7578_v58 }
 0x625   :  { %v7898_v22 = vpop.permute.xlu1 %2093  ;;  %5928 = vpow2.f32 %v1508_v50 }
 0x626   :  { %v1778_v19 = vmul.f32 %v9706_v38, %v7876_v12 }
 0x627   :  { %2001 = vperm.xlu1 %5878, %v1951_v47   ;;  %v7891_v47 = vmul.f32 %v5923_v6, %v5862_v49  ;;  %v5925_v26 = vpop.eup %5924  ;;  %v5868_v49 = vunpack.i.h.bf16 %v7791_v1 }
 0x628   :  { %1693 = vperm.xlu0 %5832, %v1659_v37   ;;  %v9708_v37 = vld [vmem:[#allocation109_spill] sm:$0xff] }
 0x629   :  { %9707 = vst [vmem:[#allocation85_spill] sm:$0xff] %v7891_v47  ;;  %v2129_v46 = vmul.f32 %v7750_v52, %v7891_v47  ;;  %v1411_v6 = vsel %vm9710_vm11, %v9709_v9, %v9708_v37  ;;  %v1661_v52 = vmul.f32 %v7524_v60, %v7821_v51  ;;  %v1953_v2 = vmul.f32 %v7764_v31, %v7891_v47  ;;  %v1918_v38 = vpop.permute.xlu1 %1917  ;;  %vm8473_vm11 = vmpackc.low %vm6733_vm2, %vm6722_vm13 }
 0x62a   :  { %v1427_v15 = vsel %vm1154_vm0, %v1411_v6, %v9711_v34  ;;  %v7911_v54 = vmul.f32 %v5925_v26, %v5868_v49  ;;  %v1664_v31 = vmul.f32 %v7562_v4, %v7836_v13  ;;  %v5873_v49 = vunpack.i.h.bf16 %v7814_v25  ;;  %vm8373_vm0 = vmpackc.low %vm6645_vm8, %vm6636_vm7 }
 0x62b   :  { %5879 = vset.pattern.permute.xlu1 %v9601_v45  ;;  %v1476_v48 = vsub.f32 %v1427_v15, %v1388_v56  ;;  %v9714_v56 = vsub.f32 1.0, %v7593_v5 }
 0x62c   :  { %1805 = vperm.xlu0 %5832, %v1771_v61   ;;  %1840 = vperm.xlu1 %5879, %v1778_v19   ;;  %9712 = vst [vmem:[#allocation100_spill] sm:$0xff] %v7911_v54  ;;  %v9713_v19 = vsub.f32 1.0, %v7524_v60 }
 0x62d   :  { %v1780_v37 = vmul.f32 %v9714_v56, %v7911_v54  ;;  %v2090_v26 = vpop.permute.xlu1 %2089  ;;  %v9719_v56 = vsub.f32 1.0, %v7554_v7 }
 0x62e   :  { %v1773_v50 = vmul.f32 %v9713_v19, %v7821_v51  ;;  %v2128_v6 = vmul.f32 %v2090_v26, %v7836_v13  ;;  %v1663_v19 = vmul.f32 %v7554_v7, %v7847_v42 }
 0x62f   :  { %v5927_v61 = vpop.eup %5926 }
 0x630   :  { %1708 = vperm.xlu0 %5832, %v1662_v36   ;;  %5882 = vset.pattern.permute.xlu1 %v9699_v43  ;;  %v5867_v36 = vunpack.i.l.bf16 %v7791_v1 }
 0x631   :  { %2187 = vperm.xlu1 %5882, %v2129_v46   ;;  %v1506_v46 = vmul.f32 1.442695, %v1476_v48  ;;  %v1914_v34 = vpop.permute.xlu1 %1913  ;;  %v9717_v48 = vsub.f32 1.0, %v7645_v27 }
 0x632   :  { %v7920_v9 = vmul.f32 %v5927_v61, %v5867_v36  ;;  %v5929_v1 = vpop.eup %5928 }
 0x633   :  { %5930 = vpow2.f32 %v1506_v46  ;;  %v7933_v15 = vmul.f32 %v5929_v1, %v5873_v49  ;;  %v1665_v49 = vmul.f32 %v7570_v35, %v7891_v47 }
 0x634   :  { %1703 = vperm.xlu0 %5832, %v1661_v52   ;;  %9715 = vst [vmem:[#allocation90_spill] sm:$0xff] %v7920_v9  ;;  %v2131_v60 = vmul.f32 %v7726_v24, %v7920_v9  ;;  %v1955_v4 = vmul.f32 %v7734_v62, %v7920_v9  ;;  %v1952_v52 = vmul.f32 %v1914_v34, %v7836_v13  ;;  %v1908_v24 = vpop.permute.xlu0 %1907  ;;  %v5872_v62 = vunpack.i.l.bf16 %v7814_v25 }
 0x635   :  { %2011 = vperm.xlu1 %5882, %v1953_v2   ;;  %9716 = vst [vmem:[#allocation89_spill] sm:$0xff] %v7933_v15  ;;  %v1782_v2 = vmul.f32 %v9717_v48, %v7933_v15  ;;  %v2134_v36 = vmul.f32 %v7834_v29, %v7933_v15  ;;  %v1949_v29 = vmul.f32 %v1908_v24, %v7821_v51 }
 0x636   :  { %v1668_v48 = vmul.f32 %v7593_v5, %v7911_v54  ;;  %v1956_v5 = vmul.f32 %v7883_v57, %v7911_v54 }
 0x638   :  { %1815 = vperm.xlu0 %5832, %v1773_v50   ;;  %v2080_v46 = vpop.permute.xlu0 %2079 }
 0x639   :  { %5883 = vset.pattern.permute.xlu1 %v9601_v45  ;;  %v2123_v7 = vmul.f32 %v2080_v46, %v7863_v41  ;;  %v9420_v46 = vmov 2  }
 0x63a   :  { %1850 = vperm.xlu1 %5883, %v1780_v37   ;;  %v1775_v37 = vmul.f32 %v9719_v56, %v7847_v42  ;;  %v1667_v56 = vmul.f32 %v7586_v3, %v7920_v9 }
 0x63c   :  { %1718 = vperm.xlu0 %5832, %v1664_v31   ;;  %v1666_v31 = vmul.f32 %v7578_v58, %v7876_v12  ;;  %v1904_v26 = vpop.permute.xlu0 %1903 }
 0x63d   :  { %v1947_v58 = vmul.f32 %v1904_v26, %v7863_v41  ;;  %v1188_v26 = vsub.f32 %v7351_v28, %v7359_v59 }
 0x63e   :  { %5886 = vset.pattern.permute.xlu1 %v9699_v43 }
 0x63f   :  { %2197 = vperm.xlu1 %5886, %v2131_v60   ;;  %v2130_v60 = vmul.f32 %v7898_v22, %v7876_v12 }
 0x640   :  { %5876 = vset.pattern.permute.xlu0 %v9699_v43  ;;  %v5931_v61 = vpop.eup %5930  ;;  %v2076_v1 = vpop.permute.xlu0 %2075 }
 0x641   :  { %2182 = vperm.xlu0 %5876, %v2128_v6   ;;  %v7944_v50 = vmul.f32 %v5931_v61, %v5872_v62  ;;  %v2121_v22 = vmul.f32 %v2076_v1, %v7825_v23  ;;  %v2132_v62 = vmul.f32 %v7869_v40, %v7911_v54  ;;  %v9721_v40 = vsub.f32 1.0, %v7586_v3 }
 0x642   :  { %v1958_v3 = vmul.f32 %v7850_v39, %v7933_v15 }
 0x643   :  { %2021 = vperm.xlu1 %5886, %v1955_v4   ;;  %9718 = vst [vmem:[#allocation91_spill] sm:$0xff] %v7944_v50  ;;  %v1957_v25 = vmul.f32 %v7713_v14, %v7944_v50  ;;  %v1954_v14 = vmul.f32 %v1918_v38, %v7876_v12  ;;  %v9720_v4 = vsub.f32 1.0, %v7570_v35  ;;  %v1779_v57 = vmul.f32 %v9721_v40, %v7920_v9 }
 0x644   :  { %v1900_v6 = vpop.permute.xlu0 %1899  ;;  %v1669_v28 = vmul.f32 %v7598_v10, %v7944_v50 }
 0x645   :  { %2006 = vperm.xlu0 %5876, %v1952_v52   ;;  %v1777_v34 = vmul.f32 %v9720_v4, %v7891_v47  ;;  %v7970_v52 = vpop.permute.xlu1 %2085  ;;  %v1945_v38 = vmul.f32 %v1900_v6, %v7825_v23 }
 0x647   :  { %5887 = vset.pattern.permute.xlu1 %v9601_v45 }
 0x648   :  { %1860 = vperm.xlu1 %5887, %v1782_v2   ;;  %v2072_v24 = vpop.permute.xlu0 %2071 }
 0x649   :  { %5877 = vset.pattern.permute.xlu0 %v9601_v45  ;;  %v2119_v2 = vmul.f32 %v2072_v24, %v7768_v18  ;;  %v7976_v61 = vpop.permute.xlu1 %1909 }
 0x64a   :  { %1713 = vperm.xlu0 %5877, %v1663_v19  }
 0x64c   :  { %5888 = vset.pattern.permute.xlu1 %v9699_v43  ;;  %v1896_v19 = vpop.permute.xlu0 %1895 }
 0x64d   :  { %2212 = vperm.xlu1 %5888, %v2134_v36   ;;  %v1943_v35 = vmul.f32 %v1896_v19, %v7768_v18  ;;  %v7982_v36 = vpop.permute.xlu1 %2081 }
 0x64e   :  { %1825 = vperm.xlu0 %5877, %v1775_v37  }
 0x651   :  { %2031 = vperm.xlu1 %5888, %v1957_v25   ;;  %v7990_v37 = vpop.permute.xlu1 %1905 }
 0x652   :  { %1728 = vperm.xlu0 %5877, %v1666_v31   ;;  %v1670_v31 = vmul.f32 %v7645_v27, %v7933_v15  ;;  %v1189_v27 = vsub.f32 %v7361_v44, %v7370_v11  ;;  %v9724_v44 = vsub.f32 1.0, %v7598_v10 }
 0x654   :  { %v1207_v39 = vmul.f32 1.442695, %v1189_v27  ;;  %v1781_v11 = vmul.f32 %v9724_v44, %v7944_v50  ;;  %v9744_v44 = vld [vmem:[#allocation113_spill] sm:$0xff] }
 0x655   :  { %1991 = vperm.xlu1 %5888, %v1949_v29   ;;  %v7998_v25 = vpop.permute.xlu1 %2077 }
 0x656   :  { %5880 = vset.pattern.permute.xlu0 %v9699_v43 }
 0x657   :  { %2192 = vperm.xlu0 %5880, %v2130_v60  }
 0x659   :  { %2157 = vperm.xlu1 %5888, %v2123_v7   ;;  %v8005_v29 = vpop.permute.xlu1 %1901  ;;  %v1205_v7 = vmul.f32 1.442695, %v1188_v26 }
 0x65b   :  { %2016 = vperm.xlu0 %5880, %v1954_v14   ;;  %5932 = vpow2.f32 %v1205_v7  ;;  %v1191_v14 = vsub.f32 %v7382_v21, %v7390_v55  ;;  %v2133_v21 = vmul.f32 %v7711_v30, %v7944_v50  ;;  %v9727_v55 = vsub.f32 %v7404_v33, %v7413_v20 }
 0x65c   :  { %5934 = vpow2.f32 %v1207_v39  ;;  %v9729_v30 = vsub.f32 %v7429_v16, %v7442_v53  ;;  %v1950_v33 = vmul.f32 %v7976_v61, %v7804_v8  ;;  %v9735_v61 = vld [vmem:[#allocation126_spill] sm:$0xff] }
 0x65d   :  { %1981 = vperm.xlu1 %5888, %v1947_v58   ;;  %v8018_v59 = vpop.permute.xlu1 %2073  ;;  %v1211_v6 = vmul.f32 1.442695, %v1191_v14  ;;  %v1215_v10 = vmul.f32 1.442695, %v9727_v55  ;;  %v9743_v14 = vld [vmem:[#allocation114_spill] sm:$0xff] }
 0x65e   :  { %v1219_v24 = vmul.f32 1.442695, %v9729_v30 }
 0x65f   :  { %5881 = vset.pattern.permute.xlu0 %v9601_v45  ;;  %5936 = vpow2.f32 %v1211_v6 }
 0x660   :  { %1723 = vperm.xlu0 %5881, %v1665_v49   ;;  %5938 = vpow2.f32 %v1215_v10  ;;  %v1946_v10 = vmul.f32 %v8005_v29, %v7796_v0 }
 0x661   :  { %2147 = vperm.xlu1 %5888, %v2121_v22   ;;  %v8031_v49 = vpop.permute.xlu1 %1897  ;;  %5940 = vpow2.f32 %v1219_v24  ;;  %v9747_v24 = vld [vmem:[#allocation116_spill] sm:$0xff] }
 0x664   :  { %1835 = vperm.xlu0 %5881, %v1777_v34   ;;  %v2126_v34 = vmul.f32 %v7970_v52, %v7804_v8  ;;  %v9732_v52 = vld [vmem:[#allocation123_spill] sm:$0xff] }
 0x665   :  { %1971 = vperm.xlu1 %5888, %v1945_v38   ;;  %v9733_v19 = vsub.f32 %v7459_v63, %v9732_v52 }
 0x667   :  { %v1223_v16 = vmul.f32 1.442695, %v9733_v19  ;;  %v2120_v19 = vmul.f32 %v8018_v59, %v7762_v17  ;;  %v9750_v59 = vld [vmem:[#allocation117_spill] sm:$0xff] }
 0x668   :  { %1738 = vperm.xlu0 %5881, %v1668_v48   ;;  %v8054_v20 = vpop.eup %5932 }
 0x669   :  { %2137 = vperm.xlu1 %5888, %v2119_v2   ;;  %9730 = vst [vmem:[#allocation95_spill] sm:$0xff] %v8054_v20  ;;  %v8065_v53 = vpop.eup %5934  ;;  %5942 = vpow2.f32 %v1223_v16 }
 0x66a   :  { %9734 = vst [vmem:[#allocation97_spill] sm:$0xff] %v8065_v53 }
 0x66c   :  { %5884 = vset.pattern.permute.xlu0 %v9699_v43  ;;  %v8077_v63 = vpop.eup %5936 }
 0x66d   :  { %2202 = vperm.xlu0 %5884, %v2132_v62   ;;  %1961 = vperm.xlu1 %5888, %v1943_v35   ;;  %v2124_v35 = vmul.f32 %v7982_v36, %v7788_v32  ;;  %9738 = vst [vmem:[#allocation104_spill] sm:$0xff] %v8077_v63  ;;  %v9739_v36 = vld [vmem:[#allocation130_spill] sm:$0xff]  ;;  %v8089_v39 = vpop.eup %5938 }
 0x66e   :  { %9742 = vst [vmem:[#allocation99_spill] sm:$0xff] %v8089_v39 }
 0x671   :  { %2026 = vperm.xlu0 %5884, %v1956_v5   ;;  %5892 = vset.pattern.permute.xlu1 %v9420_v46 }
 0x672   :  { %2303 = vperm.xlu1 %5892, %v7944_v50  }
 0x675   :  { %5885 = vset.pattern.permute.xlu0 %v9601_v45 }
 0x676   :  { %1733 = vperm.xlu0 %5885, %v1667_v56   ;;  %2293 = vperm.xlu1 %5892, %v7920_v9   ;;  %v9736_v56 = vld [vmem:[#allocation127_spill] sm:$0xff] }
 0x677   :  { %v9737_v40 = vsub.f32 %v9735_v61, %v9736_v56  ;;  %v1944_v56 = vmul.f32 %v8031_v49, %v7762_v17  ;;  %v9753_v49 = vld [vmem:[#allocation119_spill] sm:$0xff] }
 0x67a   :  { %1845 = vperm.xlu0 %5885, %v1779_v57   ;;  %2298 = vperm.xlu1 %5892, %v7911_v54   ;;  %v1227_v57 = vmul.f32 1.442695, %v9737_v40 }
 0x67c   :  { %5944 = vpow2.f32 %v1227_v57 }
 0x67e   :  { %1748 = vperm.xlu0 %5885, %v1670_v31   ;;  %2288 = vperm.xlu1 %5892, %v7876_v12   ;;  %v1948_v31 = vmul.f32 %v7990_v37, %v7788_v32  ;;  %v2122_v37 = vmul.f32 %v7998_v25, %v7796_v0 }
 0x682   :  { %5889 = vset.pattern.permute.xlu0 %v9699_v43  ;;  %2278 = vperm.xlu1 %5892, %v7836_v13  }
 0x683   :  { %v8011_v60 = vpop.permute.xlu0 %1678  ;;  %2036 = vperm.xlu0 %5889, %v1958_v3   ;;  %v9740_v3 = vld [vmem:[#allocation131_spill] sm:$0xff] }
 0x684   :  { %9722 = vst [vmem:[#allocation83_spill] sm:$0xff] %v8011_v60  ;;  %v9741_v7 = vsub.f32 %v9739_v36, %v9740_v3  ;;  %v9778_v60 = vld [vmem:[#allocation78_spill] sm:$0xff] }
 0x685   :  { %v8042_v4 = vpop.permute.xlu1 %1673 }
 0x686   :  { %2268 = vperm.xlu1 %5892, %v7804_v8   ;;  %9728 = vst [vmem:[#allocation102_spill] sm:$0xff] %v8042_v4  ;;  %v1231_v27 = vmul.f32 1.442695, %v9741_v7 }
 0x687   :  { %v8020_v1 = vpop.permute.xlu0 %1790  ;;  %5890 = vset.pattern.permute.xlu0 %v9601_v45 }
 0x688   :  { %9723 = vst [vmem:[#allocation82_spill] sm:$0xff] %v8020_v1  ;;  %1743 = vperm.xlu0 %5890, %v1669_v28   ;;  %5946 = vpow2.f32 %v1231_v27  ;;  %v9779_v1 = vld [vmem:[#allocation76_spill] sm:$0xff] }
 0x68a   :  { %2258 = vperm.xlu1 %5892, %v7788_v32   ;;  %v9772_v32 = vmov 2  }
 0x68b   :  { %v8029_v58 = vpop.permute.xlu0 %1785  ;;  %v8052_v48 = vpop.permute.xlu1 %1810 }
 0x68c   :  { %9725 = vst [vmem:[#allocation93_spill] sm:$0xff] %v8029_v58  ;;  %1855 = vperm.xlu0 %5890, %v1781_v11   ;;  %v1187_v11 = vsub.f32 %v9744_v44, %v9743_v14  ;;  %v9754_v14 = vld [vmem:[#allocation120_spill] sm:$0xff] }
 0x68d   :  { %v9755_v44 = vsub.f32 %v9753_v49, %v9754_v14 }
 0x68e   :  { %2248 = vperm.xlu1 %5892, %v7796_v0   ;;  %v1203_v55 = vmul.f32 1.442695, %v1187_v11 }
 0x68f   :  { %v8034_v22 = vpop.permute.xlu0 %1688  ;;  %v8069_v62 = vpop.permute.xlu1 %1820  ;;  %v1217_v11 = vmul.f32 1.442695, %v9755_v44  ;;  %v9762_v44 = vld [vmem:[#allocation128_spill] sm:$0xff] }
 0x690   :  { %9726 = vst [vmem:[#allocation92_spill] sm:$0xff] %v8034_v22  ;;  %5891 = vset.pattern.permute.xlu0 %v9699_v43  ;;  %5948 = vpow2.f32 %v1203_v55  ;;  %v9780_v22 = vld [vmem:[#allocation75_spill] sm:$0xff] }
 0x691   :  { %2207 = vperm.xlu0 %5891, %v2133_v21   ;;  %v8098_v21 = vpop.eup %5940 }
 0x692   :  { %2238 = vperm.xlu1 %5892, %v7762_v17   ;;  %9745 = vst [vmem:[#allocation108_spill] sm:$0xff] %v8098_v21  ;;  %v8107_v25 = vpop.eup %5942 }
 0x693   :  { %v8047_v38 = vpop.permute.xlu0 %1800  ;;  %9746 = vst [vmem:[#allocation103_spill] sm:$0xff] %v8107_v25 }
 0x694   :  { %v8087_v28 = vpop.permute.xlu1 %2167 }
 0x695   :  { %2172 = vperm.xlu0 %5891, %v2126_v34  }
 0x696   :  { %5895 = vset.pattern.permute.xlu1 %v9601_v45 }
 0x697   :  { %v8059_v2 = vpop.permute.xlu0 %1683  ;;  %2850 = vperm.xlu1 %5895, %v8054_v20  }
 0x698   :  { %9731 = vst [vmem:[#allocation94_spill] sm:$0xff] %v8059_v2 }
 0x699   :  { %1996 = vperm.xlu0 %5891, %v1950_v33   ;;  %v8102_v34 = vpop.permute.xlu1 %1830  ;;  %v9748_v33 = vld [vmem:[#allocation115_spill] sm:$0xff] }
 0x69a   :  { %v1190_v52 = vsub.f32 %v9748_v33, %v9747_v24  ;;  %v9756_v24 = vld [vmem:[#allocation121_spill] sm:$0xff]  ;;  %v9757_v33 = vld [vmem:[#allocation122_spill] sm:$0xff] }
 0x69b   :  { %v8071_v5 = vpop.permute.xlu0 %1795  ;;  %2855 = vperm.xlu1 %5895, %v8065_v53  }
 0x69c   :  { %v1209_v61 = vmul.f32 1.442695, %v1190_v52  ;;  %v9758_v52 = vsub.f32 %v9756_v24, %v9757_v33 }
 0x69d   :  { %2162 = vperm.xlu0 %5891, %v2124_v35   ;;  %v8118_v35 = vpop.eup %5944 }
 0x69e   :  { %v8116_v29 = vpop.permute.xlu1 %2177  ;;  %9749 = vst [vmem:[#allocation101_spill] sm:$0xff] %v8118_v35  ;;  %v8125_v57 = vpop.eup %5946  ;;  %5950 = vpow2.f32 %v1209_v61 }
 0x69f   :  { %v8081_v26 = vpop.permute.xlu0 %1698  ;;  %2865 = vperm.xlu1 %5895, %v8077_v63  }
 0x6a1   :  { %1986 = vperm.xlu0 %5891, %v1948_v31   ;;  %v9751_v31 = vld [vmem:[#allocation118_spill] sm:$0xff] }
 0x6a2   :  { %v9752_v36 = vsub.f32 %v9750_v59, %v9751_v31  ;;  %v8130_v7 = vpop.permute.xlu1 %2001  ;;  %v9760_v59 = vld [vmem:[#allocation125_spill] sm:$0xff] }
 0x6a3   :  { %v8095_v6 = vpop.permute.xlu0 %1693  ;;  %2875 = vperm.xlu1 %5895, %v8089_v39  }
 0x6a4   :  { %v1213_v3 = vmul.f32 1.442695, %v9752_v36 }
 0x6a5   :  { %2152 = vperm.xlu0 %5891, %v2122_v37   ;;  %v8140_v37 = vpop.eup %5948 }
 0x6a6   :  { %5952 = vpow2.f32 %v1213_v3 }
 0x6a7   :  { %v8104_v30 = vpop.permute.xlu0 %1805  ;;  %2885 = vperm.xlu1 %5895, %v8098_v21   ;;  %5954 = vpow2.f32 %v1217_v11  ;;  %v9763_v11 = vld [vmem:[#allocation129_spill] sm:$0xff] }
 0x6a8   :  { %v9764_v24 = vsub.f32 %v9762_v44, %v9763_v11 }
 0x6a9   :  { %1976 = vperm.xlu0 %5891, %v1946_v10   ;;  %v8146_v10 = vpop.permute.xlu1 %1840 }
 0x6aa   :  { %v1229_v33 = vmul.f32 1.442695, %v9764_v24 }
 0x6ab   :  { %v8113_v16 = vpop.permute.xlu0 %1708  ;;  %2895 = vperm.xlu1 %5895, %v8107_v25   ;;  %v8159_v3 = vpop.eup %5950 }
 0x6ad   :  { %2142 = vperm.xlu0 %5891, %v2120_v19   ;;  %v1221_v19 = vmul.f32 1.442695, %v9758_v52  ;;  %v8161_v49 = vpop.permute.xlu1 %2187 }
 0x6af   :  { %v8122_v40 = vpop.permute.xlu0 %1703  ;;  %2905 = vperm.xlu1 %5895, %v8118_v35   ;;  %5956 = vpow2.f32 %v1221_v19 }
 0x6b1   :  { %1966 = vperm.xlu0 %5891, %v1944_v56   ;;  %v9759_v56 = vld [vmem:[#allocation124_spill] sm:$0xff]  ;;  %v8173_v19 = vpop.permute.xlu1 %2011 }
 0x6b2   :  { %v9761_v31 = vsub.f32 %v9759_v56, %v9760_v59  ;;  %v9765_v59 = vld [vmem:[#allocation132_spill] sm:$0xff] }
 0x6b3   :  { %v8132_v27 = vpop.permute.xlu0 %1815  ;;  %2915 = vperm.xlu1 %5895, %v8125_v57   ;;  %v8170_v52 = vpop.eup %5952 }
 0x6b4   :  { %v1225_v36 = vmul.f32 1.442695, %v9761_v31  ;;  %v9766_v31 = vld [vmem:[#allocation133_spill] sm:$0xff] }
 0x6b5   :  { %5893 = vset.pattern.permute.xlu0 %v9420_v46  ;;  %v9767_v46 = vsub.f32 %v9765_v59, %v9766_v31  ;;  %v8189_v24 = vpop.permute.xlu1 %1850 }
 0x6b6   :  { %2308 = vperm.xlu0 %5893, %v7933_v15   ;;  %5958 = vpow2.f32 %v1225_v36  ;;  %v8181_v36 = vpop.eup %5954 }
 0x6b7   :  { %v8142_v55 = vpop.permute.xlu0 %1718  ;;  %5896 = vset.pattern.permute.xlu1 %v9699_v43  ;;  %5960 = vpow2.f32 %v1229_v33  ;;  %v1233_v17 = vmul.f32 1.442695, %v9767_v46 }
 0x6b8   :  { %2924 = vperm.xlu1 %5896, %v8140_v37  }
 0x6b9   :  { %5962 = vpow2.f32 %v1233_v17 }
 0x6ba   :  { %2283 = vperm.xlu0 %5893, %v7891_v47   ;;  %v8198_v59 = vpop.permute.xlu1 %2197 }
 0x6bc   :  { %v8152_v61 = vpop.permute.xlu0 %2182  ;;  %2932 = vperm.xlu1 %5896, %v8065_v53   ;;  %v8187_v11 = vpop.eup %5956 }
 0x6bd   :  { %9768 = vst [vmem:[#allocation105_spill] sm:$0xff] %v8187_v11 }
 0x6be   :  { %2273 = vperm.xlu0 %5893, %v7847_v42  }
 0x6c0   :  { %v8163_v14 = vpop.permute.xlu0 %2006  ;;  %2936 = vperm.xlu1 %5896, %v8159_v3  }
 0x6c2   :  { %2263 = vperm.xlu0 %5893, %v7821_v51  }
 0x6c3   :  { %v8195_v46 = vpop.eup %5958 }
 0x6c4   :  { %2944 = vperm.xlu1 %5896, %v8170_v52   ;;  %9769 = vst [vmem:[#allocation110_spill] sm:$0xff] %v8195_v46  ;;  %v8203_v31 = vpop.eup %5960 }
 0x6c5   :  { %v8175_v56 = vpop.permute.xlu0 %1713  ;;  %9770 = vst [vmem:[#allocation106_spill] sm:$0xff] %v8203_v31 }
 0x6c6   :  { %2253 = vperm.xlu0 %5893, %v7863_v41   ;;  %v8209_v0 = vpop.eup %5962 }
 0x6c7   :  { %9771 = vst [vmem:[#allocation112_spill] sm:$0xff] %v8209_v0 }
 0x6c8   :  { %2952 = vperm.xlu1 %5896, %v8181_v36  }
 0x6c9   :  { %v8184_v44 = vpop.permute.xlu0 %1825 }
 0x6ca   :  { %2243 = vperm.xlu0 %5893, %v7825_v23  }
 0x6cc   :  { %2960 = vperm.xlu1 %5896, %v8187_v11  }
 0x6cd   :  { %v8192_v33 = vpop.permute.xlu0 %1728 }
 0x6ce   :  { %2233 = vperm.xlu0 %5893, %v7768_v18   ;;  %v8211_v18 = vpop.permute.xlu1 %2021 }
 0x6d0   :  { %2968 = vperm.xlu1 %5896, %v8195_v46  }
 0x6d2   :  { %5894 = vset.pattern.permute.xlu0 %v9601_v45  ;;  %v8201_v17 = vpop.permute.xlu0 %2192  ;;  %v1861_v51 = vpop.permute.xlu1 %1860 }
 0x6d3   :  { %2845 = vperm.xlu0 %5894, %v8140_v37  }
 0x6d4   :  { %2976 = vperm.xlu1 %5896, %v8203_v31  }
 0x6d6   :  { %v8207_v23 = vpop.permute.xlu0 %2016  ;;  %v2213_v42 = vpop.permute.xlu1 %2212 }
 0x6d7   :  { %2860 = vperm.xlu0 %5894, %v8159_v3  }
 0x6d8   :  { %2984 = vperm.xlu1 %5896, %v8209_v0  }
 0x6da   :  { %v2032_v12 = vpop.permute.xlu1 %2031 }
 0x6db   :  { %2870 = vperm.xlu0 %5894, %v8170_v52   ;;  %v8216_v41 = vpop.permute.xlu0 %1723 }
 0x6dc   :  { %5899 = vset.pattern.permute.xlu1 %v9772_v32 }
 0x6dd   :  { %2992 = vperm.xlu1 %5899, %v8054_v20  }
 0x6de   :  { %v8228_v54 = vpop.permute.xlu1 %1991 }
 0x6df   :  { %2880 = vperm.xlu0 %5894, %v8181_v36   ;;  %v1836_v8 = vpop.permute.xlu0 %1835  ;;  %9773 = vst [vmem:[#allocation109_spill] sm:$0xff] %v8228_v54  ;;  %v9782_v54 = vld [vmem:[#allocation72_spill] sm:$0xff] }
 0x6e1   :  { %2996 = vperm.xlu1 %5899, %v8065_v53  }
 0x6e2   :  { %v8234_v50 = vpop.permute.xlu1 %2157 }
 0x6e3   :  { %2890 = vperm.xlu0 %5894, %v8187_v11   ;;  %v1739_v13 = vpop.permute.xlu0 %1738  ;;  %9774 = vst [vmem:[#allocation107_spill] sm:$0xff] %v8234_v50  ;;  %v1878_v11 = vmul.f32 %v1861_v51, %v9779_v1 }
 0x6e5   :  { %3004 = vperm.xlu1 %5899, %v8077_v63  }
 0x6e7   :  { %2900 = vperm.xlu0 %5894, %v8195_v46  }
 0x6e8   :  { %v2203_v47 = vpop.permute.xlu0 %2202 }
 0x6e9   :  { %3012 = vperm.xlu1 %5899, %v8089_v39  }
 0x6eb   :  { %2910 = vperm.xlu0 %5894, %v8203_v31   ;;  %v8239_v31 = vpop.permute.xlu1 %1981 }
 0x6ec   :  { %v2027_v9 = vpop.permute.xlu0 %2026  ;;  %9775 = vst [vmem:[#allocation111_spill] sm:$0xff] %v8239_v31 }
 0x6ed   :  { %3020 = vperm.xlu1 %5899, %v8098_v21  }
 0x6ef   :  { %2920 = vperm.xlu0 %5894, %v8209_v0  }
 0x6f1   :  { %v1734_v53 = vpop.permute.xlu0 %1733  ;;  %3028 = vperm.xlu1 %5899, %v8107_v25  }
 0x6f3   :  { %5897 = vset.pattern.permute.xlu0 %v9699_v43  ;;  %v8243_v43 = vpop.permute.xlu1 %2147 }
 0x6f4   :  { %2928 = vperm.xlu0 %5897, %v8054_v20   ;;  %9776 = vst [vmem:[#allocation123_spill] sm:$0xff] %v8243_v43 }
 0x6f5   :  { %v1846_v15 = vpop.permute.xlu0 %1845  ;;  %3036 = vperm.xlu1 %5899, %v8118_v35  }
 0x6f6   :  { %v1875_v50 = vmul.f32 %v1846_v15, %v9780_v22  ;;  %v9783_v15 = vld [vmem:[#allocation64_spill] sm:$0xff] }
 0x6f7   :  { %v8246_v46 = vpop.permute.xlu1 %1971 }
 0x6f8   :  { %2940 = vperm.xlu0 %5897, %v8077_v63   ;;  %9777 = vst [vmem:[#allocation126_spill] sm:$0xff] %v8246_v46 }
 0x6f9   :  { %v1749_v45 = vpop.permute.xlu0 %1748  ;;  %3044 = vperm.xlu1 %5899, %v8125_v57  }
 0x6fc   :  { %2948 = vperm.xlu0 %5897, %v8089_v39   ;;  %v9781_v39 = vld [vmem:[#allocation73_spill] sm:$0xff] }
 0x6fd   :  { %v1876_v43 = vmul.f32 %v8189_v24, %v9781_v39 }
 0x6fe   :  { %v2037_v0 = vpop.permute.xlu0 %2036 }
 0x6ff   :  { %v2366_v2 = vpack.c.bf16 %v1876_v43, %v1875_v50  ;;  %v9791_v43 = vld [vmem:[#allocation71_spill] sm:$0xff] }
 0x700   :  { %2956 = vperm.xlu0 %5897, %v8098_v21   ;;  %v1766_v21 = vmul.f32 %v1749_v45, %v9779_v1  ;;  %v2054_v45 = vmul.f32 %v9783_v15, %v2037_v0  ;;  %v9784_v1 = vld [vmem:[#allocation77_spill] sm:$0xff] }
 0x701   :  { %v9788_v0 = vld [vmem:[#allocation69_spill] sm:$0xff] }
 0x702   :  { %v1871_v24 = vmul.f32 %v8184_v44, %v9788_v0 }
 0x703   :  { %v1744_v20 = vpop.permute.xlu0 %1743 }
 0x704   :  { %2964 = vperm.xlu0 %5897, %v8107_v25   ;;  %v1765_v4 = vmul.f32 %v1744_v20, %v9778_v60  ;;  %v1763_v25 = vmul.f32 %v1734_v53, %v9780_v22  ;;  %v1873_v20 = vmul.f32 %v1836_v8, %v9782_v54  ;;  %v9785_v22 = vld [vmem:[#allocation70_spill] sm:$0xff]  ;;  %v2053_v53 = vmul.f32 %v9784_v1, %v2032_v12 }
 0x705   :  { %v9786_v8 = vld [vmem:[#allocation62_spill] sm:$0xff] }
 0x706   :  { %v2370_v46 = vpack.c.bf16 %v1766_v21, %v1765_v4  ;;  %v1874_v4 = vmul.f32 %v8146_v10, %v9785_v22  ;;  %v2228_v50 = vmul.f32 %v9786_v8, %v2203_v47  ;;  %v1762_v47 = vmul.f32 %v8192_v33, %v9785_v22 }
 0x707   :  { %v1856_v63 = vpop.permute.xlu0 %1855  ;;  %v2052_v12 = vmul.f32 %v9786_v8, %v2027_v9  ;;  %v1759_v33 = vmul.f32 %v8175_v56, %v9788_v0 }
 0x708   :  { %v1877_v31 = vmul.f32 %v1856_v63, %v9778_v60  ;;  %2972 = vperm.xlu0 %5897, %v8118_v35   ;;  %v2230_v60 = vmul.f32 %v9783_v15, %v2213_v42  ;;  %v1764_v63 = vmul.f32 %v1739_v13, %v9781_v39  ;;  %v8261_v35 = vpop.permute.xlu1 %2137  ;;  %v1761_v42 = vmul.f32 %v8216_v41, %v9782_v54  ;;  %v9787_v39 = vld [vmem:[#allocation74_spill] sm:$0xff]  ;;  %v9789_v41 = vld [vmem:[#allocation67_spill] sm:$0xff] }
 0x709   :  { %v2227_v21 = vmul.f32 %v9787_v39, %v8198_v59  ;;  %v1872_v54 = vmul.f32 %v8102_v34, %v9789_v41  ;;  %v9792_v34 = vld [vmem:[#allocation66_spill] sm:$0xff] }
 0x70a   :  { %v2371_v58 = vpack.c.bf16 %v1878_v11, %v1877_v31  ;;  %v2360_v9 = vpack.c.bf16 %v1762_v47, %v1761_v42  ;;  %v9796_v42 = vld [vmem:[#allocation61_spill] sm:$0xff] }
 0x70b   :  { %v2368_v44 = vpack.c.bf16 %v2228_v50, %v2227_v21 }
 0x70c   :  { %2980 = vperm.xlu0 %5897, %v8125_v57   ;;  %v2208_v51 = vpop.permute.xlu0 %2207  ;;  %2375 = vmatprep.subr.bf16.mxu0 %v2371_v58  ;;  %v2365_v58 = vpack.c.bf16 %v1764_v63, %v1763_v25  ;;  %v9790_v25 = vld [vmem:[#allocation60_spill] sm:$0xff]  ;;  %v8288_v31 = vpop.permute.xlu1 %1961  ;;  %v1760_v63 = vmul.f32 %v8142_v55, %v9789_v41  ;;  %v2049_v55 = vmul.f32 %v9791_v43, %v8173_v19  ;;  %v9797_v19 = vld [vmem:[#allocation57_spill] sm:$0xff]  ;;  %v9800_v41 = vld [vmem:[#allocation55_spill] sm:$0xff] }
 0x70d   :  { %v2229_v11 = vmul.f32 %v9784_v1, %v2208_v51  ;;  %2376 = vmatpush1.bf16.msra.mxu0 %v2370_v46  ;;  %v2361_v46 = vpack.c.bf16 %v1874_v4, %v1873_v20  ;;  %v2226_v59 = vmul.f32 %v9790_v25, %v8201_v17  ;;  %v2225_v20 = vmul.f32 %v9791_v43, %v8161_v49  ;;  %v9794_v49 = vld [vmem:[#allocation58_spill] sm:$0xff] }
 0x70e   :  { %2377 = vmatprep.subr.bf16.mxu0 %v2366_v2  ;;  %v2372_v2 = vpack.c.bf16 %v2054_v45, %v2053_v53  ;;  %v1869_v51 = vmul.f32 %v8132_v27, %v9792_v34  ;;  %v2356_v17 = vpack.c.bf16 %v1872_v54, %v1871_v24  ;;  %v9793_v45 = vld [vmem:[#allocation63_spill] sm:$0xff]  ;;  %v2224_v22 = vmul.f32 %v9794_v49, %v8152_v61 }
 0x70f   :  { %v2373_v13 = vpack.c.bf16 %v2230_v60, %v2229_v11  ;;  %v1870_v11 = vmul.f32 %v8069_v62, %v9793_v45  ;;  %v2363_v27 = vpack.c.bf16 %v2226_v59, %v2225_v20  ;;  %v1757_v4 = vmul.f32 %v8122_v40, %v9792_v34 }
 0x710   :  { %5898 = vset.pattern.permute.xlu0 %v9772_v32  ;;  %v2173_v10 = vpop.permute.xlu0 %2172  ;;  %v2051_v32 = vmul.f32 %v9787_v39, %v8211_v18  ;;  %v2050_v18 = vmul.f32 %v9790_v25, %v8207_v23  ;;  %v2355_v50 = vpack.c.bf16 %v1760_v63, %v1759_v33  ;;  %v9795_v23 = vld [vmem:[#allocation68_spill] sm:$0xff]  ;;  %v1758_v61 = vmul.f32 %v8113_v16, %v9793_v45  ;;  %v8315_v0 = vpop.permute.xlu1 %2303  ;;  %v9806_v63 = vld [vmem:[#allocation93_spill] sm:$0xff]  ;;  %v9807_v45 = vld [vmem:[#allocation107_spill] sm:$0xff] }
 0x711   :  { %2988 = vperm.xlu0 %5898, %v8140_v37   ;;  %2378 = vmatpush1.bf16.msra.mxu0 %v2365_v58  ;;  %v2223_v53 = vmul.f32 %v9795_v23, %v8116_v29  ;;  %v1867_v58 = vmul.f32 %v8104_v30, %v9796_v42  ;;  %v2351_v62 = vpack.c.bf16 %v1870_v11, %v1869_v51  ;;  %v9798_v30 = vld [vmem:[#allocation56_spill] sm:$0xff]  ;;  %v9804_v51 = vld [vmem:[#allocation109_spill] sm:$0xff] }
 0x712   :  { %2488 = vmatprep.subr.bf16.mxu1 %v2373_v13  ;;  %2379 = vmatprep.subr.bf16.mxu0 %v2361_v46  ;;  %v2367_v56 = vpack.c.bf16 %v2052_v12, %v2051_v32  ;;  %v2048_v40 = vmul.f32 %v9794_v49, %v8163_v14  ;;  %v2362_v21 = vpack.c.bf16 %v2050_v18, %v2049_v55  ;;  %v9799_v12 = vld [vmem:[#allocation65_spill] sm:$0xff] }
 0x713   :  { %2489 = vmatpush1.bf16.msra.mxu1 %v2372_v2  ;;  %v1868_v29 = vmul.f32 %v8052_v48, %v9797_v19  ;;  %v2358_v24 = vpack.c.bf16 %v2224_v22, %v2223_v53  ;;  %v2222_v46 = vmul.f32 %v9798_v30, %v2173_v10  ;;  %v2047_v47 = vmul.f32 %v9795_v23, %v8130_v7  ;;  %v9810_v53 = vld [vmem:[#allocation105_spill] sm:$0xff] }
 0x714   :  { %2490 = vmatprep.subr.bf16.mxu1 %v2368_v44  ;;  %v1997_v60 = vpop.permute.xlu0 %1996  ;;  %v1755_v16 = vmul.f32 %v8095_v6, %v9796_v42  ;;  %v2350_v14 = vpack.c.bf16 %v1758_v61, %v1757_v4  ;;  %v2221_v2 = vmul.f32 %v9799_v12, %v8087_v28  ;;  %v1865_v54 = vmul.f32 %v8071_v5, %v9800_v41  ;;  %v9801_v6 = vld [vmem:[#allocation52_spill] sm:$0xff]  ;;  %v9802_v28 = vld [vmem:[#allocation53_spill] sm:$0xff]  ;;  %v9803_v5 = vld [vmem:[#allocation94_spill] sm:$0xff] }
 0x715   :  { %3000 = vperm.xlu0 %5898, %v8159_v3   ;;  %2380 = vmatpush1.bf16.msra.mxu0 %v2360_v9  ;;  %v2346_v59 = vpack.c.bf16 %v1868_v29, %v1867_v58  ;;  %v1756_v10 = vmul.f32 %v8081_v26, %v9797_v19  ;;  %v2357_v44 = vpack.c.bf16 %v2048_v40, %v2047_v47  ;;  %v9811_v42 = vld [vmem:[#allocation48_spill] sm:$0xff]  ;;  %v9812_v58 = vld [vmem:[#allocation82_spill] sm:$0xff]  ;;  %v9813_v61 = vld [vmem:[#allocation51_spill] sm:$0xff] }
 0x716   :  { %2381 = vmatprep.subr.bf16.mxu0 %v2356_v17  ;;  %v2046_v7 = vmul.f32 %v9798_v30, %v1997_v60  ;;  %v1866_v32 = vmul.f32 %v8047_v38, %v9801_v6  ;;  %v2353_v33 = vpack.c.bf16 %v2222_v46, %v2221_v2  ;;  %v1753_v20 = vmul.f32 %v9803_v5, %v9800_v41  ;;  %v8340_v17 = vpop.permute.xlu1 %2293  ;;  %v9805_v60 = vld [vmem:[#allocation50_spill] sm:$0xff]  ;;  %v9808_v38 = vld [vmem:[#allocation59_spill] sm:$0xff] }
 0x717   :  { %2491 = vmatpush1.bf16.msra.mxu1 %v2367_v56  ;;  %v2345_v34 = vpack.c.bf16 %v1756_v10, %v1755_v16  ;;  %v2045_v26 = vmul.f32 %v9799_v12, %v9804_v51  ;;  %v1863_v18 = vmul.f32 %v9806_v63, %v9805_v60  ;;  %v2219_v11 = vmul.f32 %v9808_v38, %v9807_v45  ;;  %v9816_v47 = vld [vmem:[#allocation83_spill] sm:$0xff]  ;;  %v9818_v41 = vld [vmem:[#allocation54_spill] sm:$0xff] }
 0x718   :  { %2492 = vmatprep.subr.bf16.mxu1 %v2363_v27  ;;  %v2163_v13 = vpop.permute.xlu0 %2162  ;;  %v2341_v56 = vpack.c.bf16 %v1866_v32, %v1865_v54  ;;  %v9809_v27 = vld [vmem:[#allocation92_spill] sm:$0xff]  ;;  %v1752_v16 = vmul.f32 %v9816_v47, %v9811_v42  ;;  %v9817_v2 = vld [vmem:[#allocation123_spill] sm:$0xff]  ;;  %v9820_v32 = vld [vmem:[#allocation110_spill] sm:$0xff]  ;;  %v2323_v47 = vmul.f32 %v9787_v39, %v8340_v17  ;;  %v6314_v45 = vmov 1.0  }
 0x719   :  { %3008 = vperm.xlu0 %5898, %v8170_v52   ;;  %2382 = vmatpush1.bf16.msra.mxu0 %v2355_v50  ;;  %v2220_v9 = vmul.f32 %v9802_v28, %v2163_v13  ;;  %v1754_v4 = vmul.f32 %v9809_v27, %v9801_v6  ;;  %v2352_v55 = vpack.c.bf16 %v2046_v7, %v2045_v26  ;;  %v9822_v26 = vld [vmem:[#allocation47_spill] sm:$0xff]  ;;  %v9823_v63 = vld [vmem:[#allocation106_spill] sm:$0xff] }
 0x71a   :  { %2383 = vmatprep.subr.bf16.mxu0 %v2351_v62  ;;  %v1864_v62 = vmul.f32 %v9812_v58, %v9811_v42  ;;  %v2217_v54 = vmul.f32 %v9818_v41, %v9817_v2  ;;  %v9829_v42 = vmov 0  }
 0x71b   :  { %2493 = vmatpush1.bf16.msra.mxu1 %v2362_v21  ;;  %v2348_v13 = vpack.c.bf16 %v2220_v9, %v2219_v11  ;;  %v9814_v21 = vld [vmem:[#allocation102_spill] sm:$0xff]  ;;  %v2340_v29 = vpack.c.bf16 %v1754_v4, %v1753_v20  ;;  %v6313_v4 = vmov 1.0|1.0  }
 0x71c   :  { %2494 = vmatprep.subr.bf16.mxu1 %v2358_v24  ;;  %v1987_v48 = vpop.permute.xlu0 %1986  ;;  %v1751_v19 = vmul.f32 %v9814_v21, %v9805_v60  ;;  %v9815_v24 = vld [vmem:[#allocation111_spill] sm:$0xff] }
 0x71d   :  { %3016 = vperm.xlu0 %5898, %v8181_v36   ;;  %2384 = vmatpush1.bf16.msra.mxu0 %v2350_v14  ;;  %v2044_v50 = vmul.f32 %v9802_v28, %v1987_v48  ;;  %v2043_v46 = vmul.f32 %v9808_v38, %v9815_v24  ;;  %v2336_v14 = vpack.c.bf16 %v1864_v62, %v1863_v18  ;;  %v9819_v48 = vld [vmem:[#allocation126_spill] sm:$0xff] }
 0x71e   :  { %2385 = vmatprep.subr.bf16.mxu0 %v2346_v59  ;;  %v2041_v10 = vmul.f32 %v9818_v41, %v9819_v48  ;;  %v2335_v9 = vpack.c.bf16 %v1752_v16, %v1751_v19 }
 0x71f   :  { %2495 = vmatpush1.bf16.msra.mxu1 %v2357_v44  ;;  %v2299_v44 = vpop.permute.xlu1 %2298  ;;  %v2347_v7 = vpack.c.bf16 %v2044_v50, %v2043_v46  ;;  %v9828_v50 = vld [vmem:[#allocation112_spill] sm:$0xff]  ;;  %v9834_v46 = vld [vmem:[#allocation89_spill] sm:$0xff] }
 0x720   :  { %2496 = vmatprep.subr.bf16.mxu1 %v2353_v33  ;;  %v2153_v22 = vpop.permute.xlu0 %2152 }
 0x721   :  { %3024 = vperm.xlu0 %5898, %v9810_v53   ;;  %2386 = vmatpush1.bf16.msra.mxu0 %v2345_v34  ;;  %v2218_v40 = vmul.f32 %v9813_v61, %v2153_v22  ;;  %v9821_v34 = vld [vmem:[#allocation49_spill] sm:$0xff] }
 0x722   :  { %2387 = vmatprep.subr.bf16.mxu0 %v2341_v56  ;;  %v2215_v51 = vmul.f32 %v9821_v34, %v8261_v35  ;;  %v2039_v35 = vmul.f32 %v9821_v34, %v8288_v31  ;;  %v2325_v31 = vmul.f32 %v9784_v1, %v8315_v0  ;;  %v9835_v1 = vld [vmem:[#allocation91_spill] sm:$0xff]  ;;  %v9836_v0 = vld [vmem:[#allocation100_spill] sm:$0xff] }
 0x723   :  { %2497 = vmatpush1.bf16.msra.mxu1 %v2352_v55  ;;  %v2343_v33 = vpack.c.bf16 %v2218_v40, %v2217_v54  ;;  %v2289_v11 = vpop.permute.xlu1 %2288 }
 0x724   :  { %2498 = vmatprep.subr.bf16.mxu1 %v2348_v13  ;;  %v1977_v59 = vpop.permute.xlu0 %1976  ;;  %v2322_v17 = vmul.f32 %v9790_v25, %v2289_v11  ;;  %v9846_v11 = vld [vmem:[#allocation36_spill] sm:$0xff] }
 0x725   :  { %v2042_v6 = vmul.f32 %v9813_v61, %v1977_v59  ;;  %3032 = vperm.xlu0 %5898, %v9820_v32   ;;  %2388 = vmatpush1.bf16.msra.mxu0 %v2340_v29  ;;  %v2324_v29 = vmul.f32 %v9786_v8, %v2299_v44  ;;  %v9838_v59 = vld [vmem:[#allocation34_spill] sm:$0xff] }
 0x726   :  { %2389 = vmatprep.subr.bf16.mxu0 %v2336_v14 }
 0x727   :  { %v2342_v5 = vpack.c.bf16 %v2042_v6, %v2041_v10  ;;  %2499 = vmatpush1.bf16.msra.mxu1 %v2347_v7  ;;  %v2279_v62 = vpop.permute.xlu1 %2278  ;;  %v9841_v10 = vld [vmem:[#allocation90_spill] sm:$0xff] }
 0x728   :  { %2500 = vmatprep.subr.bf16.mxu1 %v2343_v33  ;;  %v2143_v20 = vpop.permute.xlu0 %2142  ;;  %v2320_v25 = vmul.f32 %v9794_v49, %v2279_v62  ;;  %v9842_v6 = vld [vmem:[#allocation86_spill] sm:$0xff] }
 0x729   :  { %v2216_v60 = vmul.f32 %v9822_v26, %v2143_v20  ;;  %3040 = vperm.xlu0 %5898, %v9823_v63   ;;  %2390 = vmatpush1.bf16.msra.mxu0 %v2335_v9  ;;  %v9843_v9 = vld [vmem:[#allocation85_spill] sm:$0xff]  ;;  %v9844_v20 = vld [vmem:[#allocation87_spill] sm:$0xff]  ;;  %v9850_v62 = vld [vmem:[#allocation98_spill] sm:$0xff] }
 0x72b   :  { %v2338_v22 = vpack.c.bf16 %v2216_v60, %v2215_v51  ;;  %2501 = vmatpush1.bf16.msra.mxu1 %v2342_v5  ;;  %v2269_v8 = vpop.permute.xlu1 %2268  ;;  %v9845_v60 = vld [vmem:[#allocation35_spill] sm:$0xff] }
 0x72c   :  { %v1967_v27 = vpop.permute.xlu0 %1966  ;;  %4880 = vmatmul.mubr.msk.bf16.vlgmr.msra.gmra.mxu0 %vm8373_vm0, %v6313_v4  ;;  %v2318_v5 = vmul.f32 %v9798_v30, %v2269_v8  ;;  %v9849_v30 = vld [vmem:[#allocation80_spill] sm:$0xff] }
 0x72d   :  { %v2040_v55 = vmul.f32 %v9822_v26, %v1967_v27  ;;  %3048 = vperm.xlu0 %5898, %v9828_v50   ;;  %2502 = vmatprep.subr.bf16.mxu1 %v2338_v22 }
 0x72e   :  { %2417 = vmatprep.mubr.bf16.mxu0 %v9829_v42 }
 0x72f   :  { %v2337_v58 = vpack.c.bf16 %v2040_v55, %v2039_v35  ;;  %v2259_v7 = vpop.permute.xlu1 %2258 }
 0x730   :  { %v2316_v55 = vmul.f32 %v9802_v28, %v2259_v7  ;;  %v9851_v28 = vld [vmem:[#allocation84_spill] sm:$0xff]  ;;  %v9873_v7 = vld [vmem:[#allocation43_spill] sm:$0xff] }
 0x731   :  { %v2309_v13 = vpop.permute.xlu0 %2308  ;;  %2503 = vmatpush1.bf16.msra.mxu1 %v2337_v58  ;;  %vm9874_vm4 = vnez %v9873_v7 }
 0x732   :  { %v2326_v24 = vmul.f32 %v9783_v15, %v2309_v13  ;;  %5439 = vmatprep.subr.mxu1 %v9834_v46  ;;  %v2369_v15 = vpack.c.bf16 %v2324_v29, %v2323_v47  ;;  %v9853_v47 = vld [vmem:[#allocation38_spill] sm:$0xff] }
 0x733   :  { %v2249_v27 = vpop.permute.xlu1 %2248 }
 0x734   :  { %v2374_v16 = vpack.c.bf16 %v2326_v24, %v2325_v31  ;;  %4882 = vmatmul.mubr.msk.bf16.gmra.mxu0 %vm8389_vm15, %v6313_v4  ;;  %4896 = vmatmul.mubr.msk.bf16.vlgmr.msra.gmra.mxu1 %vm8373_vm0, %v6313_v4  ;;  %v2314_v31 = vmul.f32 %v9813_v61, %v2249_v27 }
 0x735   :  { %v2284_v14 = vpop.permute.xlu0 %2283  ;;  %5440 = vmatpush3.msra.mxu1 %v9834_v46  ;;  %2427 = vmatprep.mubr.bf16.mxu0 %v9829_v42  ;;  %v9852_v46 = vld [vmem:[#allocation37_spill] sm:$0xff] }
 0x736   :  { %5407 = vmatprep.subr.bf16.mxu0 %v2374_v16  ;;  %5441 = vmatprep.subr.mxu1 %v9835_v1  ;;  %v2321_v39 = vmul.f32 %v9791_v43, %v2284_v14 }
 0x737   :  { %5408 = vmatpush3.bf16.msra.mxu0 %v2374_v16  ;;  %5442 = vmatpush3.msra.mxu1 %v9835_v1  ;;  %v2239_v29 = vpop.permute.xlu1 %2238  ;;  %v9856_v16 = vld [vmem:[#allocation96_spill] sm:$0xff]  ;;  %v9857_v1 = vld [vmem:[#allocation79_spill] sm:$0xff] }
 0x738   :  { %5409 = vmatprep.subr.bf16.mxu0 %v2369_v15  ;;  %5443 = vmatprep.subr.mxu1 %v9836_v0  ;;  %v2364_v44 = vpack.c.bf16 %v2322_v17, %v2321_v39  ;;  %v2312_v61 = vmul.f32 %v9822_v26, %v2239_v29  ;;  %v9859_v26 = vld [vmem:[#allocation88_spill] sm:$0xff]  ;;  %v9860_v39 = vld [vmem:[#allocation39_spill] sm:$0xff] }
 0x739   :  { %v2274_v2 = vpop.permute.xlu0 %2273  ;;  %5444 = vmatpush3.msra.mxu1 %v9836_v0  ;;  %2530 = vmatprep.mubr.bf16.mxu1 %v9829_v42  ;;  %v9861_v0 = vld [vmem:[#allocation40_spill] sm:$0xff] }
 0x73a   :  { %v2319_v43 = vmul.f32 %v9795_v23, %v2274_v2  ;;  %5445 = vmatprep.subr.mxu1 %v9841_v10  ;;  %vm9862_vm2 = vnez %v9861_v0  ;;  %v9865_v2 = vld [vmem:[#allocation45_spill] sm:$0xff] }
 0x73b   :  { %5410 = vmatpush3.bf16.msra.mxu0 %v2369_v15  ;;  %5446 = vmatpush3.msra.mxu1 %v9841_v10  ;;  %vm8498_vm13 = vmpackc.low %vm9862_vm2, %vm9598_vm6  ;;  %v9867_v10 = vld [vmem:[#allocation41_spill] sm:$0xff]  ;;  %v2851_v18 = vpop.permute.xlu1 %2850 }
 0x73c   :  { %4884 = vmatmul.mubr.msk.bf16.gmra.mxu0 %vm8419_vm3, %v6313_v4  ;;  %4898 = vmatmul.mubr.msk.bf16.gmra.mxu1 %vm8389_vm15, %v6313_v4  ;;  %v2359_v33 = vpack.c.bf16 %v2320_v25, %v2319_v43  ;;  %v9866_v43 = vld [vmem:[#allocation46_spill] sm:$0xff]  ;;  %vm9868_vm2 = vnez %v9867_v10 }
 0x73d   :  { %5411 = vmatprep.subr.bf16.mxu0 %v2364_v44  ;;  %5447 = vmatprep.subr.mxu1 %v9842_v6  ;;  %v2264_v23 = vpop.permute.xlu0 %2263 }
 0x73e   :  { %5448 = vmatpush3.msra.mxu1 %v9842_v6  ;;  %2437 = vmatprep.mubr.bf16.mxu0 %v9829_v42  ;;  %v2317_v49 = vmul.f32 %v9799_v12, %v2264_v23  ;;  %v9875_v6 = vld [vmem:[#allocation44_spill] sm:$0xff] }
 0x73f   :  { %5449 = vmatprep.subr.mxu1 %v9843_v9  ;;  %5412 = vmatpush3.bf16.msra.mxu0 %v2364_v44  ;;  %v9869_v44 = vld [vmem:[#allocation42_spill] sm:$0xff]  ;;  %vm9876_vm1 = vnez %v9875_v6  ;;  %v2856_v56 = vpop.permute.xlu1 %2855  ;;  %v3067_v6 = vld [vmem:[#allocation2 + $0x80] sm:$0xff]  ;;  %v3059_v23 = vld [vmem:[#allocation2 + $0xd8] sm:$0xff] }
 0x740   :  { %5450 = vmatpush3.msra.mxu1 %v9843_v9  ;;  %5413 = vmatprep.subr.bf16.mxu0 %v2359_v33  ;;  %v2354_v35 = vpack.c.bf16 %v2318_v5, %v2317_v49  ;;  %vm9870_vm6 = vnez %v9869_v44 }
 0x741   :  { %5451 = vmatprep.subr.mxu1 %v9844_v20  ;;  %v2254_v51 = vpop.permute.xlu0 %2253  ;;  %2540 = vmatprep.mubr.bf16.mxu1 %v9829_v42  ;;  %vm8519_vm9 = vmpackc.low %vm9870_vm6, %vm9868_vm2 }
 0x742   :  { %v2315_v12 = vmul.f32 %v9808_v38, %v2254_v51  ;;  %5452 = vmatpush3.msra.mxu1 %v9844_v20  ;;  %vm8535_vm6 = vmpackc.low %vm9876_vm1, %vm9874_vm4 }
 0x743   :  { %5453 = vmatprep.subr.mxu1 %v9849_v30  ;;  %5414 = vmatpush3.bf16.msra.mxu0 %v2359_v33 }
 0x744   :  { %5454 = vmatpush3.msra.mxu1 %v9849_v30  ;;  %4886 = vmatmul.mubr.msk.bf16.gmra.mxu0 %vm8446_vm5, %v6313_v4  ;;  %v2349_v58 = vpack.c.bf16 %v2316_v55, %v2315_v12  ;;  %v3052_v12 = vld [vmem:[#allocation2 + $0x8] sm:$0xff]  ;;  %v3056_v30 = vld [vmem:[#allocation2 + $0xf0] sm:$0xff] }
 0x745   :  { %4900 = vmatmul.mubr.msk.bf16.gmra.mxu1 %vm8419_vm3, %v6313_v4  ;;  %5415 = vmatprep.subr.bf16.mxu0 %v2354_v35  ;;  %v2244_v38 = vpop.permute.xlu0 %2243 }
 0x746   :  { %5455 = vmatprep.subr.mxu1 %v9850_v62  ;;  %2447 = vmatprep.mubr.bf16.mxu0 %v9829_v42  ;;  %v2313_v13 = vmul.f32 %v9818_v41, %v2244_v38 }
 0x747   :  { %5456 = vmatpush3.msra.mxu1 %v9850_v62  ;;  %5416 = vmatpush3.bf16.msra.mxu0 %v2354_v35  ;;  %v3057_v62 = vld [vmem:[#allocation2 + $0x70] sm:$0xff] }
 0x748   :  { %5457 = vmatprep.subr.mxu1 %v9851_v28  ;;  %5417 = vmatprep.subr.bf16.mxu0 %v2349_v58  ;;  %v2344_v15 = vpack.c.bf16 %v2314_v31, %v2313_v13  ;;  %v3137_v41 = vmul.f32 %v3057_v62, %v2851_v18 }
 0x749   :  { %5458 = vmatpush3.msra.mxu1 %v9851_v28  ;;  %v2234_v24 = vpop.permute.xlu0 %2233  ;;  %2550 = vmatprep.mubr.bf16.mxu1 %v9829_v42  ;;  %v3136_v28 = vmul.f32 %v3056_v30, %v2851_v18 }
 0x74a   :  { %5459 = vmatprep.subr.mxu1 %v9856_v16  ;;  %v2311_v14 = vmul.f32 %v9821_v34, %v2234_v24  ;;  %v9858_v34 = vld [vmem:[#allocation81_spill] sm:$0xff]  ;;  %v3061_v24 = vld [vmem:[#allocation2 + $0x158] sm:$0xff] }
 0x74b   :  { %5460 = vmatpush3.msra.mxu1 %v9856_v16  ;;  %5418 = vmatpush3.bf16.msra.mxu0 %v2349_v58 }
 0x74c   :  { %5461 = vmatprep.subr.mxu1 %v9857_v1  ;;  %4888 = vmatmul.mubr.msk.bf16.gmra.mxu0 %vm8473_vm11, %v6313_v4  ;;  %v2339_v8 = vpack.c.bf16 %v2312_v61, %v2311_v14  ;;  %v3054_v61 = vld [vmem:[#allocation2 + $0x28] sm:$0xff] }
 0x74d   :  { %5462 = vmatpush3.msra.mxu1 %v9857_v1  ;;  %5419 = vmatprep.subr.bf16.mxu0 %v2344_v15 }
 0x74e   :  { %4902 = vmatmul.mubr.msk.bf16.gmra.mxu1 %vm8446_vm5, %v6313_v4  ;;  %5463 = vmatprep.subr.mxu1 %v9858_v34 }
 0x74f   :  { %5464 = vmatpush3.msra.mxu1 %v9858_v34  ;;  %5420 = vmatpush3.bf16.msra.mxu0 %v2344_v15  ;;  %v3062_v15 = vld [vmem:[#allocation2 + $0x108] sm:$0xff] }
 0x750   :  { %5465 = vmatprep.subr.mxu1 %v9859_v26  ;;  %5421 = vmatprep.subr.bf16.mxu0 %v2339_v8 }
 0x751   :  { %5466 = vmatpush3.msra.mxu1 %v9859_v26  ;;  %2457 = vmatprep.mubr.bf16.mxu0 %v9829_v42 }
 0x752   :  { %5467 = vmatprep.subr.mxu1 %v9865_v2  ;;  %2560 = vmatprep.mubr.bf16.mxu1 %v9829_v42 }
 0x753   :  { %5468 = vmatpush3.msra.mxu1 %v9865_v2  ;;  %5422 = vmatpush3.bf16.msra.mxu0 %v2339_v8  ;;  %v3141_v8 = vmul.f32 %v3061_v24, %v2856_v56  ;;  %v3064_v24 = vld [vmem:[#allocation2 + $0xc0] sm:$0xff] }
 0x754   :  { %5469 = vmatprep.subr.mxu1 %v9866_v43  ;;  %4890 = vmatmul.mubr.msk.bf16.gmra.mxu0 %vm8498_vm13, %v6313_v4 }
 0x755   :  { %5470 = vmatpush3.msra.mxu1 %v9866_v43  ;;  %2467 = vmatprep.mubr.bf16.mxu0 %v9829_v42  ;;  %v3142_v43 = vmul.f32 %v3062_v15, %v2856_v56  ;;  %v3071_v56 = vld [vmem:[#allocation2 + $0x1d8] sm:$0xff] }
 0x756   :  { %4904 = vmatmul.mubr.msk.bf16.gmra.mxu1 %vm8473_vm11, %v6313_v4 }
 0x757   :  { %2570 = vmatprep.mubr.bf16.mxu1 %v9829_v42 }
 0x75c   :  { %4892 = vmatmul.mubr.msk.bf16.gmra.mxu0 %vm8519_vm9, %v6313_v4 }
 0x75d   :  { %2477 = vmatprep.mubr.bf16.mxu0 %v9829_v42 }
 0x75e   :  { %4906 = vmatmul.mubr.msk.bf16.gmra.mxu1 %vm8498_vm13, %v6313_v4 }
 0x75f   :  { %2580 = vmatprep.mubr.bf16.mxu1 %v9829_v42 }
 0x764   :  { %4894 = vmatmul.mubr.msk.bf16.gmra.mxu0 %vm8535_vm6, %v6313_v4 }
 0x765   :  { %5423 = vmatprep.mubr.msk.bf16.mxu0 %vm8373_vm0, %v6313_v4  ;;  %vm9886_vm0 = vnez %v9869_v44 }
 0x766   :  { %4908 = vmatmul.mubr.msk.bf16.gmra.mxu1 %vm8519_vm9, %v6313_v4 }
 0x767   :  { %2590 = vmatprep.mubr.bf16.mxu1 %v9829_v42  ;;  %v2846_v42 = vpop.permute.xlu0 %2845 }
 0x768   :  { %v3132_v38 = vmul.f32 %v3052_v12, %v2846_v42 }
 0x76b   :  { %v8609_v21 = vpop.permute.xlu0 %2860 }
 0x76c   :  { %5424 = vmatmul.mubr.msk.bf16.vlgmr.msra.gmra.mxu0 %vm8389_vm15, %v6313_v4 }
 0x76d   :  { %5427 = vmatprep.mubr.msk.bf16.mxu0 %vm8419_vm3, %v6313_v4 }
 0x76e   :  { %4910 = vmatmul.mubr.msk.bf16.gmra.mxu1 %vm8535_vm6, %v6313_v4 }
 0x76f   :  { %5471 = vmatprep.mubr.msk.f32.mxu1 %vm6636_vm7, %v6314_v45  ;;  %vm9879_vm7 = vnez %v9838_v59  ;;  %v8613_v54 = vpop.permute.xlu0 %2870 }
 0x773   :  { %v8617_v48 = vpop.permute.xlu0 %2880 }
 0x774   :  { %5428 = vmatmul.mubr.msk.bf16.gmra.mxu0 %vm8446_vm5, %v6313_v4 }
 0x775   :  { %5431 = vmatprep.mubr.msk.bf16.mxu0 %vm8473_vm11, %v6313_v4 }
 0x776   :  { %5472 = vmatmul.mubr.msk.f32.vlgmr.msra.gmra.mxu1 %vm6645_vm8, %v6314_v45  ;;  %vm9880_vm8 = vnez %v9845_v60 }
 0x777   :  { %5474 = vmatprep.mubr.msk.f32.mxu1 %vm6656_vm10, %v6314_v45  ;;  %vm9881_vm10 = vnez %v9846_v11  ;;  %v8621_v49 = vpop.permute.xlu0 %2890  ;;  %v3051_v11 = vld [vmem:[#allocation2 + $0xc8] sm:$0xff] }
 0x778   :  { %v3131_v35 = vmul.f32 %v3051_v11, %v2846_v42 }
 0x77a   :  { %5475 = vmatmul.mubr.msk.f32.gmra.mxu1 %vm6667_vm12, %v6314_v45  ;;  %vm9882_vm12 = vnez %v9852_v46  ;;  %v3053_v46 = vld [vmem:[#allocation2 + $0x40] sm:$0xff] }
 0x77b   :  { %5477 = vmatprep.mubr.msk.f32.mxu1 %vm6678_vm14, %v6314_v45  ;;  %vm9883_vm14 = vnez %v9853_v47  ;;  %v8625_v5 = vpop.permute.xlu0 %2900 }
 0x77c   :  { %5432 = vmatmul.mubr.msk.bf16.gmra.mxu0 %vm8498_vm13, %v6313_v4  ;;  %vm9885_vm13 = vnez %v9861_v0  ;;  %v3058_v0 = vld [vmem:[#allocation2 + $0x120] sm:$0xff] }
 0x77d   :  { %5435 = vmatprep.mubr.msk.bf16.mxu0 %vm8519_vm9, %v6313_v4  ;;  %vm9884_vm9 = vnez %v9860_v39  ;;  %v3066_v39 = vld [vmem:[#allocation2 + $0x200] sm:$0xff] }
 0x77e   :  { %5478 = vmatmul.mubr.msk.f32.gmra.mxu1 %vm9879_vm7, %v6314_v45  ;;  %v3146_v11 = vmul.f32 %v3066_v39, %v8609_v21 }
 0x77f   :  { %5480 = vmatprep.mubr.msk.f32.mxu1 %vm9880_vm8, %v6314_v45  ;;  %v8627_v51 = vpop.permute.xlu0 %2910 }
 0x782   :  { %5481 = vmatmul.mubr.msk.f32.gmra.mxu1 %vm9881_vm10, %v6314_v45 }
 0x783   :  { %5483 = vmatprep.mubr.msk.f32.mxu1 %vm9882_vm12, %v6314_v45  ;;  %v8631_v22 = vpop.permute.xlu0 %2920 }
 0x784   :  { %5436 = vmatmul.mubr.msk.bf16.gmra.mxu0 %vm8535_vm6, %v6313_v4  ;;  %v8605_v4 = vpop.permute.xlu1 %2865 }
 0x786   :  { %5484 = vmatmul.mubr.msk.f32.gmra.mxu1 %vm9883_vm14, %v6314_v45 }
 0x787   :  { %5486 = vmatprep.mubr.msk.f32.mxu1 %vm9884_vm9, %v6314_v45  ;;  %v2929_v31 = vpop.permute.xlu0 %2928 }
 0x788   :  { %v8607_v40 = vpop.permute.xlu1 %2875  ;;  %v3138_v12 = vmul.f32 %v3058_v0, %v2929_v31  ;;  %v3139_v62 = vmul.f32 %v3059_v23, %v2929_v31  ;;  %v3076_v31 = vld [vmem:[#allocation2 + $0x48] sm:$0xff] }
 0x789   :  { %v3156_v23 = vmul.f32 %v3076_v31, %v8613_v54 }
 0x78a   :  { %5487 = vmatmul.mubr.msk.f32.gmra.mxu1 %vm9885_vm13, %v6314_v45 }
 0x78b   :  { %5489 = vmatprep.mubr.msk.f32.mxu1 %vm9868_vm2, %v6314_v45  ;;  %v8637_v44 = vpop.permute.xlu0 %2940 }
 0x78c   :  { %v8611_v19 = vpop.permute.xlu1 %2885 }
 0x78e   :  { %5490 = vmatmul.mubr.msk.f32.gmra.mxu1 %vm9886_vm0, %v6314_v45 }
 0x78f   :  { %5492 = vmatprep.mubr.msk.f32.mxu1 %vm9874_vm4, %v6314_v45  ;;  %v8645_v15 = vpop.permute.xlu0 %2948 }
 0x790   :  { %v8615_v59 = vpop.permute.xlu1 %2895 }
 0x792   :  { %5493 = vmatmul.mubr.msk.f32.gmra.mxu1 %vm9876_vm1, %v6314_v45  ;;  %vm9888_vm1 = vcmask 23552  }
 0x793   :  { %vm9889_vm4 = vmmov %vm9888_vm1 }
 0x794   :  { %v8619_v33 = vpop.permute.xlu1 %2905  ;;  %vm9891_vm2 = vmmov %vm9888_vm1 }
 0x795   :  { %vm9892_vm6 = vmmov %vm9888_vm1 }
 0x796   :  { %vm9894_vm15 = vmmov %vm9888_vm1 }
 0x797   :  { %vm9895_vm3 = vmmov %vm9888_vm1 }
 0x798   :  { %v8623_v9 = vpop.permute.xlu1 %2915  ;;  %vm9897_vm5 = vmmov %vm9888_vm1 }
 0x799   :  { %vm9898_vm11 = vmmov %vm9888_vm1 }
 0x79a   :  { %vm9900_vm7 = vmmov %vm9888_vm1 }
 0x79b   :  { %vm9901_vm8 = vmmov %vm9888_vm1 }
 0x79c   :  { %v2925_v20 = vpop.permute.xlu1 %2924  ;;  %vm9903_vm10 = vmmov %vm9888_vm1 }
 0x79d   :  { %v3133_v34 = vmul.f32 %v3053_v46, %v2925_v20  ;;  %v3134_v10 = vmul.f32 %v3054_v61, %v2925_v20  ;;  %v3063_v20 = vld [vmem:[#allocation2 + $0x220] sm:$0xff]  ;;  %vm9904_vm12 = vmmov %vm9888_vm1 }
 0x79e   :  { %vm9906_vm14 = vmmov %vm9888_vm1 }
 0x79f   :  { %vm9907_vm9 = vmmov %vm9888_vm1 }
 0x7a0   :  { %v8629_v60 = vpop.permute.xlu1 %2932  ;;  %vm9908_vm13 = vmmov %vm9888_vm1 }
 0x7a1   :  { %v3144_v39 = vmul.f32 %v3064_v24, %v8629_v60  ;;  %vm9909_vm0 = vmmov %vm9888_vm1 }
 0x7a4   :  { %v8633_v27 = vpop.permute.xlu1 %2936 }
 0x7a8   :  { %v8635_v16 = vpop.permute.xlu1 %2944 }
 0x7ac   :  { %v8639_v42 = vpop.permute.xlu1 %2952 }
 0x7b0   :  { %v8649_v0 = vpop.permute.xlu1 %2960 }
 0x7ec   :  { %v2409_v55 = vpop.f32.mrf.mxu0 }
 0x7ed   :  { %v3211_v58 = vadd.f32 %v3131_v35, %v2409_v55 }
 0x7ee   :  { %v2411_v13 = vpop.f32.mrf.mxu0 }
 0x7ef   :  { %3291 = vst [vmem:[#allocation2 + $0xc8] sm:$0xff] %v3211_v58  ;;  %v3212_v29 = vadd.f32 %v3132_v38, %v2411_v13  ;;  %v3147_v58 = vmul.f32 %v3067_v6, %v8609_v21  ;;  %v3068_v21 = vld [vmem:[#allocation2 + $0x30] sm:$0xff] }
 0x7f0   :  { %v2413_v47 = vpop.f32.mrf.mxu0  ;;  %v3148_v6 = vmul.f32 %v3068_v21, %v8633_v27  ;;  %v3087_v21 = vld [vmem:[#allocation2 + $0x1d0] sm:$0xff] }
 0x7f1   :  { %3292 = vst [vmem:[#allocation2 + $0x8] sm:$0xff] %v3212_v29  ;;  %v3216_v14 = vadd.f32 %v3136_v28, %v2413_v47  ;;  %v3072_v29 = vld [vmem:[#allocation2 + $0x1a0] sm:$0xff] }
 0x7f2   :  { %v2415_v1 = vpop.f32.mrf.mxu0 }
 0x7f3   :  { %3296 = vst [vmem:[#allocation2 + $0xf0] sm:$0xff] %v3216_v14  ;;  %v3217_v26 = vadd.f32 %v3137_v41, %v2415_v1  ;;  %v3151_v41 = vmul.f32 %v3071_v56, %v8605_v4  ;;  %v3143_v14 = vmul.f32 %v3063_v20, %v8629_v60  ;;  %v8655_v56 = vpop.permute.xlu0 %2956 }
 0x7f4   :  { %v2419_v17 = vpop.f32.mrf.mxu0  ;;  %v2522_v2 = vpop.f32.mrf.mxu1 }
 0x7f5   :  { %3297 = vst [vmem:[#allocation2 + $0x70] sm:$0xff] %v3217_v26  ;;  %v3221_v25 = vadd.f32 %v3141_v8, %v2419_v17  ;;  %v3213_v7 = vadd.f32 %v3133_v34, %v2522_v2  ;;  %v3152_v26 = vmul.f32 %v3072_v29, %v8605_v4  ;;  %v3074_v29 = vld [vmem:[#allocation2 + $0x218] sm:$0xff] }
 0x7f6   :  { %v2421_v45 = vpop.f32.mrf.mxu0  ;;  %v2524_v18 = vpop.f32.mrf.mxu1  ;;  %v3154_v31 = vmul.f32 %v3074_v29, %v8637_v44 }
 0x7f7   :  { %3301 = vst [vmem:[#allocation2 + $0x158] sm:$0xff] %v3221_v25  ;;  %3293 = vst [vmem:[#allocation2 + $0x40] sm:$0xff] %v3213_v7  ;;  %v3222_v35 = vadd.f32 %v3142_v43, %v2421_v45  ;;  %v3214_v30 = vadd.f32 %v3134_v10, %v2524_v18  ;;  %v3069_v43 = vld [vmem:[#allocation2 + $0x10] sm:$0xff]  ;;  %v3077_v10 = vld [vmem:[#allocation2 + $0x68] sm:$0xff] }
 0x7f8   :  { %v2423_v55 = vpop.f32.mrf.mxu0  ;;  %v2526_v38 = vpop.f32.mrf.mxu1  ;;  %v3081_v18 = vld [vmem:[#allocation2 + $0xb8] sm:$0xff] }
 0x7f9   :  { %3302 = vst [vmem:[#allocation2 + $0x108] sm:$0xff] %v3222_v35  ;;  %3294 = vst [vmem:[#allocation2 + $0x28] sm:$0xff] %v3214_v30  ;;  %v3226_v13 = vadd.f32 %v3146_v11, %v2423_v55  ;;  %v3218_v28 = vadd.f32 %v3138_v12, %v2526_v38  ;;  %v3149_v12 = vmul.f32 %v3069_v43, %v8633_v27  ;;  %v3073_v30 = vld [vmem:[#allocation2 + $0x248] sm:$0xff] }
 0x7fa   :  { %v2425_v46 = vpop.f32.mrf.mxu0  ;;  %v2528_v47 = vpop.f32.mrf.mxu1  ;;  %v3157_v35 = vmul.f32 %v3077_v10, %v8613_v54  ;;  %v3082_v38 = vld [vmem:[#allocation2 + $0x268] sm:$0xff]  ;;  %v3086_v54 = vld [vmem:[#allocation2 + $0x198] sm:$0xff]  ;;  %v3091_v10 = vld [vmem:[#allocation2] sm:$0xff] }
 0x7fb   :  { %3306 = vst [vmem:[#allocation2 + $0x200] sm:$0xff] %v3226_v13  ;;  %3298 = vst [vmem:[#allocation2 + $0x120] sm:$0xff] %v3218_v28  ;;  %v3227_v61 = vadd.f32 %v3147_v58, %v2425_v46  ;;  %v3219_v1 = vadd.f32 %v3139_v62, %v2528_v47  ;;  %v3161_v13 = vmul.f32 %v3081_v18, %v8607_v40  ;;  %v8658_v28 = vpop.permute.xlu1 %2968 }
 0x7fc   :  { %v2429_v8 = vpop.f32.mrf.mxu0  ;;  %v2532_v34 = vpop.f32.mrf.mxu1  ;;  %v3153_v46 = vmul.f32 %v3073_v30, %v8637_v44  ;;  %v3167_v44 = vmul.f32 %v3087_v21, %v8617_v48  ;;  %v3089_v21 = vld [vmem:[#allocation2 + $0x1a8] sm:$0xff] }
 0x7fd   :  { %3307 = vst [vmem:[#allocation2 + $0x80] sm:$0xff] %v3227_v61  ;;  %3299 = vst [vmem:[#allocation2 + $0xd8] sm:$0xff] %v3219_v1  ;;  %v3231_v17 = vadd.f32 %v3151_v41, %v2429_v8  ;;  %v3223_v2 = vadd.f32 %v3143_v14, %v2532_v34  ;;  %v3162_v41 = vmul.f32 %v3082_v38, %v8607_v40  ;;  %v3078_v14 = vld [vmem:[#allocation2 + $0x238] sm:$0xff] }
 0x7fe   :  { %v2431_v25 = vpop.f32.mrf.mxu0  ;;  %v2534_v7 = vpop.f32.mrf.mxu1  ;;  %v3158_v40 = vmul.f32 %v3078_v14, %v8635_v16  ;;  %v3084_v38 = vld [vmem:[#allocation2 + $0x98] sm:$0xff] }
 0x7ff   :  { %3311 = vst [vmem:[#allocation2 + $0x1d8] sm:$0xff] %v3231_v17  ;;  %3303 = vst [vmem:[#allocation2 + $0x220] sm:$0xff] %v3223_v2  ;;  %v3232_v45 = vadd.f32 %v3152_v26, %v2431_v25  ;;  %v3224_v4 = vadd.f32 %v3144_v39, %v2534_v7  ;;  %v3079_v26 = vld [vmem:[#allocation2 + $0x188] sm:$0xff]  ;;  %v3166_v39 = vmul.f32 %v3086_v54, %v8617_v48  ;;  %v8664_v17 = vpop.permute.xlu0 %2964 }
 0x800   :  { %v2433_v60 = vpop.f32.mrf.mxu0  ;;  %v2536_v11 = vpop.f32.mrf.mxu1  ;;  %v3159_v18 = vmul.f32 %v3079_v26, %v8635_v16  ;;  %v3164_v14 = vmul.f32 %v3084_v38, %v8645_v15 }
 0x801   :  { %3312 = vst [vmem:[#allocation2 + $0x1a0] sm:$0xff] %v3232_v45  ;;  %3304 = vst [vmem:[#allocation2 + $0xc0] sm:$0xff] %v3224_v4  ;;  %v3236_v20 = vadd.f32 %v3156_v23, %v2433_v60  ;;  %v3228_v55 = vadd.f32 %v3148_v6, %v2536_v11  ;;  %v8667_v6 = vpop.permute.xlu1 %2976  ;;  %v3092_v4 = vld [vmem:[#allocation2 + $0x1b0] sm:$0xff]  ;;  %v3083_v60 = vld [vmem:[#allocation2 + $0xf8] sm:$0xff] }
 0x802   :  { %v2435_v58 = vpop.f32.mrf.mxu0  ;;  %v2538_v62 = vpop.f32.mrf.mxu1 }
 0x803   :  { %3316 = vst [vmem:[#allocation2 + $0x48] sm:$0xff] %v3236_v20  ;;  %3308 = vst [vmem:[#allocation2 + $0x30] sm:$0xff] %v3228_v55  ;;  %v3237_v27 = vadd.f32 %v3157_v35, %v2435_v58  ;;  %v3229_v24 = vadd.f32 %v3149_v12, %v2538_v62  ;;  %v3171_v35 = vmul.f32 %v3091_v10, %v8611_v19  ;;  %v3096_v55 = vld [vmem:[#allocation2 + $0x38] sm:$0xff]  ;;  %v8674_v29 = vpop.permute.xlu0 %2972  ;;  %v3093_v10 = vld [vmem:[#allocation2 + $0x90] sm:$0xff] }
 0x804   :  { %v2439_v47 = vpop.f32.mrf.mxu0  ;;  %v3172_v62 = vmul.f32 %v3092_v4, %v8611_v19  ;;  %v3106_v4 = vld [vmem:[#allocation2 + $0x100] sm:$0xff] }
 0x805   :  { %3317 = vst [vmem:[#allocation2 + $0x68] sm:$0xff] %v3237_v27  ;;  %3309 = vst [vmem:[#allocation2 + $0x10] sm:$0xff] %v3229_v24  ;;  %v3241_v61 = vadd.f32 %v3161_v13, %v2439_v47  ;;  %v2542_v1 = vpop.f32.mrf.mxu1  ;;  %v3163_v13 = vmul.f32 %v3083_v60, %v8645_v15  ;;  %v3088_v27 = vld [vmem:[#allocation2 + $0x1e0] sm:$0xff]  ;;  %v3097_v24 = vld [vmem:[#allocation2 + $0x1c8] sm:$0xff]  ;;  %v8676_v47 = vpop.permute.xlu1 %2984 }
 0x806   :  { %v3233_v8 = vadd.f32 %v3153_v46, %v2542_v1  ;;  %v2441_v34 = vpop.f32.mrf.mxu0  ;;  %v3101_v1 = vld [vmem:[#allocation2 + $0xa0] sm:$0xff]  ;;  %v3177_v26 = vmul.f32 %v3097_v24, %v8621_v49 }
 0x807   :  { %3321 = vst [vmem:[#allocation2 + $0xb8] sm:$0xff] %v3241_v61  ;;  %v3242_v2 = vadd.f32 %v3162_v41, %v2441_v34  ;;  %v2544_v43 = vpop.f32.mrf.mxu1  ;;  %v3176_v41 = vmul.f32 %v3096_v55, %v8621_v49  ;;  %v3168_v34 = vmul.f32 %v3088_v27, %v8639_v42  ;;  %v3181_v15 = vmul.f32 %v3101_v1, %v8615_v59  ;;  %v3094_v49 = vld [vmem:[#allocation2 + $0x270] sm:$0xff]  ;;  %v3107_v55 = vld [vmem:[#allocation2 + $0x1b8] sm:$0xff]  ;;  %v3112_v1 = vld [vmem:[#allocation2 + $0x180] sm:$0xff] }
 0x808   :  { %3313 = vst [vmem:[#allocation2 + $0x248] sm:$0xff] %v3233_v8  ;;  %v3234_v25 = vadd.f32 %v3154_v31, %v2544_v43  ;;  %v2443_v7 = vpop.f32.mrf.mxu0  ;;  %v3102_v43 = vld [vmem:[#allocation2 + $0x1f8] sm:$0xff] }
 0x809   :  { %3322 = vst [vmem:[#allocation2 + $0x268] sm:$0xff] %v3242_v2  ;;  %v3246_v23 = vadd.f32 %v3166_v39, %v2443_v7  ;;  %v2546_v45 = vpop.f32.mrf.mxu1  ;;  %v3169_v7 = vmul.f32 %v3089_v21, %v8639_v42  ;;  %v3099_v27 = vld [vmem:[#allocation2 + $0x78] sm:$0xff] }
 0x80a   :  { %3314 = vst [vmem:[#allocation2 + $0x218] sm:$0xff] %v3234_v25  ;;  %v3238_v11 = vadd.f32 %v3158_v40, %v2546_v45  ;;  %v2445_v12 = vpop.f32.mrf.mxu0 }
 0x80b   :  { %3326 = vst [vmem:[#allocation2 + $0x198] sm:$0xff] %v3246_v23  ;;  %v3247_v30 = vadd.f32 %v3167_v44, %v2445_v12  ;;  %v2548_v20 = vpop.f32.mrf.mxu1  ;;  %v8684_v44 = vpop.permute.xlu0 %2980 }
 0x80c   :  { %3318 = vst [vmem:[#allocation2 + $0x238] sm:$0xff] %v3238_v11  ;;  %v3239_v58 = vadd.f32 %v3159_v18, %v2548_v20  ;;  %v2449_v48 = vpop.f32.mrf.mxu0  ;;  %v3182_v11 = vmul.f32 %v3102_v43, %v8615_v59  ;;  %v8687_v12 = vpop.permute.xlu1 %2992  ;;  %v3098_v20 = vld [vmem:[#allocation2 + $0x18] sm:$0xff] }
 0x80d   :  { %3327 = vst [vmem:[#allocation2 + $0x1d0] sm:$0xff] %v3247_v30  ;;  %v3251_v16 = vadd.f32 %v3171_v35, %v2449_v48  ;;  %v3173_v35 = vmul.f32 %v3093_v10, %v8655_v56  ;;  %v3186_v48 = vmul.f32 %v3106_v4, %v8625_v5  ;;  %v3104_v43 = vld [vmem:[#allocation2 + $0x258] sm:$0xff] }
 0x80e   :  { %3319 = vst [vmem:[#allocation2 + $0x188] sm:$0xff] %v3239_v58  ;;  %v2552_v54 = vpop.f32.mrf.mxu1  ;;  %v2451_v46 = vpop.f32.mrf.mxu0 }
 0x80f   :  { %3331 = vst [vmem:[#allocation2] sm:$0xff] %v3251_v16  ;;  %v3243_v61 = vadd.f32 %v3163_v13, %v2552_v54  ;;  %v3252_v19 = vadd.f32 %v3172_v62, %v2451_v46  ;;  %v3174_v62 = vmul.f32 %v3094_v49, %v8655_v56  ;;  %v3111_v16 = vld [vmem:[#allocation2 + $0x210] sm:$0xff]  ;;  %v3178_v46 = vmul.f32 %v3098_v20, %v8649_v0  ;;  %v3103_v56 = vld [vmem:[#allocation2 + $0x58] sm:$0xff] }
 0x810   :  { %v2554_v31 = vpop.f32.mrf.mxu1  ;;  %v2453_v8 = vpop.f32.mrf.mxu0 }
 0x811   :  { %3323 = vst [vmem:[#allocation2 + $0xf8] sm:$0xff] %v3243_v61  ;;  %3332 = vst [vmem:[#allocation2 + $0x1b0] sm:$0xff] %v3252_v19  ;;  %v3244_v39 = vadd.f32 %v3164_v14, %v2554_v31  ;;  %v3256_v2 = vadd.f32 %v3176_v41, %v2453_v8  ;;  %v3187_v41 = vmul.f32 %v3107_v55, %v8625_v5  ;;  %v8694_v14 = vpop.permute.xlu0 %2988 }
 0x812   :  { %v2556_v40 = vpop.f32.mrf.mxu1  ;;  %v2455_v25 = vpop.f32.mrf.mxu0  ;;  %v3191_v8 = vmul.f32 %v3111_v16, %v8619_v33 }
 0x813   :  { %3324 = vst [vmem:[#allocation2 + $0x98] sm:$0xff] %v3244_v39  ;;  %3336 = vst [vmem:[#allocation2 + $0x38] sm:$0xff] %v3256_v2  ;;  %v3248_v23 = vadd.f32 %v3168_v34, %v2556_v40  ;;  %v3257_v45 = vadd.f32 %v3177_v26, %v2455_v25  ;;  %v3179_v34 = vmul.f32 %v3099_v27, %v8649_v0  ;;  %v8698_v26 = vpop.permute.xlu1 %2996  ;;  %v3116_v2 = vld [vmem:[#allocation2 + $0x60] sm:$0xff]  ;;  %v3117_v0 = vld [vmem:[#allocation2 + $0x138] sm:$0xff] }
 0x814   :  { %v2558_v18 = vpop.f32.mrf.mxu1  ;;  %v2459_v60 = vpop.f32.mrf.mxu0  ;;  %v3192_v25 = vmul.f32 %v3112_v1, %v8619_v33 }
 0x815   :  { %3328 = vst [vmem:[#allocation2 + $0x1e0] sm:$0xff] %v3248_v23  ;;  %3337 = vst [vmem:[#allocation2 + $0x1c8] sm:$0xff] %v3257_v45  ;;  %v3249_v30 = vadd.f32 %v3169_v7, %v2558_v18  ;;  %v3261_v42 = vadd.f32 %v3181_v15, %v2459_v60  ;;  %v3183_v15 = vmul.f32 %v3103_v56, %v8664_v17  ;;  %v3108_v45 = vld [vmem:[#allocation2 + $0x168] sm:$0xff] }
 0x816   :  { %v2562_v38 = vpop.f32.mrf.mxu1  ;;  %v2461_v58 = vpop.f32.mrf.mxu0  ;;  %v3196_v18 = vmul.f32 %v3116_v2, %v8627_v51  ;;  %v3184_v60 = vmul.f32 %v3104_v43, %v8664_v17 }
 0x817   :  { %3329 = vst [vmem:[#allocation2 + $0x1a8] sm:$0xff] %v3249_v30  ;;  %3341 = vst [vmem:[#allocation2 + $0xa0] sm:$0xff] %v3261_v42  ;;  %v3253_v13 = vadd.f32 %v3173_v35, %v2562_v38  ;;  %v3262_v59 = vadd.f32 %v3182_v11, %v2461_v58  ;;  %v8704_v11 = vpop.permute.xlu0 %3000  ;;  %v3121_v30 = vld [vmem:[#allocation2 + $0x118] sm:$0xff]  ;;  %v3109_v42 = vld [vmem:[#allocation2 + $0xd0] sm:$0xff]  ;;  %v3188_v38 = vmul.f32 %v3108_v45, %v8658_v28  ;;  %v8707_v58 = vpop.permute.xlu1 %3004 }
 0x818   :  { %v2564_v24 = vpop.f32.mrf.mxu1  ;;  %v2463_v54 = vpop.f32.mrf.mxu0 }
 0x819   :  { %3333 = vst [vmem:[#allocation2 + $0x90] sm:$0xff] %v3253_v13  ;;  %3342 = vst [vmem:[#allocation2 + $0x1f8] sm:$0xff] %v3262_v59  ;;  %v3254_v61 = vadd.f32 %v3174_v62, %v2564_v24  ;;  %v3266_v19 = vadd.f32 %v3186_v48, %v2463_v54  ;;  %v3197_v48 = vmul.f32 %v3117_v0, %v8627_v51  ;;  %v3122_v13 = vld [vmem:[#allocation2 + $0x128] sm:$0xff]  ;;  %v3113_v59 = vld [vmem:[#allocation2 + $0x130] sm:$0xff] }
 0x81a   :  { %v2566_v21 = vpop.f32.mrf.mxu1  ;;  %v2465_v31 = vpop.f32.mrf.mxu0  ;;  %v3201_v24 = vmul.f32 %v3121_v30, %v8623_v9  ;;  %v3189_v54 = vmul.f32 %v3109_v42, %v8658_v28  ;;  %v3202_v56 = vmul.f32 %v3122_v13, %v8623_v9  ;;  %v3127_v28 = vld [vmem:[#allocation2 + $0x20] sm:$0xff] }
 0x81b   :  { %3334 = vst [vmem:[#allocation2 + $0x270] sm:$0xff] %v3254_v61  ;;  %3346 = vst [vmem:[#allocation2 + $0x100] sm:$0xff] %v3266_v19  ;;  %v3258_v39 = vadd.f32 %v3178_v46, %v2566_v21  ;;  %v3267_v5 = vadd.f32 %v3187_v41, %v2465_v31  ;;  %v3126_v61 = vld [vmem:[#allocation2 + $0x150] sm:$0xff]  ;;  %v3193_v21 = vmul.f32 %v3113_v59, %v8674_v29  ;;  %v8714_v31 = vpop.permute.xlu0 %3008  ;;  %v8716_v43 = vpop.permute.xlu1 %3012 }
 0x81c   :  { %v2568_v10 = vpop.f32.mrf.mxu1  ;;  %v2469_v40 = vpop.f32.mrf.mxu0  ;;  %v3114_v19 = vld [vmem:[#allocation2 + $0x110] sm:$0xff] }
 0x81d   :  { %3338 = vst [vmem:[#allocation2 + $0x18] sm:$0xff] %v3258_v39  ;;  %3347 = vst [vmem:[#allocation2 + $0x1b8] sm:$0xff] %v3267_v5  ;;  %v3259_v7 = vadd.f32 %v3179_v34, %v2568_v10  ;;  %v3271_v23 = vadd.f32 %v3191_v8, %v2469_v40  ;;  %v3118_v39 = vld [vmem:[#allocation2 + $0x208] sm:$0xff]  ;;  %v3206_v10 = vmul.f32 %v3126_v61, %v8631_v22 }
 0x81e   :  { %v2572_v4 = vpop.f32.mrf.mxu1  ;;  %v2471_v49 = vpop.f32.mrf.mxu0  ;;  %v3194_v40 = vmul.f32 %v3114_v19, %v8674_v29  ;;  %v3198_v0 = vmul.f32 %v3118_v39, %v8667_v6 }
 0x81f   :  { %3339 = vst [vmem:[#allocation2 + $0x78] sm:$0xff] %v3259_v7  ;;  %3351 = vst [vmem:[#allocation2 + $0x210] sm:$0xff] %v3271_v23  ;;  %v3263_v35 = vadd.f32 %v3183_v15, %v2572_v4  ;;  %v3272_v33 = vadd.f32 %v3192_v25, %v2471_v49  ;;  %v3119_v15 = vld [vmem:[#allocation2 + $0x240] sm:$0xff]  ;;  %v3207_v4 = vmul.f32 %v3127_v28, %v8631_v22  ;;  %v8724_v13 = vpop.permute.xlu1 %3020 }
 0x820   :  { %v2574_v20 = vpop.f32.mrf.mxu1  ;;  %v2473_v55 = vpop.f32.mrf.mxu0  ;;  %v3065_v7 = vld [vmem:[#allocation2 + $0x140] sm:$0xff]  ;;  %v3199_v30 = vmul.f32 %v3119_v15, %v8667_v6 }
 0x821   :  { %3343 = vst [vmem:[#allocation2 + $0x58] sm:$0xff] %v3263_v35  ;;  %3352 = vst [vmem:[#allocation2 + $0x180] sm:$0xff] %v3272_v33  ;;  %v3264_v62 = vadd.f32 %v3184_v60, %v2574_v20  ;;  %v3276_v17 = vadd.f32 %v3196_v18, %v2473_v55  ;;  %v3123_v60 = vld [vmem:[#allocation2 + $0x1c0] sm:$0xff]  ;;  %v3055_v35 = vld [vmem:[#allocation2 + $0xe8] sm:$0xff]  ;;  %v3145_v42 = vmul.f32 %v3065_v7, %v8698_v26  ;;  %v3017_v20 = vpop.permute.xlu0 %3016 }
 0x822   :  { %v2576_v16 = vpop.f32.mrf.mxu1  ;;  %v2475_v27 = vpop.f32.mrf.mxu0  ;;  %v3203_v59 = vmul.f32 %v3123_v60, %v8684_v44  ;;  %v3128_v26 = vld [vmem:[#allocation2 + $0x178] sm:$0xff]  ;;  %v9887_v60 = vld [vmem:[#allocation95_spill] sm:$0xff] }
 0x823   :  { %3344 = vst [vmem:[#allocation2 + $0x258] sm:$0xff] %v3264_v62  ;;  %3356 = vst [vmem:[#allocation2 + $0x60] sm:$0xff] %v3276_v17  ;;  %v3268_v46 = vadd.f32 %v3188_v38, %v2576_v16  ;;  %v3277_v41 = vadd.f32 %v3197_v48, %v2475_v27  ;;  %v3124_v48 = vld [vmem:[#allocation2 + $0x230] sm:$0xff]  ;;  %v3070_v62 = vld [vmem:[#allocation2 + $0x160] sm:$0xff]  ;;  %v3135_v16 = vmul.f32 %v3055_v35, %v8694_v14 }
 0x824   :  { %v2578_v1 = vpop.f32.mrf.mxu1  ;;  %v2479_v51 = vpop.f32.mrf.mxu0  ;;  %v3150_v61 = vmul.f32 %v3070_v62, %v8704_v11  ;;  %v3105_v62 = vld [vmem:[#allocation2 + $0x260] sm:$0xff] }
 0x825   :  { %3348 = vst [vmem:[#allocation2 + $0x168] sm:$0xff] %v3268_v46  ;;  %3357 = vst [vmem:[#allocation2 + $0x138] sm:$0xff] %v3277_v41  ;;  %v3269_v8 = vadd.f32 %v3189_v54, %v2578_v1  ;;  %v3281_v34 = vadd.f32 %v3201_v24, %v2479_v51  ;;  %v3060_v24 = vld [vmem:[#allocation2 + $0x148] sm:$0xff]  ;;  %v3204_v41 = vmul.f32 %v3124_v48, %v8684_v44  ;;  %v3129_v51 = vld [vmem:[#allocation2 + $0x50] sm:$0xff]  ;;  %v8732_v39 = vpop.permute.xlu0 %3024 }
 0x826   :  { %v2582_v5 = vpop.f32.mrf.mxu1  ;;  %v2481_v2 = vpop.f32.mrf.mxu0 }
 0x827   :  { %3349 = vst [vmem:[#allocation2 + $0xd0] sm:$0xff] %v3269_v8  ;;  %3361 = vst [vmem:[#allocation2 + $0x118] sm:$0xff] %v3281_v34  ;;  %v3273_v9 = vadd.f32 %v3193_v21, %v2582_v5  ;;  %v3282_v25 = vadd.f32 %v3202_v56, %v2481_v2  ;;  %v3085_v56 = vld [vmem:[#allocation2 + $0xe0] sm:$0xff]  ;;  %v3208_v8 = vmul.f32 %v3128_v26, %v8676_v47  ;;  %v3075_v5 = vld [vmem:[#allocation2 + $0x190] sm:$0xff] }
 0x828   :  { %v2584_v23 = vpop.f32.mrf.mxu1  ;;  %v2483_v45 = vpop.f32.mrf.mxu0  ;;  %v3140_v34 = vmul.f32 %v3060_v24, %v8687_v12  ;;  %v3090_v12 = vld [vmem:[#allocation2 + $0x228] sm:$0xff] }
 0x829   :  { %3353 = vst [vmem:[#allocation2 + $0x130] sm:$0xff] %v3273_v9  ;;  %3362 = vst [vmem:[#allocation2 + $0x128] sm:$0xff] %v3282_v25  ;;  %v3274_v49 = vadd.f32 %v3194_v40, %v2584_v23  ;;  %v3286_v18 = vadd.f32 %v3206_v10, %v2483_v45  ;;  %v3372_v10 = vld [vmem:[#allocation3 + $0x8] sm:$0xff]  ;;  %v3209_v40 = vmul.f32 %v3129_v51, %v8676_v47  ;;  %v3029_v25 = vpop.permute.xlu1 %3028  ;;  %v3080_v47 = vld [vmem:[#allocation2 + $0x250] sm:$0xff] }
 0x82a   :  { %v2586_v33 = vpop.f32.mrf.mxu1  ;;  %v2485_v29 = vpop.f32.mrf.mxu0  ;;  %v3165_v9 = vmul.f32 %v3085_v56, %v8716_v43  ;;  %v3388_v35 = vmul.f32 %v9887_v60, %v3372_v10  ;;  %v3095_v26 = vld [vmem:[#allocation2 + $0x1e8] sm:$0xff] }
 0x82b   :  { %3354 = vst [vmem:[#allocation2 + $0x110] sm:$0xff] %v3274_v49  ;;  %3366 = vst [vmem:[#allocation2 + $0x150] sm:$0xff] %v3286_v18  ;;  %v3278_v55 = vadd.f32 %v3198_v0, %v2586_v33  ;;  %v3287_v38 = vadd.f32 %v3207_v4, %v2485_v29  ;;  %v3371_v0 = vld [vmem:[#allocation3] sm:$0xff]  ;;  %v3155_v4 = vmul.f32 %v3075_v5, %v8707_v58  ;;  %v3374_v29 = vld [vmem:[#allocation3 + $0x18] sm:$0xff] }
 0x82c   :  { %v2588_v22 = vpop.f32.mrf.mxu1  ;;  %v5425_v17 = vpop.f32.mrf.mxu0  ;;  %v3387_v48 = vmul.f32 %v8140_v37, %v3371_v0  ;;  %v3185_v37 = vmul.f32 %v3105_v62, %v3029_v25  ;;  %v3379_v62 = vld [vmem:[#allocation3 + $0x40] sm:$0xff] }
 0x82d   :  { %3358 = vst [vmem:[#allocation2 + $0x208] sm:$0xff] %v3278_v55  ;;  %3367 = vst [vmem:[#allocation2 + $0x20] sm:$0xff] %v3287_v38  ;;  %v3279_v6 = vadd.f32 %v3199_v30, %v2588_v22  ;;  %v3225_v27 = vadd.f32 %v5425_v17, %v3145_v42  ;;  %v3170_v30 = vmul.f32 %v3090_v12, %v3017_v20  ;;  %v3033_v42 = vpop.permute.xlu0 %3032  ;;  %v3373_v17 = vld [vmem:[#allocation3 + $0x10] sm:$0xff] }
 0x82e   :  { %v2592_v54 = vpop.f32.mrf.mxu1  ;;  %v2635_v46 = vpop.f32.mrf.mxu0 }
 0x82f   :  { %3359 = vst [vmem:[#allocation2 + $0x240] sm:$0xff] %v3279_v6  ;;  %v3283_v19 = vadd.f32 %v3203_v59, %v2592_v54  ;;  %3305 = vst [vmem:[#allocation2 + $0x140] sm:$0xff] %v3225_v27  ;;  %v3215_v1 = vadd.f32 %v3135_v16, %v2635_v46  ;;  %v8739_v59 = vpop.permute.xlu1 %3036  ;;  %v3160_v16 = vmul.f32 %v3080_v47, %v8714_v31  ;;  %v3376_v46 = vld [vmem:[#allocation3 + $0x28] sm:$0xff]  ;;  %v3110_v31 = vld [vmem:[#allocation2 + $0x278] sm:$0xff] }
 0x830   :  { %v2594_v21 = vpop.f32.mrf.mxu1  ;;  %v5426_v14 = vpop.f32.mrf.mxu0  ;;  %v3390_v27 = vmul.f32 %v8159_v3, %v3374_v29  ;;  %v3380_v47 = vld [vmem:[#allocation3 + $0x48] sm:$0xff] }
 0x831   :  { %3363 = vst [vmem:[#allocation2 + $0x1c0] sm:$0xff] %v3283_v19  ;;  %v3284_v28 = vadd.f32 %v3204_v41, %v2594_v21  ;;  %3295 = vst [vmem:[#allocation2 + $0xe8] sm:$0xff] %v3215_v1  ;;  %v3230_v44 = vadd.f32 %v5426_v14, %v3150_v61  ;;  %v9890_v19 = vld [vmem:[#allocation97_spill] sm:$0xff]  ;;  %v3175_v14 = vmul.f32 %v3095_v26, %v8724_v13  ;;  %v9893_v13 = vld [vmem:[#allocation104_spill] sm:$0xff] }
 0x832   :  { %v2596_v11 = vpop.f32.mrf.mxu1  ;;  %v2638_v2 = vpop.f32.mrf.mxu0  ;;  %v3389_v1 = vmul.f32 %v9890_v19, %v3373_v17  ;;  %v3375_v21 = vld [vmem:[#allocation3 + $0x20] sm:$0xff]  ;;  %v3396_v17 = vmul.f32 %v9810_v53, %v3380_v47 }
 0x833   :  { %3364 = vst [vmem:[#allocation2 + $0x230] sm:$0xff] %v3284_v28  ;;  %v3288_v15 = vadd.f32 %v3208_v8, %v2596_v11  ;;  %3310 = vst [vmem:[#allocation2 + $0x160] sm:$0xff] %v3230_v44  ;;  %v3220_v7 = vadd.f32 %v3140_v34, %v2638_v2  ;;  %v3041_v8 = vpop.permute.xlu0 %3040  ;;  %v3392_v28 = vmul.f32 %v8170_v52, %v3376_v46  ;;  %v3100_v44 = vld [vmem:[#allocation2 + $0x1f0] sm:$0xff]  ;;  %v3378_v2 = vld [vmem:[#allocation3 + $0x38] sm:$0xff]  ;;  %v3045_v10 = vpop.permute.xlu1 %3044 }
 0x834   :  { %v2598_v23 = vpop.f32.mrf.mxu1  ;;  %v5429_v45 = vpop.f32.mrf.mxu0  ;;  %v3180_v0 = vmul.f32 %v3100_v44, %v8732_v39  ;;  %v9899_v46 = vld [vmem:[#allocation108_spill] sm:$0xff] }
 0x835   :  { %3368 = vst [vmem:[#allocation2 + $0x178] sm:$0xff] %v3288_v15  ;;  %v3289_v49 = vadd.f32 %v3209_v40, %v2598_v23  ;;  %3300 = vst [vmem:[#allocation2 + $0x148] sm:$0xff] %v3220_v7  ;;  %v3245_v18 = vadd.f32 %v5429_v45, %v3165_v9  ;;  %v3190_v40 = vmul.f32 %v3110_v31, %v3033_v42  ;;  %v3125_v7 = vld [vmem:[#allocation2 + $0x170] sm:$0xff] }
 0x836   :  { %v5473_v33 = vpop.f32.mrf.mxu1  ;;  %v2651_v43 = vpop.f32.mrf.mxu0  ;;  %v3391_v15 = vmul.f32 %v9893_v13, %v3375_v21  ;;  %v3377_v45 = vld [vmem:[#allocation3 + $0x30] sm:$0xff]  ;;  %v3384_v21 = vld [vmem:[#allocation3 + $0x68] sm:$0xff] }
 0x837   :  { %3369 = vst [vmem:[#allocation2 + $0x50] sm:$0xff] %v3289_v49  ;;  %3325 = vst [vmem:[#allocation2 + $0xe0] sm:$0xff] %v3245_v18  ;;  %v3404_v55 = vadd.f32 %v5473_v33, %v3388_v35  ;;  %v3235_v38 = vadd.f32 %v3155_v4, %v2651_v43  ;;  %v3394_v49 = vmul.f32 %v8181_v36, %v3378_v2  ;;  %v3115_v18 = vld [vmem:[#allocation2 + $0xa8] sm:$0xff]  ;;  %v3049_v43 = vpop.permute.xlu0 %3048  ;;  %v9896_v42 = vld [vmem:[#allocation99_spill] sm:$0xff] }
 0x838   :  { %v2764_v58 = vpop.f32.mrf.mxu1  ;;  %v5430_v22 = vpop.f32.mrf.mxu0  ;;  %v3205_v33 = vmul.f32 %v3125_v7, %v3045_v10  ;;  %v3393_v39 = vmul.f32 %v9896_v42, %v3377_v45  ;;  %v3385_v13 = vld [vmem:[#allocation3 + $0x70] sm:$0xff] }
 0x839   :  { %3420 = vst.msk [vmem:[#allocation3 + $0x8] sm:$0xff] %vm9888_vm1, %v3404_v55  ;;  %3315 = vst [vmem:[#allocation2 + $0x190] sm:$0xff] %v3235_v38  ;;  %v3403_v6 = vadd.f32 %v3387_v48, %v2764_v58  ;;  %v3250_v20 = vadd.f32 %v5430_v22, %v3170_v30  ;;  %v3130_v55 = vld [vmem:[#allocation2 + $0xb0] sm:$0xff]  ;;  %v3195_v58 = vmul.f32 %v3115_v18, %v8739_v59 }
 0x83a   :  { %v5476_v24 = vpop.f32.mrf.mxu1  ;;  %v2654_v54 = vpop.f32.mrf.mxu0  ;;  %v3210_v26 = vmul.f32 %v3130_v55, %v3049_v43 }
 0x83b   :  { %3419 = vst.msk [vmem:[#allocation3] sm:$0xff] %vm9889_vm4, %v3403_v6  ;;  %3330 = vst [vmem:[#allocation2 + $0x228] sm:$0xff] %v3250_v20  ;;  %v3406_v41 = vadd.f32 %v5476_v24, %v3390_v27  ;;  %v3240_v61 = vadd.f32 %v3160_v16, %v2654_v54  ;;  %v3120_v16 = vld [vmem:[#allocation2 + $0x88] sm:$0xff]  ;;  %v3382_v27 = vld [vmem:[#allocation3 + $0x58] sm:$0xff] }
 0x83c   :  { %v2774_v51 = vpop.f32.mrf.mxu1  ;;  %v5433_v56 = vpop.f32.mrf.mxu0  ;;  %v3200_v19 = vmul.f32 %v3120_v16, %v3041_v8  ;;  %v3398_v31 = vmul.f32 %v9820_v32, %v3382_v27  ;;  %v3386_v32 = vld [vmem:[#allocation3 + $0x78] sm:$0xff] }
 0x83d   :  { %3422 = vst.msk [vmem:[#allocation3 + $0x18] sm:$0xff] %vm9891_vm2, %v3406_v41  ;;  %3320 = vst [vmem:[#allocation2 + $0x250] sm:$0xff] %v3240_v61  ;;  %v3405_v3 = vadd.f32 %v3389_v1, %v2774_v51  ;;  %v3265_v34 = vadd.f32 %v5433_v56, %v3185_v37  ;;  %v3395_v37 = vmul.f32 %v9899_v46, %v3379_v62  ;;  %v3381_v61 = vld [vmem:[#allocation3 + $0x50] sm:$0xff] }
 0x83e   :  { %v5479_v5 = vpop.f32.mrf.mxu1  ;;  %v2667_v11 = vpop.f32.mrf.mxu0  ;;  %v3402_v7 = vmul.f32 %v9828_v50, %v3386_v32 }
 0x83f   :  { %3421 = vst.msk [vmem:[#allocation3 + $0x10] sm:$0xff] %vm9892_vm6, %v3405_v3  ;;  %3345 = vst [vmem:[#allocation2 + $0x260] sm:$0xff] %v3265_v34  ;;  %v3408_v9 = vadd.f32 %v5479_v5, %v3392_v28  ;;  %v3255_v25 = vadd.f32 %v3175_v14, %v2667_v11  ;;  %v9902_v34 = vld [vmem:[#allocation103_spill] sm:$0xff]  ;;  %v3383_v5 = vld [vmem:[#allocation3 + $0x60] sm:$0xff]  ;;  %v3400_v11 = vmul.f32 %v9823_v63, %v3384_v21 }
 0x840   :  { %v2784_v12 = vpop.f32.mrf.mxu1  ;;  %v5434_v23 = vpop.f32.mrf.mxu0  ;;  %v3397_v28 = vmul.f32 %v9902_v34, %v3381_v61  ;;  %v3401_v63 = vmul.f32 %v8125_v57, %v3385_v13 }
 0x841   :  { %3424 = vst.msk [vmem:[#allocation3 + $0x28] sm:$0xff] %vm9894_vm15, %v3408_v9  ;;  %3335 = vst [vmem:[#allocation2 + $0x1e8] sm:$0xff] %v3255_v25  ;;  %v3407_v52 = vadd.f32 %v3391_v15, %v2784_v12  ;;  %v3270_v4 = vadd.f32 %v5434_v23, %v3190_v40  ;;  %v9905_v40 = vld [vmem:[#allocation101_spill] sm:$0xff] }
 0x842   :  { %v5482_v60 = vpop.f32.mrf.mxu1  ;;  %v2670_v35 = vpop.f32.mrf.mxu0  ;;  %v3399_v9 = vmul.f32 %v9905_v40, %v3383_v5 }
 0x843   :  { %3423 = vst.msk [vmem:[#allocation3 + $0x20] sm:$0xff] %vm9895_vm3, %v3407_v52  ;;  %3350 = vst [vmem:[#allocation2 + $0x278] sm:$0xff] %v3270_v4  ;;  %v3410_v29 = vadd.f32 %v5482_v60, %v3394_v49  ;;  %v3260_v30 = vadd.f32 %v3180_v0, %v2670_v35 }
 0x844   :  { %v2794_v38 = vpop.f32.mrf.mxu1  ;;  %v5437_v48 = vpop.f32.mrf.mxu0 }
 0x845   :  { %3426 = vst.msk [vmem:[#allocation3 + $0x38] sm:$0xff] %vm9897_vm5, %v3410_v29  ;;  %3340 = vst [vmem:[#allocation2 + $0x1f0] sm:$0xff] %v3260_v30  ;;  %v3409_v36 = vadd.f32 %v3393_v39, %v2794_v38  ;;  %v3285_v22 = vadd.f32 %v5437_v48, %v3205_v33 }
 0x846   :  { %v5485_v6 = vpop.f32.mrf.mxu1  ;;  %v2683_v20 = vpop.f32.mrf.mxu0 }
 0x847   :  { %3425 = vst.msk [vmem:[#allocation3 + $0x30] sm:$0xff] %vm9898_vm11, %v3409_v36  ;;  %3365 = vst [vmem:[#allocation2 + $0x170] sm:$0xff] %v3285_v22  ;;  %v3412_v24 = vadd.f32 %v5485_v6, %v3396_v17  ;;  %v3275_v54 = vadd.f32 %v3195_v58, %v2683_v20 }
 0x848   :  { %v2804_v59 = vpop.f32.mrf.mxu1  ;;  %v5438_v41 = vpop.f32.mrf.mxu0 }
 0x849   :  { %3428 = vst.msk [vmem:[#allocation3 + $0x48] sm:$0xff] %vm9900_vm7, %v3412_v24  ;;  %3355 = vst [vmem:[#allocation2 + $0xa8] sm:$0xff] %v3275_v54  ;;  %v3411_v53 = vadd.f32 %v3395_v37, %v2804_v59  ;;  %v3290_v1 = vadd.f32 %v5438_v41, %v3210_v26 }
 0x84a   :  { %v5488_v51 = vpop.f32.mrf.mxu1  ;;  %v2686_v56 = vpop.f32.mrf.mxu0 }
 0x84b   :  { %3427 = vst.msk [vmem:[#allocation3 + $0x40] sm:$0xff] %vm9901_vm8, %v3411_v53  ;;  %3370 = vst [vmem:[#allocation2 + $0xb0] sm:$0xff] %v3290_v1  ;;  %v3414_v14 = vadd.f32 %v5488_v51, %v3398_v31  ;;  %v3280_v3 = vadd.f32 %v3200_v19, %v2686_v56 }
 0x84c   :  { %v2814_v44 = vpop.f32.mrf.mxu1 }
 0x84d   :  { %3430 = vst.msk [vmem:[#allocation3 + $0x58] sm:$0xff] %vm9903_vm10, %v3414_v14  ;;  %3360 = vst [vmem:[#allocation2 + $0x88] sm:$0xff] %v3280_v3  ;;  %v3413_v8 = vadd.f32 %v3397_v28, %v2814_v44 }
 0x84e   :  { %v5491_v2 = vpop.f32.mrf.mxu1 }
 0x84f   :  { %3429 = vst.msk [vmem:[#allocation3 + $0x50] sm:$0xff] %vm9904_vm12, %v3413_v8  ;;  %v3416_v10 = vadd.f32 %v5491_v2, %v3400_v11 }
 0x850   :  { %v2824_v25 = vpop.f32.mrf.mxu1 }
 0x851   :  { %3432 = vst.msk [vmem:[#allocation3 + $0x68] sm:$0xff] %vm9906_vm14, %v3416_v10  ;;  %v3415_v15 = vadd.f32 %v3399_v9, %v2824_v25 }
 0x852   :  { %v5494_v12 = vpop.f32.mrf.mxu1 }
 0x853   :  { %3431 = vst.msk [vmem:[#allocation3 + $0x60] sm:$0xff] %vm9907_vm9, %v3415_v15  ;;  %v3418_v23 = vadd.f32 %v5494_v12, %v3402_v7 }
 0x854   :  { %v2834_v45 = vpop.f32.mrf.mxu1 }
 0x855   :  { %3434 = vst.msk [vmem:[#allocation3 + $0x78] sm:$0xff] %vm9908_vm13, %v3418_v23  ;;  %v3417_v0 = vadd.f32 %v3401_v63, %v2834_v45 }
 0x857   :  { %3433 = vst.msk [vmem:[#allocation3 + $0x70] sm:$0xff] %vm9909_vm0, %v3417_v0 }
 0x858 PF:  { %v3597_v52 = vld [vmem:[#allocation16 + $0x78] sm:$0xff]  ;;  %v3596_v49 = vld [vmem:[#allocation16 + $0x70] sm:$0xff]  ;;  %v3595_v50 = vld [vmem:[#allocation16 + $0x68] sm:$0xff]  ;;  %s6318_s29 = smov [#allocation22]  }
 0x859   :  { %v3581_v4 = vld [vmem:[#allocation14 + $0x78] sm:$0xff]  ;;  %5495 = vmatprep.subr.mxu0 %v3597_v52  ;;  %v3580_v18 = vld [vmem:[#allocation14 + $0x70] sm:$0xff]  ;;  %v3579_v60 = vld [vmem:[#allocation14 + $0x68] sm:$0xff]  ;;  %s4824_s22 = sshll.u32 %s6318_s29, 4  ;;  %s4825_s22 = int_to_ptr.vmem [resolvable:$true] %s4824_s22 }
 0x85a   :  { %5551 = vmatprep.subr.mxu1 %v3581_v4  ;;  %5496 = vmatpush3.msra.mxu0 %v3597_v52  ;;  %v3594_v57 = vld [vmem:[#allocation16 + $0x60] sm:$0xff]  ;;  %v3593_v47 = vld [vmem:[#allocation16 + $0x58] sm:$0xff]  ;;  %v3592_v43 = vld [vmem:[#allocation16 + $0x50] sm:$0xff]  ;;  %s6262_s4 = scalar_lea.vmem %s4825_s22, 2048  ;;  %p6267_p13 = scmp.lt.s32.totalorder %s4825_s22, %s4825_s22 }
 0x85b   :  { %5552 = vmatpush3.msra.mxu1 %v3581_v4  ;;  %5497 = vmatprep.subr.mxu0 %v3596_v49  ;;  %v3578_v35 = vld [vmem:[#allocation14 + $0x60] sm:$0xff]  ;;  %v3577_v33 = vld [vmem:[#allocation14 + $0x58] sm:$0xff]  ;;  %v3576_v29 = vld [vmem:[#allocation14 + $0x50] sm:$0xff]  ;;  %p6263_p12 = scmp.ne.s32.totalorder %s4825_s22, %s6262_s4  ;;  %p6268_p1 = scmp.lt.s32.totalorder %s6262_s4, %s6262_s4 }
 0x85c   :  { %5553 = vmatprep.subr.mxu1 %v3580_v18  ;;  %5498 = vmatpush3.msra.mxu0 %v3596_v49  ;;  %v3591_v30 = vld [vmem:[#allocation16 + $0x48] sm:$0xff]  ;;  %v3590_v39 = vld [vmem:[#allocation16 + $0x40] sm:$0xff]  ;;  %v3589_v38 = vld [vmem:[#allocation16 + $0x38] sm:$0xff] }
 0x85d   :  { %5554 = vmatpush3.msra.mxu1 %v3580_v18  ;;  %5499 = vmatprep.subr.mxu0 %v3595_v50  ;;  %v3575_v42 = vld [vmem:[#allocation14 + $0x48] sm:$0xff]  ;;  %v3574_v55 = vld [vmem:[#allocation14 + $0x40] sm:$0xff]  ;;  %v3573_v48 = vld [vmem:[#allocation14 + $0x38] sm:$0xff]  ;;  %p6269_p2 = por %p6268_p1, %p6267_p13 }
 0x85e   :  { %5555 = vmatprep.subr.mxu1 %v3579_v60  ;;  %5500 = vmatpush3.msra.mxu0 %v3595_v50  ;;  %v3588_v62 = vld [vmem:[#allocation16 + $0x30] sm:$0xff]  ;;  %v3587_v36 = vld [vmem:[#allocation16 + $0x28] sm:$0xff]  ;;  %v3586_v17 = vld [vmem:[#allocation16 + $0x20] sm:$0xff] }
 0x85f   :  { %5556 = vmatpush3.msra.mxu1 %v3579_v60  ;;  %5501 = vmatprep.subr.mxu0 %v3594_v57  ;;  %v3572_v58 = vld [vmem:[#allocation14 + $0x30] sm:$0xff]  ;;  %v3571_v22 = vld [vmem:[#allocation14 + $0x28] sm:$0xff]  ;;  %v3570_v16 = vld [vmem:[#allocation14 + $0x20] sm:$0xff]  ;;  %p6270_p3 = pnand %p6269_p2, %p6263_p12 }
 0x860   :  { %5557 = vmatprep.subr.mxu1 %v3578_v35  ;;  %5502 = vmatpush3.msra.mxu0 %v3594_v57  ;;  %v3585_v6 = vld [vmem:[#allocation16 + $0x18] sm:$0xff]  ;;  %v3584_v27 = vld [vmem:[#allocation16 + $0x10] sm:$0xff]  ;;  %v3583_v24 = vld [vmem:[#allocation16 + $0x8] sm:$0xff] }
 0x861   :  { %5558 = vmatpush3.msra.mxu1 %v3578_v35  ;;  %5503 = vmatprep.subr.mxu0 %v3593_v47  ;;  %v3569_v20 = vld [vmem:[#allocation14 + $0x18] sm:$0xff]  ;;  %v3568_v26 = vld [vmem:[#allocation14 + $0x10] sm:$0xff]  ;;  %v3567_v54 = vld [vmem:[#allocation14 + $0x8] sm:$0xff] }
 0x862   :  { %5559 = vmatprep.subr.mxu1 %v3577_v33  ;;  %5504 = vmatpush3.msra.mxu0 %v3593_v47  ;;  %v3582_v46 = vld [vmem:[#allocation16] sm:$0xff]  ;;  %v3439_v59 = vld [vmem:[#allocation2 + $0x8] sm:$0xff]  ;;  %v3444_v61 = vld [vmem:[#allocation2 + $0x70] sm:$0xff] }
 0x863   :  { %5560 = vmatpush3.msra.mxu1 %v3577_v33  ;;  %5505 = vmatprep.subr.mxu0 %v3592_v43  ;;  %v3566_v37 = vld [vmem:[#allocation14] sm:$0xff]  ;;  %v3438_v41 = vld [vmem:[#allocation2 + $0xc8] sm:$0xff]  ;;  %v3443_v19 = vld [vmem:[#allocation2 + $0xf0] sm:$0xff] }
 0x864   :  { %5561 = vmatprep.subr.mxu1 %v3576_v29  ;;  %5506 = vmatpush3.msra.mxu0 %v3592_v43  ;;  %v4015_v53 = vld [vmem:[#allocation19 + $0x78] sm:$0xff]  ;;  %v4014_v31 = vld [vmem:[#allocation19 + $0x70] sm:$0xff]  ;;  %v3449_v56 = vld [vmem:[#allocation2 + $0x108] sm:$0xff] }
 0x865   :  { %5562 = vmatpush3.msra.mxu1 %v3576_v29  ;;  %5507 = vmatprep.subr.mxu0 %v3591_v30  ;;  %v3999_v1 = vld [vmem:[#allocation17 + $0x78] sm:$0xff]  ;;  %v3998_v51 = vld [vmem:[#allocation17 + $0x70] sm:$0xff]  ;;  %v3454_v14 = vld [vmem:[#allocation2 + $0x80] sm:$0xff] }
 0x866   :  { %5563 = vmatprep.subr.mxu1 %v3575_v42  ;;  %5508 = vmatpush3.msra.mxu0 %v3591_v30  ;;  %v3448_v21 = vld [vmem:[#allocation2 + $0x158] sm:$0xff]  ;;  %v3453_v3 = vld [vmem:[#allocation2 + $0x200] sm:$0xff]  ;;  %v4013_v34 = vld [vmem:[#allocation19 + $0x68] sm:$0xff] }
 0x867   :  { %5564 = vmatpush3.msra.mxu1 %v3575_v42  ;;  %5509 = vmatprep.subr.mxu0 %v3590_v39  ;;  %v3997_v28 = vld [vmem:[#allocation17 + $0x68] sm:$0xff]  ;;  %v3520_v44 = vld [vmem:[#allocation3 + $0x10] sm:$0xff]  ;;  %v4012_v5 = vld [vmem:[#allocation19 + $0x60] sm:$0xff] }
 0x868   :  { %5565 = vmatprep.subr.mxu1 %v3574_v55  ;;  %5510 = vmatpush3.msra.mxu0 %v3590_v39  ;;  %v3996_v8 = vld [vmem:[#allocation17 + $0x60] sm:$0xff]  ;;  %v3458_v2 = vld [vmem:[#allocation2 + $0x1d8] sm:$0xff]  ;;  %v3536_v32 = vmax.f32 %v3520_v44, 1e-30  ;;  %v3464_v10 = vld [vmem:[#allocation2 + $0x68] sm:$0xff] }
 0x869   :  { %5566 = vmatpush3.msra.mxu1 %v3574_v55  ;;  %5511 = vmatprep.subr.mxu0 %v3589_v38  ;;  %v3459_v11 = vld [vmem:[#allocation2 + $0x1a0] sm:$0xff]  ;;  %v3463_v40 = vld [vmem:[#allocation2 + $0x48] sm:$0xff]  ;;  %v4011_v9 = vld [vmem:[#allocation19 + $0x58] sm:$0xff] }
 0x86a   :  { %5567 = vmatprep.subr.mxu1 %v3573_v48  ;;  %5512 = vmatpush3.msra.mxu0 %v3589_v38  ;;  %v3995_v25 = vld [vmem:[#allocation17 + $0x58] sm:$0xff]  ;;  %5970 = vrcp.f32 %v3536_v32  ;;  %v4010_v15 = vld [vmem:[#allocation19 + $0x50] sm:$0xff]  ;;  %v3469_v12 = vld [vmem:[#allocation2 + $0x268] sm:$0xff] }
 0x86b   :  { %5568 = vmatpush3.msra.mxu1 %v3573_v48  ;;  %5513 = vmatprep.subr.mxu0 %v3588_v62  ;;  %v3521_v13 = vld [vmem:[#allocation3 + $0x18] sm:$0xff]  ;;  %v3994_v7 = vld [vmem:[#allocation17 + $0x50] sm:$0xff]  ;;  %v4009_v52 = vld [vmem:[#allocation19 + $0x48] sm:$0xff]  ;;  %v6315_v48 = vmov 0  }
 0x86c   :  { %5569 = vmatprep.subr.mxu1 %v3572_v58  ;;  %5514 = vmatpush3.msra.mxu0 %v3588_v62  ;;  %v3468_v23 = vld [vmem:[#allocation2 + $0xb8] sm:$0xff]  ;;  %v3537_v63 = vmax.f32 %v3521_v13, 1e-30  ;;  %v3474_v45 = vld [vmem:[#allocation2 + $0x1d0] sm:$0xff]  ;;  %v3993_v4 = vld [vmem:[#allocation17 + $0x48] sm:$0xff] }
 0x86d   :  { %5570 = vmatpush3.msra.mxu1 %v3572_v58  ;;  %5515 = vmatprep.subr.mxu0 %v3587_v36  ;;  %v3473_v0 = vld [vmem:[#allocation2 + $0x198] sm:$0xff]  ;;  %v3523_v49 = vld [vmem:[#allocation3 + $0x28] sm:$0xff]  ;;  %v4008_v18 = vld [vmem:[#allocation19 + $0x40] sm:$0xff] }
 0x86e   :  { %5571 = vmatprep.subr.mxu1 %v3571_v22  ;;  %5516 = vmatpush3.msra.mxu0 %v3587_v36  ;;  %v3992_v50 = vld [vmem:[#allocation17 + $0x40] sm:$0xff]  ;;  %5972 = vrcp.f32 %v3537_v63  ;;  %v3479_v60 = vld [vmem:[#allocation2 + $0x1b0] sm:$0xff]  ;;  %v3539_v35 = vmax.f32 %v3523_v49, 1e-30  ;;  %v3484_v47 = vld [vmem:[#allocation2 + $0x1c8] sm:$0xff] }
 0x86f   :  { %5572 = vmatpush3.msra.mxu1 %v3571_v22  ;;  %5517 = vmatprep.subr.mxu0 %v3586_v17  ;;  %v3478_v57 = vld [vmem:[#allocation2] sm:$0xff]  ;;  %v3483_v33 = vld [vmem:[#allocation2 + $0x38] sm:$0xff]  ;;  %v4006_v39 = vld [vmem:[#allocation19 + $0x30] sm:$0xff] }
 0x870   :  { %5573 = vmatprep.subr.mxu1 %v3570_v16  ;;  %5518 = vmatpush3.msra.mxu0 %v3586_v17  ;;  %v4007_v43 = vld [vmem:[#allocation19 + $0x38] sm:$0xff]  ;;  %5974 = vrcp.f32 %v3539_v35  ;;  %v3990_v55 = vld [vmem:[#allocation17 + $0x30] sm:$0xff]  ;;  %v3518_v38 = vld [vmem:[#allocation3] sm:$0xff] }
 0x871   :  { %5574 = vmatpush3.msra.mxu1 %v3570_v16  ;;  %5519 = vmatprep.subr.mxu0 %v3585_v6  ;;  %v3991_v29 = vld [vmem:[#allocation17 + $0x38] sm:$0xff]  ;;  %v3488_v58 = vld [vmem:[#allocation2 + $0xa0] sm:$0xff]  ;;  %v3534_v16 = vmax.f32 %v3518_v38, 1e-30 }
 0x872   :  { %5575 = vmatprep.subr.mxu1 %v3569_v20  ;;  %5520 = vmatpush3.msra.mxu0 %v3585_v6  ;;  %v3525_v42 = vld [vmem:[#allocation3 + $0x38] sm:$0xff]  ;;  %v3493_v17 = vld [vmem:[#allocation2 + $0x100] sm:$0xff]  ;;  %v4005_v6 = vld [vmem:[#allocation19 + $0x28] sm:$0xff] }
 0x873   :  { %5576 = vmatpush3.msra.mxu1 %v3569_v20  ;;  %5521 = vmatprep.subr.mxu0 %v3584_v27  ;;  %v3489_v62 = vld [vmem:[#allocation2 + $0x1f8] sm:$0xff]  ;;  %v3541_v36 = vmax.f32 %v3525_v42, 1e-30  ;;  %v3989_v20 = vld [vmem:[#allocation17 + $0x28] sm:$0xff]  ;;  %v3514_v44 = vld [vmem:[#allocation2 + $0x20] sm:$0xff] }
 0x874   :  { %5577 = vmatprep.subr.mxu1 %v3568_v26  ;;  %5522 = vmatpush3.msra.mxu0 %v3584_v27  ;;  %v3494_v22 = vld [vmem:[#allocation2 + $0x1b8] sm:$0xff]  ;;  %v3984_v13 = vld [vmem:[#allocation17] sm:$0xff] }
 0x875   :  { %5578 = vmatpush3.msra.mxu1 %v3568_v26  ;;  %5523 = vmatprep.subr.mxu0 %v3583_v24  ;;  %v4004_v26 = vld [vmem:[#allocation19 + $0x20] sm:$0xff]  ;;  %5976 = vrcp.f32 %v3541_v36  ;;  %v3466_v36 = vld [vmem:[#allocation2 + $0x188] sm:$0xff] }
 0x876   :  { %5579 = vmatprep.subr.mxu1 %v3567_v54  ;;  %5524 = vmatpush3.msra.mxu0 %v3583_v24  ;;  %v3527_v24 = vld [vmem:[#allocation3 + $0x48] sm:$0xff]  ;;  %5978 = vrcp.f32 %v3534_v16  ;;  %v3450_v35 = vld [vmem:[#allocation2 + $0x220] sm:$0xff] }
 0x877   :  { %5580 = vmatpush3.msra.mxu1 %v3567_v54  ;;  %5525 = vmatprep.subr.mxu0 %v3582_v46  ;;  %v8775_v30 = vpop.eup %5970  ;;  %v3988_v54 = vld [vmem:[#allocation17 + $0x20] sm:$0xff] }
 0x878   :  { %5581 = vmatprep.subr.mxu1 %v3566_v37  ;;  %5526 = vmatpush3.msra.mxu0 %v3582_v46  ;;  %v3499_v46 = vld [vmem:[#allocation2 + $0x180] sm:$0xff] }
 0x879   :  { %5527 = vmatprep.mubr.f32.mxu0 %v3439_v59  ;;  %5582 = vmatpush3.msra.mxu1 %v3566_v37  ;;  %v3519_v37 = vld [vmem:[#allocation3 + $0x8] sm:$0xff]  ;;  %v3498_v59 = vld [vmem:[#allocation2 + $0x210] sm:$0xff]  ;;  %v4398_v38 = vld [vmem:[#allocation20 + $0x60] sm:$0xff] }
 0x87a   :  { %5583 = vmatprep.mubr.f32.mxu1 %v3438_v41  ;;  %5528 = vmatmul.mubr.f32.vlgmr.msra.gmra.mxu0 %v3444_v61  ;;  %v3504_v41 = vld [vmem:[#allocation2 + $0x138] sm:$0xff]  ;;  %v3543_v61 = vmax.f32 %v3527_v24, 1e-30 }
 0x87b   :  { %5584 = vmatmul.mubr.f32.vlgmr.msra.gmra.mxu1 %v3443_v19  ;;  %5607 = vmatprep.subr.mxu0 %v4015_v53  ;;  %v8779_v27 = vpop.eup %5972  ;;  %v3503_v19 = vld [vmem:[#allocation2 + $0x60] sm:$0xff]  ;;  %v3471_v24 = vld [vmem:[#allocation2 + $0x98] sm:$0xff] }
 0x87c   :  { %5663 = vmatprep.subr.mxu1 %v3999_v1  ;;  %5608 = vmatpush3.msra.mxu0 %v4015_v53  ;;  %v4003_v53 = vld [vmem:[#allocation19 + $0x18] sm:$0xff]  ;;  %5980 = vrcp.f32 %v3543_v61 }
 0x87d   :  { %5664 = vmatpush3.msra.mxu1 %v3999_v1  ;;  %5609 = vmatprep.subr.mxu0 %v4014_v31  ;;  %v3535_v1 = vmax.f32 %v3519_v37, 1e-30  ;;  %v3476_v37 = vld [vmem:[#allocation2 + $0x1a8] sm:$0xff] }
 0x87e   :  { %5665 = vmatprep.subr.mxu1 %v3998_v51  ;;  %5530 = vmatprep.mubr.f32.mxu0 %v3449_v56  ;;  %v4002_v56 = vld [vmem:[#allocation19 + $0x10] sm:$0xff] }
 0x87f   :  { %5586 = vmatprep.mubr.f32.mxu1 %v3448_v21  ;;  %5610 = vmatpush3.msra.mxu0 %v4014_v31  ;;  %v3987_v31 = vld [vmem:[#allocation17 + $0x18] sm:$0xff]  ;;  %v3986_v21 = vld [vmem:[#allocation17 + $0x10] sm:$0xff]  ;;  %5982 = vrcp.f32 %v3535_v1  ;;  %v4394_v1 = vld [vmem:[#allocation20 + $0x40] sm:$0xff] }
 0x880   :  { %5666 = vmatpush3.msra.mxu1 %v3998_v51  ;;  %5531 = vmatmul.mubr.f32.gmra.mxu0 %v3454_v14  ;;  %v8782_v51 = vpop.eup %5974  ;;  %v3529_v14 = vld [vmem:[#allocation3 + $0x58] sm:$0xff] }
 0x881   :  { %5587 = vmatmul.mubr.f32.gmra.mxu1 %v3453_v3  ;;  %5611 = vmatprep.subr.mxu0 %v4013_v34  ;;  %v3509_v3 = vld [vmem:[#allocation2 + $0x128] sm:$0xff] }
 0x882   :  { %5667 = vmatprep.subr.mxu1 %v3997_v28  ;;  %5612 = vmatpush3.msra.mxu0 %v4013_v34  ;;  %v3508_v34 = vld [vmem:[#allocation2 + $0x118] sm:$0xff] }
 0x883   :  { %5668 = vmatpush3.msra.mxu1 %v3997_v28  ;;  %5613 = vmatprep.subr.mxu0 %v4012_v5  ;;  %v3522_v28 = vld [vmem:[#allocation3 + $0x20] sm:$0xff] }
 0x884   :  { %5669 = vmatprep.subr.mxu1 %v3996_v8  ;;  %5533 = vmatprep.mubr.f32.mxu0 %v3459_v11  ;;  %v4001_v11 = vld [vmem:[#allocation19 + $0x8] sm:$0xff]  ;;  %v3538_v32 = vmax.f32 %v3522_v28, 1e-30 }
 0x885   :  { %5589 = vmatprep.mubr.f32.mxu1 %v3458_v2  ;;  %5614 = vmatpush3.msra.mxu0 %v4012_v5  ;;  %v3513_v5 = vld [vmem:[#allocation2 + $0x150] sm:$0xff]  ;;  %v3985_v2 = vld [vmem:[#allocation17 + $0x8] sm:$0xff] }
 0x886   :  { %5670 = vmatpush3.msra.mxu1 %v3996_v8  ;;  %5534 = vmatmul.mubr.f32.gmra.mxu0 %v3464_v10  ;;  %v3545_v8 = vmax.f32 %v3529_v14, 1e-30  ;;  %v8785_v10 = vpop.eup %5976  ;;  %v3486_v14 = vld [vmem:[#allocation2 + $0x78] sm:$0xff] }
 0x887   :  { %5590 = vmatmul.mubr.f32.gmra.mxu1 %v3463_v40  ;;  %5615 = vmatprep.subr.mxu0 %v4011_v9  ;;  %v8787_v40 = vpop.eup %5978 }
 0x888   :  { %5671 = vmatprep.subr.mxu1 %v3995_v25  ;;  %5616 = vmatpush3.msra.mxu0 %v4011_v9  ;;  %v4000_v9 = vld [vmem:[#allocation19] sm:$0xff]  ;;  %5984 = vrcp.f32 %v3545_v8  ;;  %v6316_v8 = vmov 1  }
 0x889   :  { %5672 = vmatpush3.msra.mxu1 %v3995_v25  ;;  %5617 = vmatprep.subr.mxu0 %v4010_v15  ;;  %v3531_v25 = vld [vmem:[#allocation3 + $0x68] sm:$0xff]  ;;  %5986 = vrcp.f32 %v3538_v32  ;;  %v3496_v32 = vld [vmem:[#allocation2 + $0xd0] sm:$0xff] }
 0x88a   :  { %5673 = vmatprep.subr.mxu1 %v3994_v7  ;;  %5536 = vmatprep.mubr.f32.mxu0 %v3469_v12  ;;  %v3440_v12 = vld [vmem:[#allocation2 + $0x40] sm:$0xff]  ;;  %v3547_v63 = vmax.f32 %v3531_v25, 1e-30  ;;  %v4391_v25 = vld [vmem:[#allocation20 + $0x28] sm:$0xff] }
 0x88b   :  { %5592 = vmatprep.mubr.f32.mxu1 %v3468_v23  ;;  %5618 = vmatpush3.msra.mxu0 %v4010_v15  ;;  %v3524_v15 = vld [vmem:[#allocation3 + $0x30] sm:$0xff]  ;;  %v3446_v23 = vld [vmem:[#allocation2 + $0xd8] sm:$0xff] }
 0x88c   :  { %5674 = vmatpush3.msra.mxu1 %v3994_v7  ;;  %5537 = vmatmul.mubr.f32.gmra.mxu0 %v3474_v45  ;;  %v3441_v7 = vld [vmem:[#allocation2 + $0x28] sm:$0xff]  ;;  %v3445_v45 = vld [vmem:[#allocation2 + $0x120] sm:$0xff]  ;;  %5988 = vrcp.f32 %v3547_v63 }
 0x88d   :  { %5593 = vmatmul.mubr.f32.gmra.mxu1 %v3473_v0  ;;  %5619 = vmatprep.subr.mxu0 %v4009_v52  ;;  %v4401_v0 = vld [vmem:[#allocation20 + $0x78] sm:$0xff]  ;;  %v3505_v63 = vld [vmem:[#allocation2 + $0x208] sm:$0xff] }
 0x88e   :  { %5675 = vmatprep.subr.mxu1 %v3993_v4  ;;  %5620 = vmatpush3.msra.mxu0 %v4009_v52  ;;  %v3540_v52 = vmax.f32 %v3524_v15, 1e-30  ;;  %v4390_v15 = vld [vmem:[#allocation20 + $0x20] sm:$0xff] }
 0x88f   :  { %5676 = vmatpush3.msra.mxu1 %v3993_v4  ;;  %5621 = vmatprep.subr.mxu0 %v4008_v18  ;;  %v8792_v4 = vpop.eup %5980 }
 0x890   :  { %5677 = vmatprep.subr.mxu1 %v3992_v50  ;;  %5539 = vmatprep.mubr.f32.mxu0 %v3479_v60  ;;  %v8794_v49 = vpop.eup %5982  ;;  %v3451_v60 = vld [vmem:[#allocation2 + $0xc0] sm:$0xff]  ;;  %5990 = vrcp.f32 %v3540_v52  ;;  %v4388_v52 = vld [vmem:[#allocation20 + $0x10] sm:$0xff] }
 0x891   :  { %5595 = vmatprep.mubr.f32.mxu1 %v3478_v57  ;;  %5622 = vmatpush3.msra.mxu0 %v4008_v18  ;;  %v4400_v18 = vld [vmem:[#allocation20 + $0x70] sm:$0xff]  ;;  %v3526_v57 = vld [vmem:[#allocation3 + $0x40] sm:$0xff] }
 0x892   :  { %5678 = vmatpush3.msra.mxu1 %v3992_v50  ;;  %5540 = vmatmul.mubr.f32.gmra.mxu0 %v3484_v47  ;;  %v3533_v50 = vld [vmem:[#allocation3 + $0x78] sm:$0xff]  ;;  %v3456_v47 = vld [vmem:[#allocation2 + $0x10] sm:$0xff]  ;;  %v3542_v42 = vmax.f32 %v3526_v57, 1e-30 }
 0x893   :  { %5596 = vmatmul.mubr.f32.gmra.mxu1 %v3483_v33  ;;  %5623 = vmatprep.subr.mxu0 %v4007_v43  ;;  %v3549_v33 = vmax.f32 %v3533_v50, 1e-30  ;;  %v3510_v50 = vld [vmem:[#allocation2 + $0x1c0] sm:$0xff]  ;;  %v3515_v57 = vld [vmem:[#allocation2 + $0x178] sm:$0xff] }
 0x894   :  { %5679 = vmatprep.subr.mxu1 %v3991_v29  ;;  %5965 = vset.pattern.permute.xlu1 %v6315_v48 }
 0x895   :  { %5624 = vmatpush3.msra.mxu0 %v4007_v43  ;;  %5680 = vmatpush3.msra.mxu1 %v3991_v29  ;;  %v3455_v43 = vld [vmem:[#allocation2 + $0x30] sm:$0xff]  ;;  %v4399_v29 = vld [vmem:[#allocation20 + $0x68] sm:$0xff]  ;;  %5992 = vrcp.f32 %v3549_v33 }
 0x896   :  { %3900 = vperm.xlu1 %5965, %v8775_v30   ;;  %5625 = vmatprep.subr.mxu0 %v4006_v39  ;;  %5994 = vrcp.f32 %v3542_v42  ;;  %v3442_v33 = vld [vmem:[#allocation2 + $0xe8] sm:$0xff]  ;;  %v3487_v42 = vld [vmem:[#allocation2 + $0x1f0] sm:$0xff] }
 0x897   :  { %5681 = vmatprep.subr.mxu1 %v3990_v55  ;;  %5542 = vmatprep.mubr.f32.mxu0 %v3489_v62  ;;  %v3528_v62 = vld [vmem:[#allocation3 + $0x50] sm:$0xff] }
 0x898   :  { %5598 = vmatprep.mubr.f32.mxu1 %v3488_v58  ;;  %5626 = vmatpush3.msra.mxu0 %v4006_v39  ;;  %v8798_v39 = vpop.eup %5984  ;;  %v3460_v58 = vld [vmem:[#allocation2 + $0x248] sm:$0xff]  ;;  %v3544_v16 = vmax.f32 %v3528_v62, 1e-30  ;;  %v3457_v62 = vld [vmem:[#allocation2 + $0x160] sm:$0xff] }
 0x899   :  { %5682 = vmatpush3.msra.mxu1 %v3990_v55  ;;  %5543 = vmatmul.mubr.f32.gmra.mxu0 %v3494_v22  ;;  %v8800_v55 = vpop.eup %5986  ;;  %v3465_v22 = vld [vmem:[#allocation2 + $0x238] sm:$0xff] }
 0x89a   :  { %5599 = vmatmul.mubr.f32.gmra.mxu1 %v3493_v17  ;;  %5627 = vmatprep.subr.mxu0 %v4005_v6  ;;  %v4397_v17 = vld [vmem:[#allocation20 + $0x58] sm:$0xff]  ;;  %5996 = vrcp.f32 %v3544_v16  ;;  %v3507_v16 = vld [vmem:[#allocation2 + $0x88] sm:$0xff] }
 0x89b   :  { %5683 = vmatprep.subr.mxu1 %v3989_v20  ;;  %5628 = vmatpush3.msra.mxu0 %v4005_v6  ;;  %v8804_v6 = vpop.eup %5988 }
 0x89c   :  { %5684 = vmatpush3.msra.mxu1 %v3989_v20  ;;  %3905 = vperm.xlu1 %5965, %v8779_v27  }
 0x89d   :  { %5629 = vmatprep.subr.mxu0 %v4004_v26  ;;  %5685 = vmatprep.subr.mxu1 %v3988_v54  ;;  %v8806_v20 = vpop.eup %5990 }
 0x89e   :  { %5545 = vmatprep.mubr.f32.mxu0 %v3499_v46  ;;  %5601 = vmatprep.mubr.f32.mxu1 %v3498_v59  ;;  %v3470_v46 = vld [vmem:[#allocation2 + $0xf8] sm:$0xff]  ;;  %v3475_v59 = vld [vmem:[#allocation2 + $0x1e0] sm:$0xff] }
 0x89f   :  { %5630 = vmatpush3.msra.mxu0 %v4004_v26  ;;  %5686 = vmatpush3.msra.mxu1 %v3988_v54  ;;  %v4396_v26 = vld [vmem:[#allocation20 + $0x50] sm:$0xff]  ;;  %v3530_v54 = vld [vmem:[#allocation3 + $0x60] sm:$0xff] }
 0x8a0   :  { %5546 = vmatmul.mubr.f32.gmra.mxu0 %v3504_v41  ;;  %5602 = vmatmul.mubr.f32.gmra.mxu1 %v3503_v19  ;;  %v4395_v41 = vld [vmem:[#allocation20 + $0x48] sm:$0xff]  ;;  %v3546_v61 = vmax.f32 %v3530_v54, 1e-30 }
 0x8a1   :  { %5631 = vmatprep.subr.mxu0 %v4003_v53  ;;  %5687 = vmatprep.subr.mxu1 %v3987_v31  ;;  %v3477_v54 = vld [vmem:[#allocation2 + $0x228] sm:$0xff] }
 0x8a2   :  { %5632 = vmatpush3.msra.mxu0 %v4003_v53  ;;  %5688 = vmatpush3.msra.mxu1 %v3987_v31  ;;  %v8810_v19 = vpop.eup %5992  ;;  %v3481_v31 = vld [vmem:[#allocation2 + $0x270] sm:$0xff]  ;;  %5998 = vrcp.f32 %v3546_v61 }
 0x8a3   :  { %3915 = vperm.xlu1 %5965, %v8782_v51   ;;  %5633 = vmatprep.subr.mxu0 %v4002_v56  ;;  %v8812_v53 = vpop.eup %5994 }
 0x8a4   :  { %5689 = vmatprep.subr.mxu1 %v3986_v21  ;;  %5548 = vmatprep.mubr.f32.mxu0 %v3509_v3  ;;  %v3485_v3 = vld [vmem:[#allocation2 + $0x18] sm:$0xff] }
 0x8a5   :  { %5604 = vmatprep.mubr.f32.mxu1 %v3508_v34  ;;  %5634 = vmatpush3.msra.mxu0 %v4002_v56  ;;  %v3532_v56 = vld [vmem:[#allocation3 + $0x70] sm:$0xff]  ;;  %v4393_v34 = vld [vmem:[#allocation20 + $0x38] sm:$0xff] }
 0x8a6   :  { %5690 = vmatpush3.msra.mxu1 %v3986_v21  ;;  %5549 = vmatmul.mubr.f32.gmra.mxu0 %v3514_v44  ;;  %v3480_v21 = vld [vmem:[#allocation2 + $0x90] sm:$0xff]  ;;  %v3548_v28 = vmax.f32 %v3532_v56, 1e-30 }
 0x8a7   :  { %5605 = vmatmul.mubr.f32.gmra.mxu1 %v3513_v5  ;;  %5635 = vmatprep.subr.mxu0 %v4001_v11  ;;  %v8816_v44 = vpop.eup %5996  ;;  %v4392_v5 = vld [vmem:[#allocation20 + $0x30] sm:$0xff] }
 0x8a8   :  { %5691 = vmatprep.subr.mxu1 %v3985_v2  ;;  %5964 = vset.pattern.permute.xlu0 %v6315_v48  ;;  %v3461_v48 = vld [vmem:[#allocation2 + $0x218] sm:$0xff]  ;;  %6000 = vrcp.f32 %v3548_v28 }
 0x8a9   :  { %5636 = vmatpush3.msra.mxu0 %v4001_v11  ;;  %5692 = vmatpush3.msra.mxu1 %v3985_v2  ;;  %v3491_v11 = vld [vmem:[#allocation2 + $0x258] sm:$0xff] }
 0x8aa   :  { %3925 = vperm.xlu1 %5965, %v8785_v10   ;;  %3890 = vperm.xlu0 %5964, %v8787_v40   ;;  %v3490_v2 = vld [vmem:[#allocation2 + $0x58] sm:$0xff] }
 0x8ab   :  { %5637 = vmatprep.subr.mxu0 %v4000_v9  ;;  %5693 = vmatprep.subr.mxu1 %v3984_v13 }
 0x8ac   :  { %5638 = vmatpush3.msra.mxu0 %v4000_v9  ;;  %5639 = vmatprep.mubr.f32.mxu0 %v3441_v7  ;;  %v3495_v9 = vld [vmem:[#allocation2 + $0x168] sm:$0xff]  ;;  %v3501_v7 = vld [vmem:[#allocation2 + $0x110] sm:$0xff] }
 0x8ad   :  { %5694 = vmatpush3.msra.mxu1 %v3984_v13  ;;  %5695 = vmatprep.mubr.f32.mxu1 %v3440_v12  ;;  %v3500_v12 = vld [vmem:[#allocation2 + $0x130] sm:$0xff] }
 0x8ae   :  { %5640 = vmatmul.mubr.f32.vlgmr.msra.gmra.mxu0 %v3446_v23  ;;  %5696 = vmatmul.mubr.f32.vlgmr.msra.gmra.mxu1 %v3445_v45  ;;  %v3506_v23 = vld [vmem:[#allocation2 + $0x240] sm:$0xff]  ;;  %v4389_v45 = vld [vmem:[#allocation20 + $0x18] sm:$0xff] }
 0x8af   :  { %5719 = vmatprep.subr.mxu0 %v4401_v0  ;;  %5775 = vmatprep.subr.mxu1 %v4401_v0  ;;  %v8821_v13 = vpop.eup %5998 }
 0x8b0   :  { %5720 = vmatpush3.msra.mxu0 %v4401_v0  ;;  %5791 = vmatpush3.msra.mxu1 %v4401_v0 }
 0x8b1   :  { %3935 = vperm.xlu1 %5965, %v8792_v4   ;;  %3895 = vperm.xlu0 %5964, %v8794_v49  }
 0x8b2   :  { %5721 = vmatprep.subr.mxu0 %v4400_v18  ;;  %5776 = vmatprep.subr.mxu1 %v4400_v18 }
 0x8b3   :  { %5642 = vmatprep.mubr.f32.mxu0 %v3451_v60  ;;  %5698 = vmatprep.mubr.f32.mxu1 %v3450_v35  ;;  %v3516_v60 = vld [vmem:[#allocation2 + $0x50] sm:$0xff]  ;;  %v4387_v35 = vld [vmem:[#allocation20 + $0x8] sm:$0xff] }
 0x8b4   :  { %5722 = vmatpush3.msra.mxu0 %v4400_v18  ;;  %5792 = vmatpush3.msra.mxu1 %v4400_v18  ;;  %v3511_v18 = vld [vmem:[#allocation2 + $0x230] sm:$0xff] }
 0x8b5   :  { %5643 = vmatmul.mubr.f32.gmra.mxu0 %v3456_v47  ;;  %5699 = vmatmul.mubr.f32.gmra.mxu1 %v3455_v43  ;;  %v8825_v0 = vpop.eup %6000  ;;  %v4386_v47 = vld [vmem:[#allocation20] sm:$0xff]  ;;  %v3482_v43 = vld [vmem:[#allocation2 + $0x1e8] sm:$0xff] }
 0x8b6   :  { %5723 = vmatprep.subr.mxu0 %v4399_v29  ;;  %5777 = vmatprep.subr.mxu1 %v4399_v29 }
 0x8b7   :  { %5724 = vmatpush3.msra.mxu0 %v4399_v29  ;;  %5793 = vmatpush3.msra.mxu1 %v4399_v29  ;;  %v3447_v29 = vld [vmem:[#allocation2 + $0x148] sm:$0xff] }
 0x8b8   :  { %3945 = vperm.xlu1 %5965, %v8798_v39   ;;  %3910 = vperm.xlu0 %5964, %v8800_v55  }
 0x8b9   :  { %5725 = vmatprep.subr.mxu0 %v4398_v38  ;;  %5778 = vmatprep.subr.mxu1 %v4398_v38 }
 0x8ba   :  { %5645 = vmatprep.mubr.f32.mxu0 %v3461_v48  ;;  %5701 = vmatprep.mubr.f32.mxu1 %v3460_v58  ;;  %v3492_v48 = vld [vmem:[#allocation2 + $0x260] sm:$0xff]  ;;  %v3497_v58 = vld [vmem:[#allocation2 + $0x278] sm:$0xff] }
 0x8bb   :  { %5726 = vmatpush3.msra.mxu0 %v4398_v38  ;;  %5794 = vmatpush3.msra.mxu1 %v4398_v38  ;;  %v3452_v38 = vld [vmem:[#allocation2 + $0x140] sm:$0xff] }
 0x8bc   :  { %5646 = vmatmul.mubr.f32.gmra.mxu0 %v3466_v36  ;;  %5702 = vmatmul.mubr.f32.gmra.mxu1 %v3465_v22  ;;  %v3462_v36 = vld [vmem:[#allocation2 + $0x190] sm:$0xff]  ;;  %v3502_v22 = vld [vmem:[#allocation2 + $0xa8] sm:$0xff] }
 0x8bd   :  { %5727 = vmatprep.subr.mxu0 %v4397_v17  ;;  %5779 = vmatprep.subr.mxu1 %v4397_v17 }
 0x8be   :  { %5728 = vmatpush3.msra.mxu0 %v4397_v17  ;;  %5795 = vmatpush3.msra.mxu1 %v4397_v17  ;;  %v3467_v17 = vld [vmem:[#allocation2 + $0x250] sm:$0xff] }
 0x8bf   :  { %3955 = vperm.xlu1 %5965, %v8804_v6   ;;  %3920 = vperm.xlu0 %5964, %v8806_v20  }
 0x8c0   :  { %5729 = vmatprep.subr.mxu0 %v4396_v26  ;;  %5780 = vmatprep.subr.mxu1 %v4396_v26 }
 0x8c1   :  { %5648 = vmatprep.mubr.f32.mxu0 %v3471_v24  ;;  %5704 = vmatprep.mubr.f32.mxu1 %v3470_v46  ;;  %v3512_v24 = vld [vmem:[#allocation2 + $0x170] sm:$0xff] }
 0x8c2   :  { %5730 = vmatpush3.msra.mxu0 %v4396_v26  ;;  %5796 = vmatpush3.msra.mxu1 %v4396_v26  ;;  %v3472_v26 = vld [vmem:[#allocation2 + $0xe0] sm:$0xff]  ;;  %v3517_v46 = vld [vmem:[#allocation2 + $0xb0] sm:$0xff] }
 0x8c3   :  { %5649 = vmatmul.mubr.f32.gmra.mxu0 %v3476_v37  ;;  %5705 = vmatmul.mubr.f32.gmra.mxu1 %v3475_v59  ;;  %v6317_v37 = vmov 2  }
 0x8c4   :  { %5731 = vmatprep.subr.mxu0 %v4395_v41  ;;  %5781 = vmatprep.subr.mxu1 %v4395_v41 }
 0x8c5   :  { %5732 = vmatpush3.msra.mxu0 %v4395_v41  ;;  %5797 = vmatpush3.msra.mxu1 %v4395_v41 }
 0x8c6   :  { %3965 = vperm.xlu1 %5965, %v8810_v19   ;;  %3930 = vperm.xlu0 %5964, %v8812_v53  }
 0x8c7   :  { %5733 = vmatprep.subr.mxu0 %v4394_v1  ;;  %5782 = vmatprep.subr.mxu1 %v4394_v1 }
 0x8c8   :  { %5651 = vmatprep.mubr.f32.mxu0 %v3481_v31  ;;  %5707 = vmatprep.mubr.f32.mxu1 %v3480_v21 }
 0x8c9   :  { %5734 = vmatpush3.msra.mxu0 %v4394_v1  ;;  %5798 = vmatpush3.msra.mxu1 %v4394_v1 }
 0x8ca   :  { %5652 = vmatmul.mubr.f32.gmra.mxu0 %v3486_v14  ;;  %5708 = vmatmul.mubr.f32.gmra.mxu1 %v3485_v3 }
 0x8cb   :  { %5735 = vmatprep.subr.mxu0 %v4393_v34  ;;  %5783 = vmatprep.subr.mxu1 %v4393_v34 }
 0x8cc   :  { %5736 = vmatpush3.msra.mxu0 %v4393_v34  ;;  %5799 = vmatpush3.msra.mxu1 %v4393_v34 }
 0x8cd   :  { %5967 = vset.pattern.permute.xlu1 %v6316_v8  ;;  %3940 = vperm.xlu0 %5964, %v8816_v44  }
 0x8ce   :  { %5737 = vmatprep.subr.mxu0 %v4392_v5  ;;  %5784 = vmatprep.subr.mxu1 %v4392_v5 }
 0x8cf   :  { %4311 = vperm.xlu1 %5967, %v8794_v49   ;;  %5654 = vmatprep.mubr.f32.mxu0 %v3491_v11 }
 0x8d0   :  { %5710 = vmatprep.mubr.f32.mxu1 %v3490_v2  ;;  %5738 = vmatpush3.msra.mxu0 %v4392_v5 }
 0x8d1   :  { %5800 = vmatpush3.msra.mxu1 %v4392_v5  ;;  %5655 = vmatmul.mubr.f32.gmra.mxu0 %v3496_v32 }
 0x8d2   :  { %5711 = vmatmul.mubr.f32.gmra.mxu1 %v3495_v9  ;;  %5739 = vmatprep.subr.mxu0 %v4391_v25 }
 0x8d3   :  { %5785 = vmatprep.subr.mxu1 %v4391_v25  ;;  %5740 = vmatpush3.msra.mxu0 %v4391_v25 }
 0x8d4   :  { %5801 = vmatpush3.msra.mxu1 %v4391_v25  ;;  %3950 = vperm.xlu0 %5964, %v8821_v13  }
 0x8d5   :  { %5741 = vmatprep.subr.mxu0 %v4390_v15  ;;  %5786 = vmatprep.subr.mxu1 %v4390_v15 }
 0x8d6   :  { %4315 = vperm.xlu1 %5967, %v8775_v30   ;;  %5657 = vmatprep.mubr.f32.mxu0 %v3501_v7 }
 0x8d7   :  { %5713 = vmatprep.mubr.f32.mxu1 %v3500_v12  ;;  %5742 = vmatpush3.msra.mxu0 %v4390_v15 }
 0x8d8   :  { %5802 = vmatpush3.msra.mxu1 %v4390_v15  ;;  %5658 = vmatmul.mubr.f32.gmra.mxu0 %v3506_v23 }
 0x8d9   :  { %5714 = vmatmul.mubr.f32.gmra.mxu1 %v3505_v63  ;;  %5743 = vmatprep.subr.mxu0 %v4389_v45 }
 0x8da   :  { %5787 = vmatprep.subr.mxu1 %v4389_v45  ;;  %5744 = vmatpush3.msra.mxu0 %v4389_v45 }
 0x8db   :  { %5803 = vmatpush3.msra.mxu1 %v4389_v45  ;;  %3960 = vperm.xlu0 %5964, %v8825_v0  }
 0x8dc   :  { %5745 = vmatprep.subr.mxu0 %v4388_v52  ;;  %5788 = vmatprep.subr.mxu1 %v4388_v52 }
 0x8dd   :  { %4323 = vperm.xlu1 %5967, %v8800_v55   ;;  %5660 = vmatprep.mubr.f32.mxu0 %v3511_v18 }
 0x8de   :  { %5716 = vmatprep.mubr.f32.mxu1 %v3510_v50  ;;  %5746 = vmatpush3.msra.mxu0 %v4388_v52 }
 0x8df   :  { %5804 = vmatpush3.msra.mxu1 %v4388_v52  ;;  %5661 = vmatmul.mubr.f32.gmra.mxu0 %v3516_v60 }
 0x8e0   :  { %5717 = vmatmul.mubr.f32.gmra.mxu1 %v3515_v57  ;;  %5747 = vmatprep.subr.mxu0 %v4387_v35 }
 0x8e1   :  { %5789 = vmatprep.subr.mxu1 %v4387_v35  ;;  %5748 = vmatpush3.msra.mxu0 %v4387_v35 }
 0x8e2   :  { %5805 = vmatpush3.msra.mxu1 %v4387_v35  ;;  %5966 = vset.pattern.permute.xlu0 %v6316_v8 }
 0x8e3   :  { %5749 = vmatprep.subr.mxu0 %v4386_v47  ;;  %5790 = vmatprep.subr.mxu1 %v4386_v47 }
 0x8e4   :  { %4331 = vperm.xlu1 %5967, %v8806_v20   ;;  %4307 = vperm.xlu0 %5966, %v8787_v40  }
 0x8e5   :  { %5750 = vmatpush3.msra.mxu0 %v4386_v47  ;;  %5806 = vmatpush3.msra.mxu1 %v4386_v47 }
 0x8e6   :  { %5751 = vmatprep.mubr.f32.mxu0 %v3442_v33  ;;  %5763 = vmatprep.mubr.f32.mxu1 %v3482_v43 }
 0x8e7   :  { %5752 = vmatmul.mubr.f32.vlgmr.msra.gmra.mxu0 %v3447_v29  ;;  %5764 = vmatmul.mubr.f32.vlgmr.msra.gmra.mxu1 %v3487_v42 }
 0x8e8   :  { %4339 = vperm.xlu1 %5967, %v8812_v53   ;;  %4319 = vperm.xlu0 %5966, %v8779_v27  }
 0x8e9   :  { %5754 = vmatprep.mubr.f32.mxu0 %v3452_v38  ;;  %5766 = vmatprep.mubr.f32.mxu1 %v3492_v48 }
 0x8eb   :  { %5755 = vmatmul.mubr.f32.gmra.mxu0 %v3457_v62  ;;  %5767 = vmatmul.mubr.f32.gmra.mxu1 %v3497_v58 }
 0x8ec   :  { %4347 = vperm.xlu1 %5967, %v8816_v44   ;;  %4327 = vperm.xlu0 %5966, %v8782_v51  }
 0x8ed   :  { %5757 = vmatprep.mubr.f32.mxu0 %v3462_v36  ;;  %5769 = vmatprep.mubr.f32.mxu1 %v3502_v22 }
 0x8ef   :  { %5758 = vmatmul.mubr.f32.gmra.mxu0 %v3467_v17  ;;  %5770 = vmatmul.mubr.f32.gmra.mxu1 %v3507_v16 }
 0x8f0   :  { %4355 = vperm.xlu1 %5967, %v8821_v13   ;;  %4335 = vperm.xlu0 %5966, %v8785_v10  }
 0x8f1   :  { %5760 = vmatprep.mubr.f32.mxu0 %v3472_v26  ;;  %5772 = vmatprep.mubr.f32.mxu1 %v3512_v24 }
 0x8f3   :  { %5761 = vmatmul.mubr.f32.gmra.mxu0 %v3477_v54  ;;  %5773 = vmatmul.mubr.f32.gmra.mxu1 %v3517_v46 }
 0x8f4   :  { %4363 = vperm.xlu1 %5967, %v8825_v0   ;;  %4343 = vperm.xlu0 %5966, %v8792_v4  }
 0x8f8   :  { %5968 = vset.pattern.permute.xlu1 %v6317_v37  ;;  %4351 = vperm.xlu0 %5966, %v8798_v39  }
 0x8f9   :  { %4548 = vperm.xlu1 %5968, %v8787_v40  }
 0x8fc   :  { %4359 = vperm.xlu0 %5966, %v8804_v6  }
 0x8fd   :  { %4556 = vperm.xlu1 %5968, %v8775_v30  }
 0x900   :  { %4367 = vperm.xlu0 %5966, %v8810_v19  }
 0x901   :  { %4560 = vperm.xlu1 %5968, %v8779_v27  }
 0x904   :  { %5969 = vset.pattern.permute.xlu0 %v6317_v37 }
 0x905   :  { %4568 = vperm.xlu1 %5968, %v8782_v51   ;;  %4552 = vperm.xlu0 %5969, %v8794_v49  }
 0x909   :  { %4576 = vperm.xlu1 %5968, %v8785_v10   ;;  %4564 = vperm.xlu0 %5969, %v8800_v55  }
 0x90d   :  { %4584 = vperm.xlu1 %5968, %v8792_v4   ;;  %4572 = vperm.xlu0 %5969, %v8806_v20  }
 0x911   :  { %4592 = vperm.xlu1 %5968, %v8798_v39   ;;  %4580 = vperm.xlu0 %5969, %v8812_v53   ;;  %v8859_v30 = vpop.permute.xlu1 %3900 }
 0x915   :  { %4600 = vperm.xlu1 %5968, %v8804_v6   ;;  %4588 = vperm.xlu0 %5969, %v8816_v44  }
 0x917   :  { %v8861_v27 = vpop.permute.xlu1 %3905 }
 0x919   :  { %4608 = vperm.xlu1 %5968, %v8810_v19   ;;  %4596 = vperm.xlu0 %5969, %v8821_v13  }
 0x91d   :  { %4604 = vperm.xlu0 %5969, %v8825_v0  }
 0x91e   :  { %v8863_v51 = vpop.permute.xlu1 %3915 }
 0x925   :  { %v8865_v10 = vpop.permute.xlu0 %3890  ;;  %v8867_v40 = vpop.permute.xlu1 %3925 }
 0x92c   :  { %v8869_v4 = vpop.permute.xlu0 %3895  ;;  %v8871_v49 = vpop.permute.xlu1 %3935 }
 0x933   :  { %v8881_v59 = vpop.permute.xlu0 %3910  ;;  %v8883_v41 = vpop.permute.xlu1 %3945 }
 0x93a   :  { %v8873_v39 = vpop.f32.mrf.mxu0  ;;  %v8893_v31 = vpop.permute.xlu0 %3920 }
 0x93b   :  { %v8875_v55 = vpop.f32.mrf.mxu1  ;;  %v8895_v56 = vpop.permute.xlu1 %3955 }
 0x93c   :  { %v8877_v6 = vpop.f32.mrf.mxu0 }
 0x93d   :  { %v8879_v20 = vpop.f32.mrf.mxu1 }
 0x940   :  { %v8885_v61 = vpop.f32.mrf.mxu0 }
 0x941   :  { %v8887_v19 = vpop.f32.mrf.mxu1  ;;  %v8903_v28 = vpop.permute.xlu0 %3930 }
 0x942   :  { %v8889_v53 = vpop.f32.mrf.mxu0  ;;  %v8905_v44 = vpop.permute.xlu1 %3965 }
 0x943   :  { %v8891_v1 = vpop.f32.mrf.mxu1 }
 0x946   :  { %v8897_v21 = vpop.f32.mrf.mxu0 }
 0x947   :  { %v5591_v14 = vpop.f32.mrf.mxu1 }
 0x948   :  { %v8899_v3 = vpop.f32.mrf.mxu0  ;;  %v8915_v32 = vpop.permute.xlu0 %3940 }
 0x949   :  { %v8901_v34 = vpop.f32.mrf.mxu1 }
 0x94a   :  { %v8917_v9 = vpop.permute.xlu1 %4311 }
 0x94b   :  { %9910 = vst [vmem:[#allocation134_spill] sm:$0xff] %v8917_v9 }
 0x94c   :  { %v8907_v5 = vpop.f32.mrf.mxu0 }
 0x94d   :  { %v8909_v8 = vpop.f32.mrf.mxu1 }
 0x94e   :  { %v8911_v11 = vpop.f32.mrf.mxu0 }
 0x94f   :  { %v8913_v2 = vpop.f32.mrf.mxu1  ;;  %v8927_v12 = vpop.permute.xlu0 %3950 }
 0x951   :  { %v8929_v23 = vpop.permute.xlu1 %4315 }
 0x952   :  { %v8919_v25 = vpop.f32.mrf.mxu0  ;;  %9911 = vst [vmem:[#allocation135_spill] sm:$0xff] %v8929_v23 }
 0x953   :  { %v8921_v13 = vpop.f32.mrf.mxu1 }
 0x954   :  { %v8923_v15 = vpop.f32.mrf.mxu0 }
 0x955   :  { %v8925_v7 = vpop.f32.mrf.mxu1 }
 0x956   :  { %v8937_v52 = vpop.permute.xlu0 %3960 }
 0x958   :  { %v8941_v50 = vpop.permute.xlu1 %4323 }
 0x959   :  { %v8931_v63 = vpop.f32.mrf.mxu0  ;;  %9912 = vst [vmem:[#allocation136_spill] sm:$0xff] %v8941_v50 }
 0x95a   :  { %v8933_v45 = vpop.f32.mrf.mxu1 }
 0x95b   :  { %v8935_v0 = vpop.f32.mrf.mxu0 }
 0x95c   :  { %v8939_v18 = vpop.f32.mrf.mxu1 }
 0x95f   :  { %v8947_v35 = vpop.permute.xlu0 %4307  ;;  %v8951_v33 = vpop.permute.xlu1 %4331 }
 0x960   :  { %v8943_v60 = vpop.f32.mrf.mxu0  ;;  %v8945_v57 = vpop.f32.mrf.mxu1  ;;  %9913 = vst [vmem:[#allocation137_spill] sm:$0xff] %v8947_v35  ;;  %9914 = vst [vmem:[#allocation138_spill] sm:$0xff] %v8951_v33 }
 0x962   :  { %v8949_v47 = vpop.f32.mrf.mxu0  ;;  %v8953_v43 = vpop.f32.mrf.mxu1 }
 0x963   :  { %v8959_v38 = vpop.permute.xlu0 %4319  ;;  %v8961_v48 = vpop.permute.xlu1 %4339 }
 0x964   :  { %9915 = vst [vmem:[#allocation139_spill] sm:$0xff] %v8959_v38  ;;  %9916 = vst [vmem:[#allocation140_spill] sm:$0xff] %v8961_v48 }
 0x966   :  { %v8955_v29 = vpop.f32.mrf.mxu0 }
 0x967   :  { %v8957_v42 = vpop.f32.mrf.mxu1  ;;  %v8969_v22 = vpop.permute.xlu0 %4327 }
 0x968   :  { %v8963_v62 = vpop.f32.mrf.mxu0  ;;  %9917 = vst [vmem:[#allocation141_spill] sm:$0xff] %v8969_v22  ;;  %v8973_v16 = vpop.permute.xlu1 %4347 }
 0x969   :  { %v8965_v58 = vpop.f32.mrf.mxu1  ;;  %9918 = vst [vmem:[#allocation142_spill] sm:$0xff] %v8973_v16 }
 0x96b   :  { %v8979_v54 = vpop.permute.xlu0 %4335 }
 0x96c   :  { %9919 = vst [vmem:[#allocation143_spill] sm:$0xff] %v8979_v54  ;;  %v8983_v37 = vpop.permute.xlu1 %4355 }
 0x96d   :  { %9920 = vst [vmem:[#allocation144_spill] sm:$0xff] %v8983_v37  ;;  %v3815_v37 = vadd.f32 %v8875_v55, %v8873_v39 }
 0x96e   :  { %v8967_v36 = vpop.f32.mrf.mxu0  ;;  %v8971_v17 = vpop.f32.mrf.mxu1 }
 0x96f   :  { %v8991_v22 = vpop.permute.xlu0 %4343 }
 0x970   :  { %v8975_v26 = vpop.f32.mrf.mxu0  ;;  %v8977_v24 = vpop.f32.mrf.mxu1  ;;  %9923 = vst [vmem:[#allocation147_spill] sm:$0xff] %v8991_v22 }
 0x971   :  { %v8993_v23 = vpop.permute.xlu1 %4363 }
 0x972   :  { %9924 = vst [vmem:[#allocation148_spill] sm:$0xff] %v8993_v23  ;;  %v3825_v23 = vadd.f32 %v8887_v19, %v8885_v61  ;;  %v3845_v19 = vadd.f32 %v8909_v8, %v8907_v5  ;;  %v3865_v5 = vadd.f32 %v8933_v45, %v8931_v63  ;;  %v4233_v45 = vadd.f32 %v8971_v17, %v8967_v36 }
 0x973   :  { %v9003_v9 = vpop.permute.xlu0 %4351 }
 0x974   :  { %9928 = vst [vmem:[#allocation152_spill] sm:$0xff] %v9003_v9  ;;  %v3969_v9 = vmul.f32 %v8869_v4, %v3815_v37  ;;  %v3971_v61 = vmul.f32 %v8861_v27, %v3825_v23  ;;  %v3880_v23 = vadd.f32 %v8965_v58, %v8963_v62  ;;  %v9937_v37 = vld [vmem:[#allocation139_spill] sm:$0xff] }
 0x975   :  { %v8981_v46 = vpop.f32.mrf.mxu0  ;;  %v8985_v48 = vpop.f32.mrf.mxu1 }
 0x976   :  { %6002 = vtanh.f32 %v3969_v9 }
 0x977   :  { %v8987_v33 = vpop.f32.mrf.mxu0  ;;  %v8989_v50 = vpop.f32.mrf.mxu1 }
 0x978   :  { %9921 = vst [vmem:[#allocation145_spill] sm:$0xff] %v8987_v33  ;;  %9922 = vst [vmem:[#allocation146_spill] sm:$0xff] %v8989_v50  ;;  %v3810_v50 = vadd.f32 %v8879_v20, %v8877_v6  ;;  %v9009_v33 = vpop.permute.xlu1 %4548  ;;  %v3830_v6 = vadd.f32 %v8901_v34, %v8899_v3  ;;  %v9026_v20 = vpop.permute.xlu0 %4359  ;;  %v3850_v3 = vadd.f32 %v8925_v7, %v8923_v15 }
 0x979   :  { %9929 = vst [vmem:[#allocation153_spill] sm:$0xff] %v9009_v33  ;;  %v3975_v34 = vmul.f32 %v8867_v40, %v3845_v19  ;;  %v3979_v15 = vmul.f32 %v8883_v41, %v3865_v5  ;;  %v3885_v7 = vadd.f32 %v8957_v42, %v8955_v29 }
 0x97a   :  { %v3968_v55 = vmul.f32 %v8865_v10, %v3810_v50  ;;  %v3972_v27 = vmul.f32 %v8881_v59, %v3830_v6  ;;  %v3976_v40 = vmul.f32 %v8903_v28, %v3850_v3  ;;  %v4228_v50 = vadd.f32 %v8977_v24, %v8975_v26 }
 0x97c   :  { %v8995_v16 = vpop.f32.mrf.mxu0  ;;  %v8997_v38 = vpop.f32.mrf.mxu1  ;;  %6004 = vtanh.f32 %v3968_v55 }
 0x97d   :  { %9925 = vst [vmem:[#allocation149_spill] sm:$0xff] %v8997_v38  ;;  %6006 = vtanh.f32 %v3971_v61  ;;  %v9050_v8 = vpop.permute.xlu0 %4367  ;;  %v9938_v61 = vld [vmem:[#allocation135_spill] sm:$0xff] }
 0x97e   :  { %v8999_v35 = vpop.f32.mrf.mxu0  ;;  %v9001_v54 = vpop.f32.mrf.mxu1 }
 0x97f   :  { %9926 = vst [vmem:[#allocation150_spill] sm:$0xff] %v8999_v35  ;;  %9927 = vst [vmem:[#allocation151_spill] sm:$0xff] %v9001_v54  ;;  %v3820_v54 = vadd.f32 %v8891_v1, %v8889_v53  ;;  %v3835_v35 = vadd.f32 %v5591_v14, %v8897_v21  ;;  %v3840_v53 = vadd.f32 %v8913_v2, %v8911_v11  ;;  %v9036_v1 = vpop.permute.xlu1 %4556 }
 0x980   :  { %v3855_v21 = vadd.f32 %v8921_v13, %v8919_v25  ;;  %v3860_v11 = vadd.f32 %v8939_v18, %v8935_v0  ;;  %v3875_v2 = vadd.f32 %v8945_v57, %v8943_v60  ;;  %v4243_v60 = vadd.f32 %v8985_v48, %v8981_v46  ;;  %v9934_v48 = vld [vmem:[#allocation137_spill] sm:$0xff] }
 0x981   :  { %v3970_v4 = vmul.f32 %v8859_v30, %v3820_v54  ;;  %v3973_v10 = vmul.f32 %v8863_v51, %v3835_v35  ;;  %v3974_v51 = vmul.f32 %v8893_v31, %v3840_v53  ;;  %v3870_v31 = vadd.f32 %v8953_v43, %v8949_v47  ;;  %v9068_v63 = vpop.permute.xlu0 %4552  ;;  %v9930_v35 = vld [vmem:[#allocation145_spill] sm:$0xff]  ;;  %v9931_v47 = vld [vmem:[#allocation146_spill] sm:$0xff] }
 0x982   :  { %v3977_v59 = vmul.f32 %v8871_v49, %v3855_v21  ;;  %v3978_v49 = vmul.f32 %v8915_v32, %v3860_v11  ;;  %v3981_v28 = vmul.f32 %v8895_v56, %v3875_v2  ;;  %v3983_v32 = vmul.f32 %v8905_v44, %v3885_v7  ;;  %v9939_v21 = vld [vmem:[#allocation141_spill] sm:$0xff] }
 0x983   :  { %v9011_v22 = vpop.f32.mrf.mxu0  ;;  %v9015_v38 = vpop.f32.mrf.mxu1  ;;  %6008 = vtanh.f32 %v3970_v4  ;;  %v3980_v41 = vmul.f32 %v8927_v12, %v3870_v31  ;;  %v3982_v56 = vmul.f32 %v8937_v52, %v3880_v23  ;;  %v4238_v43 = vadd.f32 %v9931_v47, %v9930_v35  ;;  %v9932_v12 = vld [vmem:[#allocation134_spill] sm:$0xff] }
 0x984   :  { %6010 = vtanh.f32 %v3973_v10  ;;  %v9058_v13 = vpop.permute.xlu1 %4560  ;;  %v4371_v42 = vmul.f32 %v9932_v12, %v4233_v45  ;;  %v9933_v62 = vld [vmem:[#allocation149_spill] sm:$0xff]  ;;  %v9087_v44 = vpop.eup %6002  ;;  %v4370_v17 = vmul.f32 %v9934_v48, %v4228_v50  ;;  %v4373_v55 = vmul.f32 %v9937_v37, %v4243_v60 }
 0x985   :  { %v9021_v39 = vpop.f32.mrf.mxu0  ;;  %v9028_v33 = vpop.f32.mrf.mxu1  ;;  %6012 = vtanh.f32 %v3972_v27  ;;  %v4253_v58 = vadd.f32 %v9933_v62, %v8995_v16  ;;  %v4263_v6 = vadd.f32 %v9015_v38, %v9011_v22  ;;  %v4372_v19 = vmul.f32 %v9938_v61, %v4238_v43  ;;  %v9940_v22 = vld [vmem:[#allocation136_spill] sm:$0xff] }
 0x986   :  { %6014 = vtanh.f32 %v3975_v34  ;;  %v9935_v26 = vld [vmem:[#allocation150_spill] sm:$0xff]  ;;  %v9936_v24 = vld [vmem:[#allocation151_spill] sm:$0xff]  ;;  %v9094_v46 = vpop.permute.xlu0 %4564  ;;  %v4258_v4 = vadd.f32 %v9028_v33, %v9021_v39 }
 0x987   :  { %6016 = vtanh.f32 %v3974_v51  ;;  %v4248_v54 = vadd.f32 %v9936_v24, %v9935_v26  ;;  %v4375_v27 = vmul.f32 %v9939_v21, %v4253_v58  ;;  %v9941_v33 = vld [vmem:[#allocation143_spill] sm:$0xff]  ;;  %v9947_v26 = vld [vmem:[#allocation144_spill] sm:$0xff] }
 0x988   :  { %6018 = vtanh.f32 %v3977_v59  ;;  %v9079_v57 = vpop.permute.xlu1 %4568  ;;  %v4377_v39 = vmul.f32 %v9941_v33, %v4263_v6 }
 0x989   :  { %6020 = vtanh.f32 %v3976_v40  ;;  %v9092_v52 = vpop.eup %6004  ;;  %v4374_v51 = vmul.f32 %v9940_v22, %v4248_v54 }
 0x98a   :  { %v9041_v14 = vpop.f32.mrf.mxu0  ;;  %v5709_v30 = vpop.f32.mrf.mxu1  ;;  %6022 = vtanh.f32 %v3979_v15 }
 0x98b   :  { %6024 = vtanh.f32 %v3978_v49  ;;  %v9099_v16 = vpop.eup %6006  ;;  %v4273_v3 = vadd.f32 %v5709_v30, %v9041_v14  ;;  %v9942_v14 = vld [vmem:[#allocation138_spill] sm:$0xff]  ;;  %v9121_v23 = vpop.permute.xlu0 %4572 }
 0x98c   :  { %v4122_v9 = vpop.f32.mrf.mxu0  ;;  %v4267_v25 = vpop.f32.mrf.mxu1  ;;  %6026 = vtanh.f32 %v3981_v28  ;;  %v4376_v30 = vmul.f32 %v9942_v14, %v4258_v4 }
 0x98d   :  { %6028 = vtanh.f32 %v3980_v41  ;;  %v9110_v38 = vpop.permute.xlu1 %4576  ;;  %v4268_v11 = vadd.f32 %v4267_v25, %v4122_v9  ;;  %v9943_v9 = vld [vmem:[#allocation147_spill] sm:$0xff] }
 0x98e   :  { %6030 = vtanh.f32 %v3983_v32  ;;  %v4379_v25 = vmul.f32 %v9943_v9, %v4273_v3  ;;  %v9945_v32 = vld [vmem:[#allocation152_spill] sm:$0xff] }
 0x98f   :  { %6032 = vtanh.f32 %v3982_v56 }
 0x990   :  { %v9104_v10 = vpop.eup %6008  ;;  %6034 = vtanh.f32 %v4371_v42 }
 0x991   :  { %v5656_v0 = vpop.f32.mrf.mxu0  ;;  %v9108_v5 = vpop.eup %6010  ;;  %6036 = vtanh.f32 %v4370_v17 }
 0x992   :  { %v5712_v18 = vpop.f32.mrf.mxu1  ;;  %v9113_v59 = vpop.eup %6012  ;;  %6038 = vtanh.f32 %v4373_v55 }
 0x993   :  { %v4132_v29 = vpop.f32.mrf.mxu0  ;;  %v4283_v2 = vadd.f32 %v5712_v18, %v5656_v0  ;;  %v9116_v15 = vpop.eup %6014  ;;  %6040 = vtanh.f32 %v4372_v19  ;;  %v9944_v0 = vld [vmem:[#allocation140_spill] sm:$0xff] }
 0x994   :  { %v4277_v36 = vpop.f32.mrf.mxu1  ;;  %v9119_v49 = vpop.eup %6016  ;;  %6042 = vtanh.f32 %v4375_v27  ;;  %v4378_v18 = vmul.f32 %v9944_v0, %v4268_v11  ;;  %v9948_v19 = vld [vmem:[#allocation148_spill] sm:$0xff] }
 0x995   :  { %v4278_v7 = vadd.f32 %v4277_v36, %v4132_v29  ;;  %v9124_v45 = vpop.eup %6018  ;;  %6044 = vtanh.f32 %v4374_v51  ;;  %v4381_v60 = vmul.f32 %v9945_v32, %v4283_v2  ;;  %v4585_v43 = vpop.permute.xlu1 %4584  ;;  %v9946_v29 = vld [vmem:[#allocation142_spill] sm:$0xff]  ;;  %v9949_v2 = vld [vmem:[#allocation153_spill] sm:$0xff] }
 0x996   :  { %v9127_v50 = vpop.eup %6020  ;;  %6046 = vtanh.f32 %v4377_v39  ;;  %v4581_v55 = vpop.permute.xlu0 %4580 }
 0x997   :  { %v9130_v47 = vpop.eup %6022  ;;  %6048 = vtanh.f32 %v4376_v30  ;;  %v4380_v12 = vmul.f32 %v9946_v29, %v4278_v7 }
 0x998   :  { %v5659_v53 = vpop.f32.mrf.mxu0  ;;  %v9133_v62 = vpop.eup %6024  ;;  %6050 = vtanh.f32 %v4379_v25 }
 0x999   :  { %v5715_v34 = vpop.f32.mrf.mxu1  ;;  %v9136_v17 = vpop.eup %6026  ;;  %6052 = vtanh.f32 %v4378_v18 }
 0x99a   :  { %v4142_v40 = vpop.f32.mrf.mxu0  ;;  %v4293_v28 = vadd.f32 %v5715_v34, %v5659_v53  ;;  %v9139_v37 = vpop.eup %6028  ;;  %6054 = vtanh.f32 %v4381_v60 }
 0x99b   :  { %v4287_v31 = vpop.f32.mrf.mxu1  ;;  %v9142_v61 = vpop.eup %6030  ;;  %6056 = vtanh.f32 %v4380_v12 }
 0x99c   :  { %v4288_v41 = vadd.f32 %v4287_v31, %v4142_v40  ;;  %v4383_v58 = vmul.f32 %v9026_v20, %v4293_v28  ;;  %v9145_v20 = vpop.eup %6032  ;;  %v4593_v3 = vpop.permute.xlu1 %4592 }
 0x99d   :  { %v9147_v53 = vpop.eup %6034  ;;  %v4589_v39 = vpop.permute.xlu0 %4588 }
 0x99e   :  { %v4382_v24 = vmul.f32 %v9947_v26, %v4288_v41  ;;  %6058 = vtanh.f32 %v4383_v58  ;;  %v9149_v27 = vpop.eup %6036 }
 0x99f   :  { %v5662_v56 = vpop.f32.mrf.mxu0 }
 0x9a0   :  { %v5718_v35 = vpop.f32.mrf.mxu1  ;;  %6060 = vtanh.f32 %v4382_v24  ;;  %v4601_v32 = vpop.permute.xlu1 %4600 }
 0x9a1   :  { %v4303_v42 = vadd.f32 %v5718_v35, %v5662_v56  ;;  %v4152_v36 = vpop.f32.mrf.mxu0 }
 0x9a2   :  { %v4297_v48 = vpop.f32.mrf.mxu1 }
 0x9a3   :  { %v4298_v54 = vadd.f32 %v4297_v48, %v4152_v36  ;;  %v4385_v6 = vmul.f32 %v9050_v8, %v4303_v42  ;;  %v9152_v8 = vpop.eup %6038  ;;  %v4597_v42 = vpop.permute.xlu0 %4596  ;;  %v4628_v48 = vld [vmem:[#allocation8 + $0x8] sm:$0xff] }
 0x9a4   :  { %v9154_v33 = vpop.eup %6040 }
 0x9a5   :  { %v4384_v4 = vmul.f32 %v9948_v19, %v4298_v54  ;;  %6062 = vtanh.f32 %v4385_v6  ;;  %v9157_v14 = vpop.eup %6042 }
 0x9a6   :  { %v9159_v9 = vpop.eup %6044 }
 0x9a7   :  { %v5753_v21 = vpop.f32.mrf.mxu0  ;;  %v5765_v22 = vpop.f32.mrf.mxu1  ;;  %6064 = vtanh.f32 %v4384_v4  ;;  %v4627_v4 = vld [vmem:[#allocation8] sm:$0xff] }
 0x9a8   :  { %v4612_v34 = vmul.f32 %v5753_v21, %v9068_v63  ;;  %v4620_v51 = vmul.f32 %v5765_v22, %v4585_v43  ;;  %v9162_v28 = vpop.eup %6046  ;;  %v4635_v22 = vld [vmem:[#allocation8 + $0x40] sm:$0xff] }
 0x9a9   :  { %v4468_v11 = vpop.f32.mrf.mxu0  ;;  %v4508_v31 = vpop.f32.mrf.mxu1 }
 0x9aa   :  { %6066 = vtanh.f32 %v4612_v34  ;;  %v4611_v40 = vmul.f32 %v9949_v2, %v4468_v11  ;;  %v4619_v30 = vmul.f32 %v4581_v55, %v4508_v31  ;;  %v9164_v41 = vpop.eup %6048  ;;  %v4660_v34 = vadd.f32 %v9087_v44, %v4628_v48  ;;  %v4632_v48 = vld [vmem:[#allocation8 + $0x28] sm:$0xff] }
 0x9ab   :  { %6068 = vtanh.f32 %v4620_v51  ;;  %v5756_v7 = vpop.f32.mrf.mxu0  ;;  %v5768_v25 = vpop.f32.mrf.mxu1 }
 0x9ac   :  { %6070 = vtanh.f32 %v4611_v40  ;;  %v4614_v63 = vmul.f32 %v5756_v7, %v9058_v13  ;;  %v4622_v0 = vmul.f32 %v5768_v25, %v4593_v3  ;;  %v6051_v35 = vpop.eup %6050  ;;  %v4609_v51 = vpop.permute.xlu1 %4608  ;;  %v4638_v25 = vld [vmem:[#allocation8 + $0x58] sm:$0xff]  ;;  %v4724_v44 = vadd.f32 %v9147_v53, %v4660_v34  ;;  %v4639_v34 = vld [vmem:[#allocation8 + $0x60] sm:$0xff] }
 0x9ad   :  { %6072 = vtanh.f32 %v4619_v30  ;;  %v4478_v18 = vpop.f32.mrf.mxu0  ;;  %v4518_v56 = vpop.f32.mrf.mxu1 }
 0x9ae   :  { %6074 = vtanh.f32 %v4614_v63  ;;  %v4613_v60 = vmul.f32 %v9036_v1, %v4478_v18  ;;  %v4621_v43 = vmul.f32 %v4589_v39, %v4518_v56  ;;  %v6053_v12 = vpop.eup %6052  ;;  %v4636_v1 = vld [vmem:[#allocation8 + $0x48] sm:$0xff]  ;;  %v4659_v63 = vadd.f32 %v9092_v52, %v4627_v4  ;;  %v4631_v4 = vld [vmem:[#allocation8 + $0x20] sm:$0xff] }
 0x9af   :  { %6076 = vtanh.f32 %v4622_v0  ;;  %v5759_v29 = vpop.f32.mrf.mxu0  ;;  %v5771_v58 = vpop.f32.mrf.mxu1  ;;  %v4668_v40 = vadd.f32 %v9124_v45, %v4636_v1  ;;  %v4667_v56 = vadd.f32 %v9127_v50, %v4635_v22 }
 0x9b0   :  { %6078 = vtanh.f32 %v4613_v60  ;;  %v4616_v13 = vmul.f32 %v5759_v29, %v9079_v57  ;;  %v9168_v36 = vpop.eup %6054  ;;  %v4624_v26 = vmul.f32 %v5771_v58, %v4601_v32  ;;  %v4605_v0 = vpop.permute.xlu0 %4604  ;;  %v4629_v60 = vld [vmem:[#allocation8 + $0x10] sm:$0xff]  ;;  %v4723_v52 = vadd.f32 %v9149_v27, %v4659_v63 }
 0x9b1   :  { %6080 = vtanh.f32 %v4621_v43  ;;  %v4488_v24 = vpop.f32.mrf.mxu0  ;;  %v9170_v54 = vpop.eup %6056  ;;  %v4732_v45 = vadd.f32 %v6051_v35, %v4668_v40  ;;  %v4661_v50 = vadd.f32 %v9104_v10, %v4629_v60  ;;  %v4640_v35 = vld [vmem:[#allocation8 + $0x68] sm:$0xff]  ;;  %v4642_v40 = vld [vmem:[#allocation8 + $0x78] sm:$0xff]  ;;  %v4671_v63 = vadd.f32 %v9139_v37, %v4639_v34 }
 0x9b2   :  { %6082 = vtanh.f32 %v4616_v13  ;;  %v4615_v55 = vmul.f32 %v9094_v46, %v4488_v24  ;;  %v4528_v6 = vpop.f32.mrf.mxu1  ;;  %v9173_v19 = vpop.eup %6058  ;;  %v4630_v46 = vld [vmem:[#allocation8 + $0x18] sm:$0xff]  ;;  %v4637_v13 = vld [vmem:[#allocation8 + $0x50] sm:$0xff] }
 0x9b3   :  { %6084 = vtanh.f32 %v4624_v26  ;;  %v4623_v21 = vmul.f32 %v4597_v42, %v4528_v6  ;;  %v5762_v57 = vpop.f32.mrf.mxu0  ;;  %v9175_v3 = vpop.eup %6060  ;;  %v4662_v42 = vadd.f32 %v9099_v16, %v4630_v46  ;;  %v4731_v26 = vadd.f32 %v6053_v12, %v4667_v56 }
 0x9b4   :  { %6086 = vtanh.f32 %v4615_v55  ;;  %v4618_v11 = vmul.f32 %v5762_v57, %v9110_v38  ;;  %v5774_v39 = vpop.f32.mrf.mxu1  ;;  %v9179_v2 = vpop.eup %6062  ;;  %v4669_v27 = vadd.f32 %v9133_v62, %v4637_v13  ;;  %v4664_v12 = vadd.f32 %v9108_v5, %v4632_v48 }
 0x9b5   :  { %6088 = vtanh.f32 %v4623_v21  ;;  %v4626_v31 = vmul.f32 %v5774_v39, %v4609_v51  ;;  %v4498_v30 = vpop.f32.mrf.mxu0  ;;  %v9182_v7 = vpop.eup %6064  ;;  %v4726_v55 = vadd.f32 %v9152_v8, %v4662_v42  ;;  %v4725_v22 = vadd.f32 %v9154_v33, %v4661_v50  ;;  %v4634_v8 = vld [vmem:[#allocation8 + $0x38] sm:$0xff]  ;;  %v4633_v33 = vld [vmem:[#allocation8 + $0x30] sm:$0xff] }
 0x9b6   :  { %6090 = vtanh.f32 %v4618_v11  ;;  %v4617_v38 = vmul.f32 %v9121_v23, %v4498_v30  ;;  %v4538_v18 = vpop.f32.mrf.mxu1  ;;  %v4670_v23 = vadd.f32 %v9130_v47, %v4638_v25  ;;  %v4672_v11 = vadd.f32 %v9136_v17, %v4640_v35 }
 0x9b7   :  { %v6067_v32 = vpop.eup %6066  ;;  %6092 = vtanh.f32 %v4626_v31  ;;  %v4625_v43 = vmul.f32 %v4605_v0, %v4538_v18  ;;  %v4733_v39 = vadd.f32 %v9170_v54, %v4669_v27  ;;  %v4728_v31 = vadd.f32 %v9157_v14, %v4664_v12  ;;  %v4641_v0 = vld [vmem:[#allocation8 + $0x70] sm:$0xff] }
 0x9b8   :  { %v6069_v29 = vpop.eup %6068  ;;  %v4788_v58 = vadd.f32 %v6067_v32, %v4724_v44  ;;  %6094 = vtanh.f32 %v4617_v38  ;;  %v4734_v21 = vadd.f32 %v9168_v36, %v4670_v23  ;;  %v4663_v36 = vadd.f32 %v9113_v59, %v4631_v4 }
 0x9b9   :  { %v6071_v53 = vpop.eup %6070  ;;  %v4796_v24 = vadd.f32 %v6069_v29, %v4732_v45  ;;  %6096 = vtanh.f32 %v4625_v43  ;;  %v4736_v25 = vadd.f32 %v9173_v19, %v4672_v11  ;;  %v4666_v54 = vadd.f32 %v9116_v15, %v4634_v8 }
 0x9ba   :  { %v6073_v1 = vpop.eup %6072  ;;  %4804 = vst [vmem:[#allocation22 + $0x8] sm:$0xff] %v4788_v58  ;;  %v4787_v16 = vadd.f32 %v6071_v53, %v4723_v52  ;;  %v4727_v38 = vadd.f32 %v9159_v9, %v4663_v36  ;;  %v4674_v14 = vadd.f32 %v9142_v61, %v4642_v40  ;;  %v4735_v32 = vadd.f32 %v9175_v3, %v4671_v63 }
 0x9bb   :  { %v6075_v6 = vpop.eup %6074  ;;  %4812 = vst [vmem:[#allocation22 + $0x48] sm:$0xff] %v4796_v24  ;;  %v4795_v57 = vadd.f32 %v6073_v1, %v4731_v26  ;;  %v4665_v19 = vadd.f32 %v9119_v49, %v4633_v33  ;;  %v4730_v56 = vadd.f32 %v9162_v28, %v4666_v54  ;;  %v4673_v43 = vadd.f32 %v9145_v20, %v4641_v0 }
 0x9bc   :  { %v6077_v47 = vpop.eup %6076  ;;  %4803 = vst [vmem:[#allocation22] sm:$0xff] %v4787_v16  ;;  %v4790_v10 = vadd.f32 %v6075_v6, %v4726_v55  ;;  %v4738_v9 = vadd.f32 %v9179_v2, %v4674_v14 }
 0x9bd   :  { %v6079_v51 = vpop.eup %6078  ;;  %4811 = vst [vmem:[#allocation22 + $0x40] sm:$0xff] %v4795_v57  ;;  %v4798_v62 = vadd.f32 %v6077_v47, %v4734_v21  ;;  %v4729_v61 = vadd.f32 %v9164_v41, %v4665_v19  ;;  %v4737_v49 = vadd.f32 %v9182_v7, %v4673_v43 }
 0x9be   :  { %v6081_v46 = vpop.eup %6080  ;;  %4806 = vst [vmem:[#allocation22 + $0x18] sm:$0xff] %v4790_v10  ;;  %v4789_v5 = vadd.f32 %v6079_v51, %v4725_v22 }
 0x9bf   :  { %v6083_v30 = vpop.eup %6082  ;;  %4814 = vst [vmem:[#allocation22 + $0x58] sm:$0xff] %v4798_v62  ;;  %v4797_v17 = vadd.f32 %v6081_v46, %v4733_v39 }
 0x9c0   :  { %v6085_v44 = vpop.eup %6084  ;;  %4805 = vst [vmem:[#allocation22 + $0x10] sm:$0xff] %v4789_v5  ;;  %v4792_v59 = vadd.f32 %v6083_v30, %v4728_v31 }
 0x9c1   :  { %v6087_v18 = vpop.eup %6086  ;;  %4813 = vst [vmem:[#allocation22 + $0x50] sm:$0xff] %v4797_v17  ;;  %v4800_v60 = vadd.f32 %v6085_v44, %v4736_v25 }
 0x9c2   :  { %v6089_v37 = vpop.eup %6088  ;;  %4808 = vst [vmem:[#allocation22 + $0x28] sm:$0xff] %v4792_v59  ;;  %v4791_v45 = vadd.f32 %v6087_v18, %v4727_v38 }
 0x9c3   :  { %v6091_v15 = vpop.eup %6090  ;;  %4816 = vst [vmem:[#allocation22 + $0x68] sm:$0xff] %v4800_v60  ;;  %v4799_v29 = vadd.f32 %v6089_v37, %v4735_v32 }
 0x9c4   :  { %v6093_v42 = vpop.eup %6092  ;;  %4807 = vst [vmem:[#allocation22 + $0x20] sm:$0xff] %v4791_v45  ;;  %v4794_v3 = vadd.f32 %v6091_v15, %v4730_v56 }
 0x9c5   :  { %v6095_v13 = vpop.eup %6094  ;;  %4815 = vst [vmem:[#allocation22 + $0x60] sm:$0xff] %v4799_v29  ;;  %v4802_v28 = vadd.f32 %v6093_v42, %v4738_v9 }
 0x9c6   :  { %v6097_v52 = vpop.eup %6096  ;;  %4810 = vst [vmem:[#allocation22 + $0x38] sm:$0xff] %v4794_v3  ;;  %v4793_v58 = vadd.f32 %v6095_v13, %v4729_v61 }
 0x9c7   :  { %4818 = vst [vmem:[#allocation22 + $0x78] sm:$0xff] %v4802_v28  ;;  %v4801_v20 = vadd.f32 %v6097_v52, %v4737_v49 }
 0x9c8   :  { %4809 = vst [vmem:[#allocation22 + $0x30] sm:$0xff] %v4793_v58 }
 0x9c9   :  { %4817 = vst [vmem:[#allocation22 + $0x70] sm:$0xff] %v4801_v20 }
 0x9ca   :  { %6273 = shalt.err (!%p6270_p3)
}
 0x9cb   :  { %4830 = dma.vmem_to_hbm [thread:$0]  %s4825_s22, 2048, %s9231_s12, [#allocation10], %s6299_s17, %s6299_s17, %s6300_s19  }
 0x9cc   :  { %6292 = dma.done.wait [#allocation10], 2048  }
 0x9cd   :  { %6293 = vsyncadd [#allocation10], 4294965248 }
 0x9ce   :  { %4834 = vsyncpa [#allocation9], 1 }
 0x9cf   :  { %4835 = vsyncpa [#allocation12], 1 }
 0x9d0   :  { %4836 = vsyncpa [#allocation15], 1 }
 0x9d1   :  { %4837 = vsyncpa [#allocation18], 1 }
 0x9d2   :  { %4838 = vsyncpa [#allocation21], 1 }
 0x9d3   :  { %4839 = vsyncpa [#allocation10], 1 }

</bundles_post_ra>
